<compile_context>
chip_gen: v7x
topology: tpu7x:2x2x1
jax: 0.10.0
libtpu: 0.0.40
codegen_flags: <defaults>
</compile_context>

<pallas_src>
import functools
import math

import jax
import jax.numpy as jnp
from jax.experimental import pallas as pl
from jax.experimental.pallas import tpu as pltpu


_LN_EPS = 1e-5
_relu = lambda x: jnp.maximum(x, 0.0)
_gelu = lambda x: jax.nn.gelu(x, approximate=True)


# ----------------------------------------------------------------------------
# Shared numerics helpers (used by the kernel and by the JAX reference)
# ----------------------------------------------------------------------------
def _mm(a, b):
    """a @ b with bf16 MXU operands and f32 accumulation (cast is a no-op if already bf16)."""
    return jax.lax.dot_general(
        a.astype(jnp.bfloat16), b.astype(jnp.bfloat16),
        dimension_numbers=(((a.ndim - 1,), (0,)), ((), ())),
        preferred_element_type=jnp.float32)


def _mm_nt(a, b):
    """a @ b.T (contract last dims of two 2-D operands), bf16 in / f32 acc."""
    return jax.lax.dot_general(
        a.astype(jnp.bfloat16), b.astype(jnp.bfloat16),
        dimension_numbers=(((1,), (1,)), ((), ())),
        preferred_element_type=jnp.float32)


def _layernorm(x, g, b):
    # Variance via E[x^2] - mean^2: one fewer full-tensor pass than the centered form.
    x = x.astype(jnp.float32)
    mean = jnp.mean(x, axis=-1, keepdims=True)
    meansq = jnp.mean(x * x, axis=-1, keepdims=True)
    var = jnp.maximum(meansq - mean * mean, 0.0)
    return (x - mean) * jax.lax.rsqrt(var + _LN_EPS) * g + b


# ----------------------------------------------------------------------------
# In-kernel building blocks (take tuples of Refs, load at point of use)
# ----------------------------------------------------------------------------
def _k_linear(x, p):
    w, b = p
    return _mm(x, w[...]) + b[...]


def _k_layernorm(x, p):
    return _layernorm(x, p[0][...], p[1][...])


def _k_mlp(x, p, act):
    w1, b1, w2, b2 = p
    h = act(_mm(x, w1[...]) + b1[...])
    return _mm(h, w2[...]) + b2[...]


def _k_addition_adapter(x, side, p):
    # hidden = GELU(x @ W_down + b_down + side);  out = hidden @ W_up + b_up
    w1, b1, w2, b2 = p
    h = _gelu(_mm(x, w1[...]) + b1[...] + side)
    return _mm(h, w2[...]) + b2[...]


def _k_attention(q, k, v, p, num_heads, mode):
    """SAM `Attention` with packed q|k|v weights.

    p = (wqkv (E,3*Di) bf16, bqkv (1,3*Di) f32, wo (Di,E) bf16, bo (1,E) f32).
    The 1/sqrt(c) logits scale is pre-folded into the q slice of wqkv/bqkv.
    mode: "qkv" (q is k is v), "qk" (q is k), "none" (all distinct).
    """
    wqkv_r, bqkv_r, wo_r, bo_r = p
    di = wo_r.shape[0]
    c = di // num_heads
    wqkv = wqkv_r[...]
    bqkv = bqkv_r[...]

    if mode == "qkv":
        proj = _mm(q, wqkv) + bqkv                                  # (Nq, 3*Di), one wide matmul
        qp, kp, vp = proj[:, :di], proj[:, di:2 * di], proj[:, 2 * di:]
    elif mode == "qk":
        qk_proj = _mm(q, wqkv[:, :2 * di]) + bqkv[:, :2 * di]       # (Nq, 2*Di)
        qp, kp = qk_proj[:, :di], qk_proj[:, di:]
        vp = _mm(v, wqkv[:, 2 * di:]) + bqkv[:, 2 * di:]
    else:
        qp = _mm(q, wqkv[:, :di]) + bqkv[:, :di]
        kp = _mm(k, wqkv[:, di:2 * di]) + bqkv[:, di:2 * di]
        vp = _mm(v, wqkv[:, 2 * di:]) + bqkv[:, 2 * di:]

    heads = []
    for h in range(num_heads):                                      # small, unrolled at trace time
        sl = slice(h * c, (h + 1) * c)
        logits = _mm_nt(qp[:, sl], kp[:, sl])                       # (Nq, Nk) f32, scale pre-folded
        m = jnp.max(logits, axis=-1, keepdims=True)
        e = jnp.exp(logits - m)
        denom = jnp.sum(e, axis=-1, keepdims=True)
        probs = e * pl.reciprocal(denom, approx=True)               # EUP slot
        heads.append(_mm(probs, vp[:, sl]))                         # (Nq, c)
    o = jnp.concatenate(heads, axis=-1)                             # (Nq, Di) contiguous lanes
    return _mm(o, wo_r[...]) + bo_r[...]                            # one K=Di out-projection


# ----------------------------------------------------------------------------
# Fused block kernel
# ----------------------------------------------------------------------------
_PARAM_GROUPS = (
    ("self_attn", 4), ("cross_t2i", 4), ("cross_i2t", 4),
    ("norm1", 2), ("norm2", 2), ("norm3", 2), ("norm4", 2),
    ("mlp", 4), ("mlp_adapter", 4), ("down_sample", 2),
    ("t2i_adapter", 4), ("i2t_adapter", 4),
)


def _flatten_params(params):
    flat = []
    for name, n in _PARAM_GROUPS:
        group = tuple(params[name])
        assert len(group) == n, name
        flat.extend(group)
    return flat


def _block_kernel(num_heads, scale, skip_first_layer_pe, *refs):
    q_ref, k_ref, qpe_ref, kpe_ref = refs[:4]
    out_q_ref, out_k_ref = refs[-2:]
    param_refs = refs[4:-2]

    p = {}
    i = 0
    for name, n in _PARAM_GROUPS:
        p[name] = param_refs[i:i + n]
        i += n

    queries = q_ref[0].astype(jnp.float32)      # (Nq, E)
    keys = k_ref[0].astype(jnp.float32)         # (Nk, E)
    query_pe = qpe_ref[0].astype(jnp.float32)
    key_pe = kpe_ref[0].astype(jnp.float32)

    # Hoisted: `keys` is not updated until the end of step (4), so keys+key_pe is
    # identical in steps (2) and (4).
    keys_plus_pe = keys + key_pe

    # (1) self attention of sparse tokens
    if skip_first_layer_pe:
        queries = _k_attention(queries, queries, queries, p["self_attn"], num_heads, "qkv")
    else:
        q = queries + query_pe
        attn_out = _k_attention(q, q, queries, p["self_attn"], num_heads, "qk")
        queries = queries + attn_out
    queries = _k_layernorm(queries, p["norm1"])

    # (2) cross attention token -> image, plus addition adapter
    q = queries + query_pe
    attn_out = _k_attention(q, keys_plus_pe, keys, p["cross_t2i"], num_heads, "none")
    downsampled_queries = _k_linear(queries, p["down_sample"])
    attn_out = queries + attn_out
    adapter_out = _k_addition_adapter(attn_out, downsampled_queries, p["t2i_adapter"])
    queries = queries + adapter_out

    # (3) mlp block + scaled mlp adapter (note: no extra residual, per source)
    queries = (_k_mlp(_k_layernorm(queries, p["norm2"]), p["mlp"], _relu)
               + scale * _k_mlp(queries, p["mlp_adapter"], _gelu))
    queries = _k_layernorm(queries, p["norm3"])

    # (4) cross attention image -> token, plus adapter on the keys path
    q = queries + query_pe
    attn_out = _k_attention(keys_plus_pe, q, queries, p["cross_i2t"], num_heads, "none")
    attn_out = attn_out + keys
    attn_out = _k_mlp(attn_out, p["i2t_adapter"], _gelu)
    keys = keys + attn_out
    keys = _k_layernorm(keys, p["norm4"])

    out_q_ref[0] = queries.astype(out_q_ref.dtype)
    out_k_ref[0] = keys.astype(out_k_ref.dtype)


# ----------------------------------------------------------------------------
# Wrapper-side weight packing (bf16 cast, q/k/v fusion, 1/sqrt(c) folding)
# ----------------------------------------------------------------------------
def _pack_attention(p, num_heads):
    wq, bq, wk, bk, wv, bv, wo, bo = p
    di = wo.shape[0]
    s = 1.0 / math.sqrt(di // num_heads)          # fold logits scale into q projection
    wqkv = jnp.concatenate([wq * s, wk, wv], axis=1).astype(jnp.bfloat16)
    bqkv = jnp.concatenate([bq * s, bk, bv], axis=1).astype(jnp.float32)
    return (wqkv, bqkv, wo.astype(jnp.bfloat16), bo.astype(jnp.float32))


def _pack_mlp(p):
    w1, b1, w2, b2 = p
    return (w1.astype(jnp.bfloat16), b1.astype(jnp.float32),
            w2.astype(jnp.bfloat16), b2.astype(jnp.float32))


def _pack_linear(p):
    w, b = p
    return (w.astype(jnp.bfloat16), b.astype(jnp.float32))


def _pack_params(params, num_heads):
    return {
        "self_attn": _pack_attention(params["self_attn"], num_heads),
        "cross_t2i": _pack_attention(params["cross_t2i"], num_heads),
        "cross_i2t": _pack_attention(params["cross_i2t"], num_heads),
        "norm1": tuple(params["norm1"]),
        "norm2": tuple(params["norm2"]),
        "norm3": tuple(params["norm3"]),
        "norm4": tuple(params["norm4"]),
        "mlp": _pack_mlp(params["mlp"]),
        "mlp_adapter": _pack_mlp(params["mlp_adapter"]),
        "down_sample": _pack_linear(params["down_sample"]),
        "t2i_adapter": _pack_mlp(params["t2i_adapter"]),
        "i2t_adapter": _pack_mlp(params["i2t_adapter"]),
    }


def adapter_two_way_block_pallas(params, queries, keys, query_pe, key_pe, *,
                                 num_heads, scale, skip_first_layer_pe=False):
    B, nq, e = queries.shape
    nk = keys.shape[1]
    flat = _flatten_params(_pack_params(params, num_heads))

    def token_spec(n):
        # block = (1, tokens, E): last two dims equal the full array dims -> legal tile.
        return pl.BlockSpec((1, n, e), lambda b: (b, 0, 0))

    def weight_spec(arr):
        assert arr.ndim == 2
        # Constant block index -> the (small, bf16) weight is copied to VMEM once.
        # TODO(synk): at real SAM sizes single-buffer these (pipeline_mode=pl.Buffered(1)
        # or stage into scratch) to avoid wasting VMEM on double-buffered constants.
        return pl.BlockSpec(arr.shape, lambda b: (0, 0))

    in_specs = ([token_spec(nq), token_spec(nk), token_spec(nq), token_spec(nk)]
                + [weight_spec(w) for w in flat])
    out_specs = [token_spec(nq), token_spec(nk)]
    out_shape = [jax.ShapeDtypeStruct((B, nq, e), queries.dtype),
                 jax.ShapeDtypeStruct((B, nk, e), keys.dtype)]

    kernel = functools.partial(_block_kernel, num_heads, scale, skip_first_layer_pe)
    out_q, out_k = pl.pallas_call(
        kernel,
        grid=(B,),
        in_specs=in_specs,
        out_specs=out_specs,
        out_shape=out_shape,
        compiler_params=pltpu.CompilerParams(
            # v7x: batch split across the 2 TensorCores (use even B).
            dimension_semantics=("parallel",),
            # Explicit scoped-VMEM budget; safe on v5e/v6e (128 MiB) and v7x (64 MiB).
            vmem_limit_bytes=48 * 1024 * 1024,
        ),
    )(queries, keys, query_pe, key_pe, *flat)
    return out_q, out_k


# ----------------------------------------------------------------------------
# Pure-JAX reference (same bf16-operand / f32-accumulate matmul numerics)
# ----------------------------------------------------------------------------
def _ref_attention(q, k, v, p, num_heads):
    wq, bq, wk, bk, wv, bv, wo, bo = p
    qp = _mm(q, wq) + bq
    kp = _mm(k, wk) + bk
    vp = _mm(v, wv) + bv
    B, nq, di = qp.shape
    nk = kp.shape[1]
    c = di // num_heads
    qh = qp.reshape(B, nq, num_heads, c).transpose(0, 2, 1, 3)
    kh = kp.reshape(B, nk, num_heads, c).transpose(0, 2, 1, 3)
    vh = vp.reshape(B, nk, num_heads, c).transpose(0, 2, 1, 3)
    logits = jnp.einsum("bhqc,bhkc->bhqk",
                        qh.astype(jnp.bfloat16), kh.astype(jnp.bfloat16),
                        preferred_element_type=jnp.float32) / math.sqrt(c)
    probs = jax.nn.softmax(logits, axis=-1)
    o = jnp.einsum("bhqk,bhkc->bhqc",
                   probs.astype(jnp.bfloat16), vh.astype(jnp.bfloat16),
                   preferred_element_type=jnp.float32)
    o = o.transpose(0, 2, 1, 3).reshape(B, nq, di)
    return _mm(o, wo) + bo


def adapter_two_way_block_ref(params, queries, keys, query_pe, key_pe, *,
                              num_heads, scale, skip_first_layer_pe=False):
    linear = lambda x, p: _mm(x, p[0]) + p[1]
    ln = lambda x, p: _layernorm(x, p[0], p[1])
    mlp = lambda x, p, act: _mm(act(_mm(x, p[0]) + p[1]), p[2]) + p[3]
    add_adapter = lambda x, s, p: _mm(_gelu(_mm(x, p[0]) + p[1] + s), p[2]) + p[3]

    if skip_first_layer_pe:
        queries = _ref_attention(queries, queries, queries, params["self_attn"], num_heads)
    else:
        q = queries + query_pe
        attn_out = _ref_attention(q, q, queries, params["self_attn"], num_heads)
        queries = queries + attn_out
    queries = ln(queries, params["norm1"])

    q = queries + query_pe
    k = keys + key_pe
    attn_out = _ref_attention(q, k, keys, params["cross_t2i"], num_heads)
    downsampled = linear(queries, params["down_sample"])
    attn_out = queries + attn_out
    adapter_out = add_adapter(attn_out, downsampled, params["t2i_adapter"])
    queries = queries + adapter_out

    queries = (mlp(ln(queries, params["norm2"]), params["mlp"], _relu)
               + scale * mlp(queries, params["mlp_adapter"], _gelu))
    queries = ln(queries, params["norm3"])

    q = queries + query_pe
    k = keys + key_pe
    attn_out = _ref_attention(k, q, queries, params["cross_i2t"], num_heads)
    attn_out = attn_out + keys
    attn_out = mlp(attn_out, params["i2t_adapter"], _gelu)
    keys = keys + attn_out
    keys = ln(keys, params["norm4"])
    return queries, keys


# ----------------------------------------------------------------------------
# Deterministic parameter init
# ----------------------------------------------------------------------------
def _init_linear(key, d_in, d_out, std=0.05):
    kw, kb = jax.random.split(key)
    w = jax.random.normal(kw, (d_in, d_out), jnp.float32) * std
    b = jax.random.normal(kb, (1, d_out), jnp.float32) * 0.01
    return w, b


def _init_attn(key, embed_dim, internal_dim):
    ks = jax.random.split(key, 4)
    wq, bq = _init_linear(ks[0], embed_dim, internal_dim)
    wk, bk = _init_linear(ks[1], embed_dim, internal_dim)
    wv, bv = _init_linear(ks[2], embed_dim, internal_dim)
    wo, bo = _init_linear(ks[3], internal_dim, embed_dim)
    return (wq, bq, wk, bk, wv, bv, wo, bo)


def _init_mlp(key, embed_dim, hidden_dim):
    k1, k2 = jax.random.split(key)
    w1, b1 = _init_linear(k1, embed_dim, hidden_dim)
    w2, b2 = _init_linear(k2, hidden_dim, embed_dim)
    return (w1, b1, w2, b2)


def _init_ln(key, embed_dim):
    kg, kb = jax.random.split(key)
    g = 1.0 + 0.1 * jax.random.normal(kg, (1, embed_dim), jnp.float32)
    b = 0.05 * jax.random.normal(kb, (1, embed_dim), jnp.float32)
    return (g, b)


def init_params(key, E, block_mlp, adapter_mlp, downsample):
    ks = jax.random.split(key, 12)
    internal = E // downsample
    return {
        "self_attn": _init_attn(ks[0], E, E),
        "cross_t2i": _init_attn(ks[1], E, internal),
        "cross_i2t": _init_attn(ks[2], E, internal),
        "norm1": _init_ln(ks[3], E),
        "norm2": _init_ln(ks[4], E),
        "norm3": _init_ln(ks[5], E),
        "norm4": _init_ln(ks[6], E),
        "mlp": _init_mlp(ks[7], E, block_mlp),
        "mlp_adapter": _init_mlp(ks[8], E, adapter_mlp),
        "down_sample": _init_linear(ks[9], E, adapter_mlp),
        "t2i_adapter": _init_mlp(ks[10], E, adapter_mlp),
        "i2t_adapter": _init_mlp(ks[11], E, adapter_mlp),
    }


# ----------------------------------------------------------------------------
if __name__ == "__main__":
    B, NQ, NK, E, H = 2, 8, 64, 32, 4        # batch, sparse tokens, dense tokens, embed, heads
    BLOCK_MLP, ADAPTER_MLP = 64, 64          # block mlp hidden (small), adapter hidden (default 64)
    DOWNSAMPLE, SCALE = 2, 0.1

    root = jax.random.PRNGKey(0)
    k_params, k_q, k_k, k_qpe, k_kpe = jax.random.split(root, 5)
    params = init_params(k_params, E, BLOCK_MLP, ADAPTER_MLP, DOWNSAMPLE)

    queries = jax.random.normal(k_q, (B, NQ, E), jnp.float32)
    keys = jax.random.normal(k_k, (B, NK, E), jnp.float32)
    query_pe = jax.random.normal(k_qpe, (B, NQ, E), jnp.float32)
    key_pe = jax.random.normal(k_kpe, (B, NK, E), jnp.float32)

    out_q, out_k = adapter_two_way_block_pallas(
        params, queries, keys, query_pe, key_pe,
        num_heads=H, scale=SCALE, skip_first_layer_pe=False)
    jax.block_until_ready((out_q, out_k))

    ref_q, ref_k = adapter_two_way_block_ref(
        params, queries, keys, query_pe, key_pe,
        num_heads=H, scale=SCALE, skip_first_layer_pe=False)

    assert out_q.shape == (B, NQ, E) and out_k.shape == (B, NK, E)
    # Reference uses the same bf16-operand / f32-accumulate matmul numerics; the
    # tolerance covers the approximate softmax reciprocal, the pre-folded bf16
    # q-scale, transcendental differences, and accumulation-order effects.
    assert jnp.allclose(out_q, ref_q, atol=3e-2, rtol=3e-2), "queries mismatch"
    assert jnp.allclose(out_k, ref_k, atol=3e-2, rtol=3e-2), "keys mismatch"
    print("KERNEL_OK")
</pallas_src>

<mosaic_0001>
module attributes {stable_mosaic.version = 11 : i64} {
  func.func @_block_kernel(%arg0: i32, %arg1: memref<1x8x32xf32, #tpu.memory_space<vmem>>, %arg2: memref<1x64x32xf32, #tpu.memory_space<vmem>>, %arg3: memref<1x8x32xf32, #tpu.memory_space<vmem>>, %arg4: memref<1x64x32xf32, #tpu.memory_space<vmem>>, %arg5: memref<32x96xbf16, #tpu.memory_space<vmem>>, %arg6: memref<1x96xf32, #tpu.memory_space<vmem>>, %arg7: memref<32x32xbf16, #tpu.memory_space<vmem>>, %arg8: memref<1x32xf32, #tpu.memory_space<vmem>>, %arg9: memref<32x48xbf16, #tpu.memory_space<vmem>>, %arg10: memref<1x48xf32, #tpu.memory_space<vmem>>, %arg11: memref<16x32xbf16, #tpu.memory_space<vmem>>, %arg12: memref<1x32xf32, #tpu.memory_space<vmem>>, %arg13: memref<32x48xbf16, #tpu.memory_space<vmem>>, %arg14: memref<1x48xf32, #tpu.memory_space<vmem>>, %arg15: memref<16x32xbf16, #tpu.memory_space<vmem>>, %arg16: memref<1x32xf32, #tpu.memory_space<vmem>>, %arg17: memref<1x32xf32, #tpu.memory_space<vmem>>, %arg18: memref<1x32xf32, #tpu.memory_space<vmem>>, %arg19: memref<1x32xf32, #tpu.memory_space<vmem>>, %arg20: memref<1x32xf32, #tpu.memory_space<vmem>>, %arg21: memref<1x32xf32, #tpu.memory_space<vmem>>, %arg22: memref<1x32xf32, #tpu.memory_space<vmem>>, %arg23: memref<1x32xf32, #tpu.memory_space<vmem>>, %arg24: memref<1x32xf32, #tpu.memory_space<vmem>>, %arg25: memref<32x64xbf16, #tpu.memory_space<vmem>>, %arg26: memref<1x64xf32, #tpu.memory_space<vmem>>, %arg27: memref<64x32xbf16, #tpu.memory_space<vmem>>, %arg28: memref<1x32xf32, #tpu.memory_space<vmem>>, %arg29: memref<32x64xbf16, #tpu.memory_space<vmem>>, %arg30: memref<1x64xf32, #tpu.memory_space<vmem>>, %arg31: memref<64x32xbf16, #tpu.memory_space<vmem>>, %arg32: memref<1x32xf32, #tpu.memory_space<vmem>>, %arg33: memref<32x64xbf16, #tpu.memory_space<vmem>>, %arg34: memref<1x64xf32, #tpu.memory_space<vmem>>, %arg35: memref<32x64xbf16, #tpu.memory_space<vmem>>, %arg36: memref<1x64xf32, #tpu.memory_space<vmem>>, %arg37: memref<64x32xbf16, #tpu.memory_space<vmem>>, %arg38: memref<1x32xf32, #tpu.memory_space<vmem>>, %arg39: memref<32x64xbf16, #tpu.memory_space<vmem>>, %arg40: memref<1x64xf32, #tpu.memory_space<vmem>>, %arg41: memref<64x32xbf16, #tpu.memory_space<vmem>>, %arg42: memref<1x32xf32, #tpu.memory_space<vmem>>, %arg43: memref<1x8x32xf32, #tpu.memory_space<vmem>>, %arg44: memref<1x64x32xf32, #tpu.memory_space<vmem>>) attributes {dimension_semantics = [#tpu.dimension_semantics<parallel>], iteration_bounds = array<i64: 2>, scalar_prefetch = 0 : i64, scratch_operands = 0 : i64, tpu.core_type = #tpu.core_type<tc>, window_params = [{transform_indices = @transform_0, window_bounds = array<i64: 1, 8, 32>}, {transform_indices = @transform_1, window_bounds = array<i64: 1, 64, 32>}, {transform_indices = @transform_2, window_bounds = array<i64: 1, 8, 32>}, {transform_indices = @transform_3, window_bounds = array<i64: 1, 64, 32>}, {pipeline_mode = #tpu.pipeline_mode<synchronous>, transform_indices = @transform_4, window_bounds = array<i64: 32, 96>}, {pipeline_mode = #tpu.pipeline_mode<synchronous>, transform_indices = @transform_5, window_bounds = array<i64: 1, 96>}, {pipeline_mode = #tpu.pipeline_mode<synchronous>, transform_indices = @transform_6, window_bounds = array<i64: 32, 32>}, {pipeline_mode = #tpu.pipeline_mode<synchronous>, transform_indices = @transform_7, window_bounds = array<i64: 1, 32>}, {pipeline_mode = #tpu.pipeline_mode<synchronous>, transform_indices = @transform_8, window_bounds = array<i64: 32, 48>}, {pipeline_mode = #tpu.pipeline_mode<synchronous>, transform_indices = @transform_9, window_bounds = array<i64: 1, 48>}, {pipeline_mode = #tpu.pipeline_mode<synchronous>, transform_indices = @transform_10, window_bounds = array<i64: 16, 32>}, {pipeline_mode = #tpu.pipeline_mode<synchronous>, transform_indices = @transform_11, window_bounds = array<i64: 1, 32>}, {pipeline_mode = #tpu.pipeline_mode<synchronous>, transform_indices = @transform_12, window_bounds = array<i64: 32, 48>}, {pipeline_mode = #tpu.pipeline_mode<synchronous>, transform_indices = @transform_13, window_bounds = array<i64: 1, 48>}, {pipeline_mode = #tpu.pipeline_mode<synchronous>, transform_indices = @transform_14, window_bounds = array<i64: 16, 32>}, {pipeline_mode = #tpu.pipeline_mode<synchronous>, transform_indices = @transform_15, window_bounds = array<i64: 1, 32>}, {pipeline_mode = #tpu.pipeline_mode<synchronous>, transform_indices = @transform_16, window_bounds = array<i64: 1, 32>}, {pipeline_mode = #tpu.pipeline_mode<synchronous>, transform_indices = @transform_17, window_bounds = array<i64: 1, 32>}, {pipeline_mode = #tpu.pipeline_mode<synchronous>, transform_indices = @transform_18, window_bounds = array<i64: 1, 32>}, {pipeline_mode = #tpu.pipeline_mode<synchronous>, transform_indices = @transform_19, window_bounds = array<i64: 1, 32>}, {pipeline_mode = #tpu.pipeline_mode<synchronous>, transform_indices = @transform_20, window_bounds = array<i64: 1, 32>}, {pipeline_mode = #tpu.pipeline_mode<synchronous>, transform_indices = @transform_21, window_bounds = array<i64: 1, 32>}, {pipeline_mode = #tpu.pipeline_mode<synchronous>, transform_indices = @transform_22, window_bounds = array<i64: 1, 32>}, {pipeline_mode = #tpu.pipeline_mode<synchronous>, transform_indices = @transform_23, window_bounds = array<i64: 1, 32>}, {pipeline_mode = #tpu.pipeline_mode<synchronous>, transform_indices = @transform_24, window_bounds = array<i64: 32, 64>}, {pipeline_mode = #tpu.pipeline_mode<synchronous>, transform_indices = @transform_25, window_bounds = array<i64: 1, 64>}, {pipeline_mode = #tpu.pipeline_mode<synchronous>, transform_indices = @transform_26, window_bounds = array<i64: 64, 32>}, {pipeline_mode = #tpu.pipeline_mode<synchronous>, transform_indices = @transform_27, window_bounds = array<i64: 1, 32>}, {pipeline_mode = #tpu.pipeline_mode<synchronous>, transform_indices = @transform_28, window_bounds = array<i64: 32, 64>}, {pipeline_mode = #tpu.pipeline_mode<synchronous>, transform_indices = @transform_29, window_bounds = array<i64: 1, 64>}, {pipeline_mode = #tpu.pipeline_mode<synchronous>, transform_indices = @transform_30, window_bounds = array<i64: 64, 32>}, {pipeline_mode = #tpu.pipeline_mode<synchronous>, transform_indices = @transform_31, window_bounds = array<i64: 1, 32>}, {pipeline_mode = #tpu.pipeline_mode<synchronous>, transform_indices = @transform_32, window_bounds = array<i64: 32, 64>}, {pipeline_mode = #tpu.pipeline_mode<synchronous>, transform_indices = @transform_33, window_bounds = array<i64: 1, 64>}, {pipeline_mode = #tpu.pipeline_mode<synchronous>, transform_indices = @transform_34, window_bounds = array<i64: 32, 64>}, {pipeline_mode = #tpu.pipeline_mode<synchronous>, transform_indices = @transform_35, window_bounds = array<i64: 1, 64>}, {pipeline_mode = #tpu.pipeline_mode<synchronous>, transform_indices = @transform_36, window_bounds = array<i64: 64, 32>}, {pipeline_mode = #tpu.pipeline_mode<synchronous>, transform_indices = @transform_37, window_bounds = array<i64: 1, 32>}, {pipeline_mode = #tpu.pipeline_mode<synchronous>, transform_indices = @transform_38, window_bounds = array<i64: 32, 64>}, {pipeline_mode = #tpu.pipeline_mode<synchronous>, transform_indices = @transform_39, window_bounds = array<i64: 1, 64>}, {pipeline_mode = #tpu.pipeline_mode<synchronous>, transform_indices = @transform_40, window_bounds = array<i64: 64, 32>}, {pipeline_mode = #tpu.pipeline_mode<synchronous>, transform_indices = @transform_41, window_bounds = array<i64: 1, 32>}, {transform_indices = @transform_42, window_bounds = array<i64: 1, 8, 32>}, {transform_indices = @transform_43, window_bounds = array<i64: 1, 64, 32>}]} {
    %c0 = arith.constant 0 : index
    %c0_0 = arith.constant 0 : index
    %c0_1 = arith.constant 0 : index
    %0 = vector.load %arg1[%c0, %c0_0, %c0_1] : memref<1x8x32xf32, #tpu.memory_space<vmem>>, vector<1x8x32xf32>
    %1 = vector.shape_cast %0 : vector<1x8x32xf32> to vector<8x32xf32>
    %c0_2 = arith.constant 0 : index
    %c0_3 = arith.constant 0 : index
    %c0_4 = arith.constant 0 : index
    %2 = vector.load %arg2[%c0_2, %c0_3, %c0_4] : memref<1x64x32xf32, #tpu.memory_space<vmem>>, vector<1x64x32xf32>
    %3 = vector.shape_cast %2 : vector<1x64x32xf32> to vector<64x32xf32>
    %c0_5 = arith.constant 0 : index
    %c0_6 = arith.constant 0 : index
    %c0_7 = arith.constant 0 : index
    %4 = vector.load %arg3[%c0_5, %c0_6, %c0_7] : memref<1x8x32xf32, #tpu.memory_space<vmem>>, vector<1x8x32xf32>
    %5 = vector.shape_cast %4 : vector<1x8x32xf32> to vector<8x32xf32>
    %c0_8 = arith.constant 0 : index
    %c0_9 = arith.constant 0 : index
    %c0_10 = arith.constant 0 : index
    %6 = vector.load %arg4[%c0_8, %c0_9, %c0_10] : memref<1x64x32xf32, #tpu.memory_space<vmem>>, vector<1x64x32xf32>
    %7 = vector.shape_cast %6 : vector<1x64x32xf32> to vector<64x32xf32>
    %8 = arith.addf %3, %7 : vector<64x32xf32>
    %9 = arith.addf %1, %5 : vector<8x32xf32>
    %c0_11 = arith.constant 0 : index
    %c0_12 = arith.constant 0 : index
    %10 = vector.load %arg5[%c0_11, %c0_12] : memref<32x96xbf16, #tpu.memory_space<vmem>>, vector<32x96xbf16>
    %c0_13 = arith.constant 0 : index
    %c0_14 = arith.constant 0 : index
    %11 = vector.load %arg6[%c0_13, %c0_14] : memref<1x96xf32, #tpu.memory_space<vmem>>, vector<1x96xf32>
    %12 = vector.extract_strided_slice %10 {offsets = [0, 0], sizes = [32, 64], strides = [1, 1]} : vector<32x96xbf16> to vector<32x64xbf16>
    %13 = arith.truncf %9 : vector<8x32xf32> to vector<8x32xbf16>
    %cst = arith.constant dense<0.000000e+00> : vector<8x64xf32>
    %14 = tpu.matmul %13, %12, %cst {dimension_numbers = #tpu.dot_dimension_numbers<[1], [0], [0], [1], [0, 0, 1, 1], [], []>} : vector<8x32xbf16>, vector<32x64xbf16>, vector<8x64xf32> -> vector<8x64xf32>
    %15 = vector.extract_strided_slice %11 {offsets = [0, 0], sizes = [1, 64], strides = [1, 1]} : vector<1x96xf32> to vector<1x64xf32>
    %16 = vector.broadcast %15 : vector<1x64xf32> to vector<8x64xf32>
    %17 = arith.addf %14, %16 : vector<8x64xf32>
    %18 = vector.extract_strided_slice %17 {offsets = [0, 0], sizes = [8, 32], strides = [1, 1]} : vector<8x64xf32> to vector<8x32xf32>
    %19 = vector.extract_strided_slice %17 {offsets = [0, 32], sizes = [8, 32], strides = [1, 1]} : vector<8x64xf32> to vector<8x32xf32>
    %20 = vector.extract_strided_slice %10 {offsets = [0, 64], sizes = [32, 32], strides = [1, 1]} : vector<32x96xbf16> to vector<32x32xbf16>
    %21 = arith.truncf %1 : vector<8x32xf32> to vector<8x32xbf16>
    %cst_15 = arith.constant dense<0.000000e+00> : vector<8x32xf32>
    %22 = tpu.matmul %21, %20, %cst_15 {dimension_numbers = #tpu.dot_dimension_numbers<[1], [0], [0], [1], [0, 0, 1, 1], [], []>} : vector<8x32xbf16>, vector<32x32xbf16>, vector<8x32xf32> -> vector<8x32xf32>
    %23 = vector.extract_strided_slice %11 {offsets = [0, 64], sizes = [1, 32], strides = [1, 1]} : vector<1x96xf32> to vector<1x32xf32>
    %24 = vector.broadcast %23 : vector<1x32xf32> to vector<8x32xf32>
    %25 = arith.addf %22, %24 : vector<8x32xf32>
    %26 = vector.extract_strided_slice %18 {offsets = [0, 0], sizes = [8, 8], strides = [1, 1]} : vector<8x32xf32> to vector<8x8xf32>
    %27 = vector.extract_strided_slice %19 {offsets = [0, 0], sizes = [8, 8], strides = [1, 1]} : vector<8x32xf32> to vector<8x8xf32>
    %28 = arith.truncf %26 : vector<8x8xf32> to vector<8x8xbf16>
    %29 = arith.truncf %27 : vector<8x8xf32> to vector<8x8xbf16>
    %cst_16 = arith.constant dense<0.000000e+00> : vector<8x8xf32>
    %30 = tpu.matmul %28, %29, %cst_16 {dimension_numbers = #tpu.dot_dimension_numbers<[1], [1], [0], [0], [0, 0, 1, 0], [], []>} : vector<8x8xbf16>, vector<8x8xbf16>, vector<8x8xf32> -> vector<8x8xf32>
    %cst_17 = arith.constant dense<0xFF800000> : vector<8xf32>
    %31 = vector.multi_reduction <maximumf>, %30, %cst_17 [1] : vector<8x8xf32> to vector<8xf32>
    %32 = vector.shape_cast %31 : vector<8xf32> to vector<8x1xf32>
    %33 = vector.broadcast %32 : vector<8x1xf32> to vector<8x8xf32>
    %34 = arith.subf %30, %33 : vector<8x8xf32>
    %35 = math.exp %34 : vector<8x8xf32>
    %cst_18 = arith.constant dense<0.000000e+00> : vector<8xf32>
    %36 = vector.multi_reduction <add>, %35, %cst_18 [1] : vector<8x8xf32> to vector<8xf32>
    %37 = vector.shape_cast %36 : vector<8xf32> to vector<8x1xf32>
    %38 = tpu.reciprocal %37 {approx = true} : vector<8x1xf32> -> vector<8x1xf32>
    %39 = vector.broadcast %38 : vector<8x1xf32> to vector<8x8xf32>
    %40 = arith.mulf %35, %39 : vector<8x8xf32>
    %41 = vector.extract_strided_slice %25 {offsets = [0, 0], sizes = [8, 8], strides = [1, 1]} : vector<8x32xf32> to vector<8x8xf32>
    %42 = arith.truncf %40 : vector<8x8xf32> to vector<8x8xbf16>
    %43 = arith.truncf %41 : vector<8x8xf32> to vector<8x8xbf16>
    %cst_19 = arith.constant dense<0.000000e+00> : vector<8x8xf32>
    %44 = tpu.matmul %42, %43, %cst_19 {dimension_numbers = #tpu.dot_dimension_numbers<[1], [0], [0], [1], [0, 0, 1, 1], [], []>} : vector<8x8xbf16>, vector<8x8xbf16>, vector<8x8xf32> -> vector<8x8xf32>
    %45 = vector.extract_strided_slice %18 {offsets = [0, 8], sizes = [8, 8], strides = [1, 1]} : vector<8x32xf32> to vector<8x8xf32>
    %46 = vector.extract_strided_slice %19 {offsets = [0, 8], sizes = [8, 8], strides = [1, 1]} : vector<8x32xf32> to vector<8x8xf32>
    %47 = arith.truncf %45 : vector<8x8xf32> to vector<8x8xbf16>
    %48 = arith.truncf %46 : vector<8x8xf32> to vector<8x8xbf16>
    %cst_20 = arith.constant dense<0.000000e+00> : vector<8x8xf32>
    %49 = tpu.matmul %47, %48, %cst_20 {dimension_numbers = #tpu.dot_dimension_numbers<[1], [1], [0], [0], [0, 0, 1, 0], [], []>} : vector<8x8xbf16>, vector<8x8xbf16>, vector<8x8xf32> -> vector<8x8xf32>
    %cst_21 = arith.constant dense<0xFF800000> : vector<8xf32>
    %50 = vector.multi_reduction <maximumf>, %49, %cst_21 [1] : vector<8x8xf32> to vector<8xf32>
    %51 = vector.shape_cast %50 : vector<8xf32> to vector<8x1xf32>
    %52 = vector.broadcast %51 : vector<8x1xf32> to vector<8x8xf32>
    %53 = arith.subf %49, %52 : vector<8x8xf32>
    %54 = math.exp %53 : vector<8x8xf32>
    %cst_22 = arith.constant dense<0.000000e+00> : vector<8xf32>
    %55 = vector.multi_reduction <add>, %54, %cst_22 [1] : vector<8x8xf32> to vector<8xf32>
    %56 = vector.shape_cast %55 : vector<8xf32> to vector<8x1xf32>
    %57 = tpu.reciprocal %56 {approx = true} : vector<8x1xf32> -> vector<8x1xf32>
    %58 = vector.broadcast %57 : vector<8x1xf32> to vector<8x8xf32>
    %59 = arith.mulf %54, %58 : vector<8x8xf32>
    %60 = vector.extract_strided_slice %25 {offsets = [0, 8], sizes = [8, 8], strides = [1, 1]} : vector<8x32xf32> to vector<8x8xf32>
    %61 = arith.truncf %59 : vector<8x8xf32> to vector<8x8xbf16>
    %62 = arith.truncf %60 : vector<8x8xf32> to vector<8x8xbf16>
    %cst_23 = arith.constant dense<0.000000e+00> : vector<8x8xf32>
    %63 = tpu.matmul %61, %62, %cst_23 {dimension_numbers = #tpu.dot_dimension_numbers<[1], [0], [0], [1], [0, 0, 1, 1], [], []>} : vector<8x8xbf16>, vector<8x8xbf16>, vector<8x8xf32> -> vector<8x8xf32>
    %64 = vector.extract_strided_slice %18 {offsets = [0, 16], sizes = [8, 8], strides = [1, 1]} : vector<8x32xf32> to vector<8x8xf32>
    %65 = vector.extract_strided_slice %19 {offsets = [0, 16], sizes = [8, 8], strides = [1, 1]} : vector<8x32xf32> to vector<8x8xf32>
    %66 = arith.truncf %64 : vector<8x8xf32> to vector<8x8xbf16>
    %67 = arith.truncf %65 : vector<8x8xf32> to vector<8x8xbf16>
    %cst_24 = arith.constant dense<0.000000e+00> : vector<8x8xf32>
    %68 = tpu.matmul %66, %67, %cst_24 {dimension_numbers = #tpu.dot_dimension_numbers<[1], [1], [0], [0], [0, 0, 1, 0], [], []>} : vector<8x8xbf16>, vector<8x8xbf16>, vector<8x8xf32> -> vector<8x8xf32>
    %cst_25 = arith.constant dense<0xFF800000> : vector<8xf32>
    %69 = vector.multi_reduction <maximumf>, %68, %cst_25 [1] : vector<8x8xf32> to vector<8xf32>
    %70 = vector.shape_cast %69 : vector<8xf32> to vector<8x1xf32>
    %71 = vector.broadcast %70 : vector<8x1xf32> to vector<8x8xf32>
    %72 = arith.subf %68, %71 : vector<8x8xf32>
    %73 = math.exp %72 : vector<8x8xf32>
    %cst_26 = arith.constant dense<0.000000e+00> : vector<8xf32>
    %74 = vector.multi_reduction <add>, %73, %cst_26 [1] : vector<8x8xf32> to vector<8xf32>
    %75 = vector.shape_cast %74 : vector<8xf32> to vector<8x1xf32>
    %76 = tpu.reciprocal %75 {approx = true} : vector<8x1xf32> -> vector<8x1xf32>
    %77 = vector.broadcast %76 : vector<8x1xf32> to vector<8x8xf32>
    %78 = arith.mulf %73, %77 : vector<8x8xf32>
    %79 = vector.extract_strided_slice %25 {offsets = [0, 16], sizes = [8, 8], strides = [1, 1]} : vector<8x32xf32> to vector<8x8xf32>
    %80 = arith.truncf %78 : vector<8x8xf32> to vector<8x8xbf16>
    %81 = arith.truncf %79 : vector<8x8xf32> to vector<8x8xbf16>
    %cst_27 = arith.constant dense<0.000000e+00> : vector<8x8xf32>
    %82 = tpu.matmul %80, %81, %cst_27 {dimension_numbers = #tpu.dot_dimension_numbers<[1], [0], [0], [1], [0, 0, 1, 1], [], []>} : vector<8x8xbf16>, vector<8x8xbf16>, vector<8x8xf32> -> vector<8x8xf32>
    %83 = vector.extract_strided_slice %18 {offsets = [0, 24], sizes = [8, 8], strides = [1, 1]} : vector<8x32xf32> to vector<8x8xf32>
    %84 = vector.extract_strided_slice %19 {offsets = [0, 24], sizes = [8, 8], strides = [1, 1]} : vector<8x32xf32> to vector<8x8xf32>
    %85 = arith.truncf %83 : vector<8x8xf32> to vector<8x8xbf16>
    %86 = arith.truncf %84 : vector<8x8xf32> to vector<8x8xbf16>
    %cst_28 = arith.constant dense<0.000000e+00> : vector<8x8xf32>
    %87 = tpu.matmul %85, %86, %cst_28 {dimension_numbers = #tpu.dot_dimension_numbers<[1], [1], [0], [0], [0, 0, 1, 0], [], []>} : vector<8x8xbf16>, vector<8x8xbf16>, vector<8x8xf32> -> vector<8x8xf32>
    %cst_29 = arith.constant dense<0xFF800000> : vector<8xf32>
    %88 = vector.multi_reduction <maximumf>, %87, %cst_29 [1] : vector<8x8xf32> to vector<8xf32>
    %89 = vector.shape_cast %88 : vector<8xf32> to vector<8x1xf32>
    %90 = vector.broadcast %89 : vector<8x1xf32> to vector<8x8xf32>
    %91 = arith.subf %87, %90 : vector<8x8xf32>
    %92 = math.exp %91 : vector<8x8xf32>
    %cst_30 = arith.constant dense<0.000000e+00> : vector<8xf32>
    %93 = vector.multi_reduction <add>, %92, %cst_30 [1] : vector<8x8xf32> to vector<8xf32>
    %94 = vector.shape_cast %93 : vector<8xf32> to vector<8x1xf32>
    %95 = tpu.reciprocal %94 {approx = true} : vector<8x1xf32> -> vector<8x1xf32>
    %96 = vector.broadcast %95 : vector<8x1xf32> to vector<8x8xf32>
    %97 = arith.mulf %92, %96 : vector<8x8xf32>
    %98 = vector.extract_strided_slice %25 {offsets = [0, 24], sizes = [8, 8], strides = [1, 1]} : vector<8x32xf32> to vector<8x8xf32>
    %99 = arith.truncf %97 : vector<8x8xf32> to vector<8x8xbf16>
    %100 = arith.truncf %98 : vector<8x8xf32> to vector<8x8xbf16>
    %cst_31 = arith.constant dense<0.000000e+00> : vector<8x8xf32>
    %101 = tpu.matmul %99, %100, %cst_31 {dimension_numbers = #tpu.dot_dimension_numbers<[1], [0], [0], [1], [0, 0, 1, 1], [], []>} : vector<8x8xbf16>, vector<8x8xbf16>, vector<8x8xf32> -> vector<8x8xf32>
    %102 = tpu.concatenate %44, %63, %82, %101 in 1 : vector<8x8xf32>, vector<8x8xf32>, vector<8x8xf32>, vector<8x8xf32> -> vector<8x32xf32>
    %c0_32 = arith.constant 0 : index
    %c0_33 = arith.constant 0 : index
    %103 = vector.load %arg7[%c0_32, %c0_33] : memref<32x32xbf16, #tpu.memory_space<vmem>>, vector<32x32xbf16>
    %104 = arith.truncf %102 : vector<8x32xf32> to vector<8x32xbf16>
    %cst_34 = arith.constant dense<0.000000e+00> : vector<8x32xf32>
    %105 = tpu.matmul %104, %103, %cst_34 {dimension_numbers = #tpu.dot_dimension_numbers<[1], [0], [0], [1], [0, 0, 1, 1], [], []>} : vector<8x32xbf16>, vector<32x32xbf16>, vector<8x32xf32> -> vector<8x32xf32>
    %c0_35 = arith.constant 0 : index
    %c0_36 = arith.constant 0 : index
    %106 = vector.load %arg8[%c0_35, %c0_36] : memref<1x32xf32, #tpu.memory_space<vmem>>, vector<1x32xf32>
    %107 = vector.broadcast %106 : vector<1x32xf32> to vector<8x32xf32>
    %108 = arith.addf %105, %107 : vector<8x32xf32>
    %109 = arith.addf %1, %108 : vector<8x32xf32>
    %c0_37 = arith.constant 0 : index
    %c0_38 = arith.constant 0 : index
    %110 = vector.load %arg17[%c0_37, %c0_38] : memref<1x32xf32, #tpu.memory_space<vmem>>, vector<1x32xf32>
    %c0_39 = arith.constant 0 : index
    %c0_40 = arith.constant 0 : index
    %111 = vector.load %arg18[%c0_39, %c0_40] : memref<1x32xf32, #tpu.memory_space<vmem>>, vector<1x32xf32>
    %cst_41 = arith.constant dense<0.000000e+00> : vector<8xf32>
    %112 = vector.multi_reduction <add>, %109, %cst_41 [1] : vector<8x32xf32> to vector<8xf32>
    %113 = vector.shape_cast %112 : vector<8xf32> to vector<8x1xf32>
    %cst_42 = arith.constant 3.200000e+01 : f32
    %114 = vector.broadcast %cst_42 : f32 to vector<8x1xf32>
    %115 = arith.divf %113, %114 : vector<8x1xf32>
    %116 = arith.mulf %109, %109 : vector<8x32xf32>
    %cst_43 = arith.constant dense<0.000000e+00> : vector<8xf32>
    %117 = vector.multi_reduction <add>, %116, %cst_43 [1] : vector<8x32xf32> to vector<8xf32>
    %118 = vector.shape_cast %117 : vector<8xf32> to vector<8x1xf32>
    %cst_44 = arith.constant 3.200000e+01 : f32
    %119 = vector.broadcast %cst_44 : f32 to vector<8x1xf32>
    %120 = arith.divf %118, %119 : vector<8x1xf32>
    %121 = arith.mulf %115, %115 : vector<8x1xf32>
    %122 = arith.subf %120, %121 : vector<8x1xf32>
    %cst_45 = arith.constant 0.000000e+00 : f32
    %123 = vector.broadcast %cst_45 : f32 to vector<8x1xf32>
    %124 = arith.maximumf %122, %123 : vector<8x1xf32>
    %125 = vector.broadcast %115 : vector<8x1xf32> to vector<8x32xf32>
    %126 = arith.subf %109, %125 : vector<8x32xf32>
    %cst_46 = arith.constant 9.99999974E-6 : f32
    %127 = vector.broadcast %cst_46 : f32 to vector<8x1xf32>
    %128 = arith.addf %124, %127 : vector<8x1xf32>
    %129 = math.rsqrt %128 : vector<8x1xf32>
    %130 = vector.broadcast %129 : vector<8x1xf32> to vector<8x32xf32>
    %131 = arith.mulf %126, %130 : vector<8x32xf32>
    %132 = vector.broadcast %110 : vector<1x32xf32> to vector<8x32xf32>
    %133 = arith.mulf %131, %132 : vector<8x32xf32>
    %134 = vector.broadcast %111 : vector<1x32xf32> to vector<8x32xf32>
    %135 = arith.addf %133, %134 : vector<8x32xf32>
    %136 = arith.addf %135, %5 : vector<8x32xf32>
    %c0_47 = arith.constant 0 : index
    %c0_48 = arith.constant 0 : index
    %137 = vector.load %arg9[%c0_47, %c0_48] : memref<32x48xbf16, #tpu.memory_space<vmem>>, vector<32x48xbf16>
    %c0_49 = arith.constant 0 : index
    %c0_50 = arith.constant 0 : index
    %138 = vector.load %arg10[%c0_49, %c0_50] : memref<1x48xf32, #tpu.memory_space<vmem>>, vector<1x48xf32>
    %139 = vector.extract_strided_slice %137 {offsets = [0, 0], sizes = [32, 16], strides = [1, 1]} : vector<32x48xbf16> to vector<32x16xbf16>
    %140 = arith.truncf %136 : vector<8x32xf32> to vector<8x32xbf16>
    %cst_51 = arith.constant dense<0.000000e+00> : vector<8x16xf32>
    %141 = tpu.matmul %140, %139, %cst_51 {dimension_numbers = #tpu.dot_dimension_numbers<[1], [0], [0], [1], [0, 0, 1, 1], [], []>} : vector<8x32xbf16>, vector<32x16xbf16>, vector<8x16xf32> -> vector<8x16xf32>
    %142 = vector.extract_strided_slice %138 {offsets = [0, 0], sizes = [1, 16], strides = [1, 1]} : vector<1x48xf32> to vector<1x16xf32>
    %143 = vector.broadcast %142 : vector<1x16xf32> to vector<8x16xf32>
    %144 = arith.addf %141, %143 : vector<8x16xf32>
    %145 = vector.extract_strided_slice %137 {offsets = [0, 16], sizes = [32, 16], strides = [1, 1]} : vector<32x48xbf16> to vector<32x16xbf16>
    %146 = arith.truncf %8 : vector<64x32xf32> to vector<64x32xbf16>
    %cst_52 = arith.constant dense<0.000000e+00> : vector<64x16xf32>
    %147 = tpu.matmul %146, %145, %cst_52 {dimension_numbers = #tpu.dot_dimension_numbers<[1], [0], [0], [1], [0, 0, 1, 1], [], []>} : vector<64x32xbf16>, vector<32x16xbf16>, vector<64x16xf32> -> vector<64x16xf32>
    %148 = vector.extract_strided_slice %138 {offsets = [0, 16], sizes = [1, 16], strides = [1, 1]} : vector<1x48xf32> to vector<1x16xf32>
    %149 = vector.broadcast %148 : vector<1x16xf32> to vector<64x16xf32>
    %150 = arith.addf %147, %149 : vector<64x16xf32>
    %151 = vector.extract_strided_slice %137 {offsets = [0, 32], sizes = [32, 16], strides = [1, 1]} : vector<32x48xbf16> to vector<32x16xbf16>
    %152 = arith.truncf %3 : vector<64x32xf32> to vector<64x32xbf16>
    %cst_53 = arith.constant dense<0.000000e+00> : vector<64x16xf32>
    %153 = tpu.matmul %152, %151, %cst_53 {dimension_numbers = #tpu.dot_dimension_numbers<[1], [0], [0], [1], [0, 0, 1, 1], [], []>} : vector<64x32xbf16>, vector<32x16xbf16>, vector<64x16xf32> -> vector<64x16xf32>
    %154 = vector.extract_strided_slice %138 {offsets = [0, 32], sizes = [1, 16], strides = [1, 1]} : vector<1x48xf32> to vector<1x16xf32>
    %155 = vector.broadcast %154 : vector<1x16xf32> to vector<64x16xf32>
    %156 = arith.addf %153, %155 : vector<64x16xf32>
    %157 = vector.extract_strided_slice %144 {offsets = [0, 0], sizes = [8, 4], strides = [1, 1]} : vector<8x16xf32> to vector<8x4xf32>
    %158 = vector.extract_strided_slice %150 {offsets = [0, 0], sizes = [64, 4], strides = [1, 1]} : vector<64x16xf32> to vector<64x4xf32>
    %159 = arith.truncf %157 : vector<8x4xf32> to vector<8x4xbf16>
    %160 = arith.truncf %158 : vector<64x4xf32> to vector<64x4xbf16>
    %cst_54 = arith.constant dense<0.000000e+00> : vector<8x64xf32>
    %161 = tpu.matmul %159, %160, %cst_54 {dimension_numbers = #tpu.dot_dimension_numbers<[1], [1], [0], [0], [0, 0, 1, 0], [], []>} : vector<8x4xbf16>, vector<64x4xbf16>, vector<8x64xf32> -> vector<8x64xf32>
    %cst_55 = arith.constant dense<0xFF800000> : vector<8xf32>
    %162 = vector.multi_reduction <maximumf>, %161, %cst_55 [1] : vector<8x64xf32> to vector<8xf32>
    %163 = vector.shape_cast %162 : vector<8xf32> to vector<8x1xf32>
    %164 = vector.broadcast %163 : vector<8x1xf32> to vector<8x64xf32>
    %165 = arith.subf %161, %164 : vector<8x64xf32>
    %166 = math.exp %165 : vector<8x64xf32>
    %cst_56 = arith.constant dense<0.000000e+00> : vector<8xf32>
    %167 = vector.multi_reduction <add>, %166, %cst_56 [1] : vector<8x64xf32> to vector<8xf32>
    %168 = vector.shape_cast %167 : vector<8xf32> to vector<8x1xf32>
    %169 = tpu.reciprocal %168 {approx = true} : vector<8x1xf32> -> vector<8x1xf32>
    %170 = vector.broadcast %169 : vector<8x1xf32> to vector<8x64xf32>
    %171 = arith.mulf %166, %170 : vector<8x64xf32>
    %172 = vector.extract_strided_slice %156 {offsets = [0, 0], sizes = [64, 4], strides = [1, 1]} : vector<64x16xf32> to vector<64x4xf32>
    %173 = arith.truncf %171 : vector<8x64xf32> to vector<8x64xbf16>
    %174 = arith.truncf %172 : vector<64x4xf32> to vector<64x4xbf16>
    %cst_57 = arith.constant dense<0.000000e+00> : vector<8x4xf32>
    %175 = tpu.matmul %173, %174, %cst_57 {dimension_numbers = #tpu.dot_dimension_numbers<[1], [0], [0], [1], [0, 0, 1, 1], [], []>} : vector<8x64xbf16>, vector<64x4xbf16>, vector<8x4xf32> -> vector<8x4xf32>
    %176 = vector.extract_strided_slice %144 {offsets = [0, 4], sizes = [8, 4], strides = [1, 1]} : vector<8x16xf32> to vector<8x4xf32>
    %177 = vector.extract_strided_slice %150 {offsets = [0, 4], sizes = [64, 4], strides = [1, 1]} : vector<64x16xf32> to vector<64x4xf32>
    %178 = arith.truncf %176 : vector<8x4xf32> to vector<8x4xbf16>
    %179 = arith.truncf %177 : vector<64x4xf32> to vector<64x4xbf16>
    %cst_58 = arith.constant dense<0.000000e+00> : vector<8x64xf32>
    %180 = tpu.matmul %178, %179, %cst_58 {dimension_numbers = #tpu.dot_dimension_numbers<[1], [1], [0], [0], [0, 0, 1, 0], [], []>} : vector<8x4xbf16>, vector<64x4xbf16>, vector<8x64xf32> -> vector<8x64xf32>
    %cst_59 = arith.constant dense<0xFF800000> : vector<8xf32>
    %181 = vector.multi_reduction <maximumf>, %180, %cst_59 [1] : vector<8x64xf32> to vector<8xf32>
    %182 = vector.shape_cast %181 : vector<8xf32> to vector<8x1xf32>
    %183 = vector.broadcast %182 : vector<8x1xf32> to vector<8x64xf32>
    %184 = arith.subf %180, %183 : vector<8x64xf32>
    %185 = math.exp %184 : vector<8x64xf32>
    %cst_60 = arith.constant dense<0.000000e+00> : vector<8xf32>
    %186 = vector.multi_reduction <add>, %185, %cst_60 [1] : vector<8x64xf32> to vector<8xf32>
    %187 = vector.shape_cast %186 : vector<8xf32> to vector<8x1xf32>
    %188 = tpu.reciprocal %187 {approx = true} : vector<8x1xf32> -> vector<8x1xf32>
    %189 = vector.broadcast %188 : vector<8x1xf32> to vector<8x64xf32>
    %190 = arith.mulf %185, %189 : vector<8x64xf32>
    %191 = vector.extract_strided_slice %156 {offsets = [0, 4], sizes = [64, 4], strides = [1, 1]} : vector<64x16xf32> to vector<64x4xf32>
    %192 = arith.truncf %190 : vector<8x64xf32> to vector<8x64xbf16>
    %193 = arith.truncf %191 : vector<64x4xf32> to vector<64x4xbf16>
    %cst_61 = arith.constant dense<0.000000e+00> : vector<8x4xf32>
    %194 = tpu.matmul %192, %193, %cst_61 {dimension_numbers = #tpu.dot_dimension_numbers<[1], [0], [0], [1], [0, 0, 1, 1], [], []>} : vector<8x64xbf16>, vector<64x4xbf16>, vector<8x4xf32> -> vector<8x4xf32>
    %195 = vector.extract_strided_slice %144 {offsets = [0, 8], sizes = [8, 4], strides = [1, 1]} : vector<8x16xf32> to vector<8x4xf32>
    %196 = vector.extract_strided_slice %150 {offsets = [0, 8], sizes = [64, 4], strides = [1, 1]} : vector<64x16xf32> to vector<64x4xf32>
    %197 = arith.truncf %195 : vector<8x4xf32> to vector<8x4xbf16>
    %198 = arith.truncf %196 : vector<64x4xf32> to vector<64x4xbf16>
    %cst_62 = arith.constant dense<0.000000e+00> : vector<8x64xf32>
    %199 = tpu.matmul %197, %198, %cst_62 {dimension_numbers = #tpu.dot_dimension_numbers<[1], [1], [0], [0], [0, 0, 1, 0], [], []>} : vector<8x4xbf16>, vector<64x4xbf16>, vector<8x64xf32> -> vector<8x64xf32>
    %cst_63 = arith.constant dense<0xFF800000> : vector<8xf32>
    %200 = vector.multi_reduction <maximumf>, %199, %cst_63 [1] : vector<8x64xf32> to vector<8xf32>
    %201 = vector.shape_cast %200 : vector<8xf32> to vector<8x1xf32>
    %202 = vector.broadcast %201 : vector<8x1xf32> to vector<8x64xf32>
    %203 = arith.subf %199, %202 : vector<8x64xf32>
    %204 = math.exp %203 : vector<8x64xf32>
    %cst_64 = arith.constant dense<0.000000e+00> : vector<8xf32>
    %205 = vector.multi_reduction <add>, %204, %cst_64 [1] : vector<8x64xf32> to vector<8xf32>
    %206 = vector.shape_cast %205 : vector<8xf32> to vector<8x1xf32>
    %207 = tpu.reciprocal %206 {approx = true} : vector<8x1xf32> -> vector<8x1xf32>
    %208 = vector.broadcast %207 : vector<8x1xf32> to vector<8x64xf32>
    %209 = arith.mulf %204, %208 : vector<8x64xf32>
    %210 = vector.extract_strided_slice %156 {offsets = [0, 8], sizes = [64, 4], strides = [1, 1]} : vector<64x16xf32> to vector<64x4xf32>
    %211 = arith.truncf %209 : vector<8x64xf32> to vector<8x64xbf16>
    %212 = arith.truncf %210 : vector<64x4xf32> to vector<64x4xbf16>
    %cst_65 = arith.constant dense<0.000000e+00> : vector<8x4xf32>
    %213 = tpu.matmul %211, %212, %cst_65 {dimension_numbers = #tpu.dot_dimension_numbers<[1], [0], [0], [1], [0, 0, 1, 1], [], []>} : vector<8x64xbf16>, vector<64x4xbf16>, vector<8x4xf32> -> vector<8x4xf32>
    %214 = vector.extract_strided_slice %144 {offsets = [0, 12], sizes = [8, 4], strides = [1, 1]} : vector<8x16xf32> to vector<8x4xf32>
    %215 = vector.extract_strided_slice %150 {offsets = [0, 12], sizes = [64, 4], strides = [1, 1]} : vector<64x16xf32> to vector<64x4xf32>
    %216 = arith.truncf %214 : vector<8x4xf32> to vector<8x4xbf16>
    %217 = arith.truncf %215 : vector<64x4xf32> to vector<64x4xbf16>
    %cst_66 = arith.constant dense<0.000000e+00> : vector<8x64xf32>
    %218 = tpu.matmul %216, %217, %cst_66 {dimension_numbers = #tpu.dot_dimension_numbers<[1], [1], [0], [0], [0, 0, 1, 0], [], []>} : vector<8x4xbf16>, vector<64x4xbf16>, vector<8x64xf32> -> vector<8x64xf32>
    %cst_67 = arith.constant dense<0xFF800000> : vector<8xf32>
    %219 = vector.multi_reduction <maximumf>, %218, %cst_67 [1] : vector<8x64xf32> to vector<8xf32>
    %220 = vector.shape_cast %219 : vector<8xf32> to vector<8x1xf32>
    %221 = vector.broadcast %220 : vector<8x1xf32> to vector<8x64xf32>
    %222 = arith.subf %218, %221 : vector<8x64xf32>
    %223 = math.exp %222 : vector<8x64xf32>
    %cst_68 = arith.constant dense<0.000000e+00> : vector<8xf32>
    %224 = vector.multi_reduction <add>, %223, %cst_68 [1] : vector<8x64xf32> to vector<8xf32>
    %225 = vector.shape_cast %224 : vector<8xf32> to vector<8x1xf32>
    %226 = tpu.reciprocal %225 {approx = true} : vector<8x1xf32> -> vector<8x1xf32>
    %227 = vector.broadcast %226 : vector<8x1xf32> to vector<8x64xf32>
    %228 = arith.mulf %223, %227 : vector<8x64xf32>
    %229 = vector.extract_strided_slice %156 {offsets = [0, 12], sizes = [64, 4], strides = [1, 1]} : vector<64x16xf32> to vector<64x4xf32>
    %230 = arith.truncf %228 : vector<8x64xf32> to vector<8x64xbf16>
    %231 = arith.truncf %229 : vector<64x4xf32> to vector<64x4xbf16>
    %cst_69 = arith.constant dense<0.000000e+00> : vector<8x4xf32>
    %232 = tpu.matmul %230, %231, %cst_69 {dimension_numbers = #tpu.dot_dimension_numbers<[1], [0], [0], [1], [0, 0, 1, 1], [], []>} : vector<8x64xbf16>, vector<64x4xbf16>, vector<8x4xf32> -> vector<8x4xf32>
    %233 = tpu.concatenate %175, %194, %213, %232 in 1 : vector<8x4xf32>, vector<8x4xf32>, vector<8x4xf32>, vector<8x4xf32> -> vector<8x16xf32>
    %c0_70 = arith.constant 0 : index
    %c0_71 = arith.constant 0 : index
    %234 = vector.load %arg11[%c0_70, %c0_71] : memref<16x32xbf16, #tpu.memory_space<vmem>>, vector<16x32xbf16>
    %235 = arith.truncf %233 : vector<8x16xf32> to vector<8x16xbf16>
    %cst_72 = arith.constant dense<0.000000e+00> : vector<8x32xf32>
    %236 = tpu.matmul %235, %234, %cst_72 {dimension_numbers = #tpu.dot_dimension_numbers<[1], [0], [0], [1], [0, 0, 1, 1], [], []>} : vector<8x16xbf16>, vector<16x32xbf16>, vector<8x32xf32> -> vector<8x32xf32>
    %c0_73 = arith.constant 0 : index
    %c0_74 = arith.constant 0 : index
    %237 = vector.load %arg12[%c0_73, %c0_74] : memref<1x32xf32, #tpu.memory_space<vmem>>, vector<1x32xf32>
    %238 = vector.broadcast %237 : vector<1x32xf32> to vector<8x32xf32>
    %239 = arith.addf %236, %238 : vector<8x32xf32>
    %c0_75 = arith.constant 0 : index
    %c0_76 = arith.constant 0 : index
    %240 = vector.load %arg33[%c0_75, %c0_76] : memref<32x64xbf16, #tpu.memory_space<vmem>>, vector<32x64xbf16>
    %241 = arith.truncf %135 : vector<8x32xf32> to vector<8x32xbf16>
    %cst_77 = arith.constant dense<0.000000e+00> : vector<8x64xf32>
    %242 = tpu.matmul %241, %240, %cst_77 {dimension_numbers = #tpu.dot_dimension_numbers<[1], [0], [0], [1], [0, 0, 1, 1], [], []>} : vector<8x32xbf16>, vector<32x64xbf16>, vector<8x64xf32> -> vector<8x64xf32>
    %c0_78 = arith.constant 0 : index
    %c0_79 = arith.constant 0 : index
    %243 = vector.load %arg34[%c0_78, %c0_79] : memref<1x64xf32, #tpu.memory_space<vmem>>, vector<1x64xf32>
    %244 = vector.broadcast %243 : vector<1x64xf32> to vector<8x64xf32>
    %245 = arith.addf %242, %244 : vector<8x64xf32>
    %246 = arith.addf %135, %239 : vector<8x32xf32>
    %c0_80 = arith.constant 0 : index
    %c0_81 = arith.constant 0 : index
    %247 = vector.load %arg35[%c0_80, %c0_81] : memref<32x64xbf16, #tpu.memory_space<vmem>>, vector<32x64xbf16>
    %248 = arith.truncf %246 : vector<8x32xf32> to vector<8x32xbf16>
    %cst_82 = arith.constant dense<0.000000e+00> : vector<8x64xf32>
    %249 = tpu.matmul %248, %247, %cst_82 {dimension_numbers = #tpu.dot_dimension_numbers<[1], [0], [0], [1], [0, 0, 1, 1], [], []>} : vector<8x32xbf16>, vector<32x64xbf16>, vector<8x64xf32> -> vector<8x64xf32>
    %c0_83 = arith.constant 0 : index
    %c0_84 = arith.constant 0 : index
    %250 = vector.load %arg36[%c0_83, %c0_84] : memref<1x64xf32, #tpu.memory_space<vmem>>, vector<1x64xf32>
    %251 = vector.broadcast %250 : vector<1x64xf32> to vector<8x64xf32>
    %252 = arith.addf %249, %251 : vector<8x64xf32>
    %253 = arith.addf %252, %245 : vector<8x64xf32>
    %254 = arith.mulf %253, %253 : vector<8x64xf32>
    %255 = arith.mulf %253, %254 : vector<8x64xf32>
    %cst_85 = arith.constant 4.471500e-02 : f32
    %256 = vector.broadcast %cst_85 : f32 to vector<8x64xf32>
    %257 = arith.mulf %256, %255 : vector<8x64xf32>
    %258 = arith.addf %253, %257 : vector<8x64xf32>
    %cst_86 = arith.constant 0.797884583 : f32
    %259 = vector.broadcast %cst_86 : f32 to vector<8x64xf32>
    %260 = arith.mulf %259, %258 : vector<8x64xf32>
    %261 = math.tanh %260 : vector<8x64xf32>
    %cst_87 = arith.constant 1.000000e+00 : f32
    %262 = vector.broadcast %cst_87 : f32 to vector<8x64xf32>
    %263 = arith.addf %262, %261 : vector<8x64xf32>
    %cst_88 = arith.constant 5.000000e-01 : f32
    %264 = vector.broadcast %cst_88 : f32 to vector<8x64xf32>
    %265 = arith.mulf %264, %263 : vector<8x64xf32>
    %266 = arith.mulf %253, %265 : vector<8x64xf32>
    %c0_89 = arith.constant 0 : index
    %c0_90 = arith.constant 0 : index
    %267 = vector.load %arg37[%c0_89, %c0_90] : memref<64x32xbf16, #tpu.memory_space<vmem>>, vector<64x32xbf16>
    %268 = arith.truncf %266 : vector<8x64xf32> to vector<8x64xbf16>
    %cst_91 = arith.constant dense<0.000000e+00> : vector<8x32xf32>
    %269 = tpu.matmul %268, %267, %cst_91 {dimension_numbers = #tpu.dot_dimension_numbers<[1], [0], [0], [1], [0, 0, 1, 1], [], []>} : vector<8x64xbf16>, vector<64x32xbf16>, vector<8x32xf32> -> vector<8x32xf32>
    %c0_92 = arith.constant 0 : index
    %c0_93 = arith.constant 0 : index
    %270 = vector.load %arg38[%c0_92, %c0_93] : memref<1x32xf32, #tpu.memory_space<vmem>>, vector<1x32xf32>
    %271 = vector.broadcast %270 : vector<1x32xf32> to vector<8x32xf32>
    %272 = arith.addf %269, %271 : vector<8x32xf32>
    %273 = arith.addf %135, %272 : vector<8x32xf32>
    %c0_94 = arith.constant 0 : index
    %c0_95 = arith.constant 0 : index
    %274 = vector.load %arg19[%c0_94, %c0_95] : memref<1x32xf32, #tpu.memory_space<vmem>>, vector<1x32xf32>
    %c0_96 = arith.constant 0 : index
    %c0_97 = arith.constant 0 : index
    %275 = vector.load %arg20[%c0_96, %c0_97] : memref<1x32xf32, #tpu.memory_space<vmem>>, vector<1x32xf32>
    %cst_98 = arith.constant dense<0.000000e+00> : vector<8xf32>
    %276 = vector.multi_reduction <add>, %273, %cst_98 [1] : vector<8x32xf32> to vector<8xf32>
    %277 = vector.shape_cast %276 : vector<8xf32> to vector<8x1xf32>
    %cst_99 = arith.constant 3.200000e+01 : f32
    %278 = vector.broadcast %cst_99 : f32 to vector<8x1xf32>
    %279 = arith.divf %277, %278 : vector<8x1xf32>
    %280 = arith.mulf %273, %273 : vector<8x32xf32>
    %cst_100 = arith.constant dense<0.000000e+00> : vector<8xf32>
    %281 = vector.multi_reduction <add>, %280, %cst_100 [1] : vector<8x32xf32> to vector<8xf32>
    %282 = vector.shape_cast %281 : vector<8xf32> to vector<8x1xf32>
    %cst_101 = arith.constant 3.200000e+01 : f32
    %283 = vector.broadcast %cst_101 : f32 to vector<8x1xf32>
    %284 = arith.divf %282, %283 : vector<8x1xf32>
    %285 = arith.mulf %279, %279 : vector<8x1xf32>
    %286 = arith.subf %284, %285 : vector<8x1xf32>
    %cst_102 = arith.constant 0.000000e+00 : f32
    %287 = vector.broadcast %cst_102 : f32 to vector<8x1xf32>
    %288 = arith.maximumf %286, %287 : vector<8x1xf32>
    %289 = vector.broadcast %279 : vector<8x1xf32> to vector<8x32xf32>
    %290 = arith.subf %273, %289 : vector<8x32xf32>
    %cst_103 = arith.constant 9.99999974E-6 : f32
    %291 = vector.broadcast %cst_103 : f32 to vector<8x1xf32>
    %292 = arith.addf %288, %291 : vector<8x1xf32>
    %293 = math.rsqrt %292 : vector<8x1xf32>
    %294 = vector.broadcast %293 : vector<8x1xf32> to vector<8x32xf32>
    %295 = arith.mulf %290, %294 : vector<8x32xf32>
    %296 = vector.broadcast %274 : vector<1x32xf32> to vector<8x32xf32>
    %297 = arith.mulf %295, %296 : vector<8x32xf32>
    %298 = vector.broadcast %275 : vector<1x32xf32> to vector<8x32xf32>
    %299 = arith.addf %297, %298 : vector<8x32xf32>
    %c0_104 = arith.constant 0 : index
    %c0_105 = arith.constant 0 : index
    %300 = vector.load %arg25[%c0_104, %c0_105] : memref<32x64xbf16, #tpu.memory_space<vmem>>, vector<32x64xbf16>
    %301 = arith.truncf %299 : vector<8x32xf32> to vector<8x32xbf16>
    %cst_106 = arith.constant dense<0.000000e+00> : vector<8x64xf32>
    %302 = tpu.matmul %301, %300, %cst_106 {dimension_numbers = #tpu.dot_dimension_numbers<[1], [0], [0], [1], [0, 0, 1, 1], [], []>} : vector<8x32xbf16>, vector<32x64xbf16>, vector<8x64xf32> -> vector<8x64xf32>
    %c0_107 = arith.constant 0 : index
    %c0_108 = arith.constant 0 : index
    %303 = vector.load %arg26[%c0_107, %c0_108] : memref<1x64xf32, #tpu.memory_space<vmem>>, vector<1x64xf32>
    %304 = vector.broadcast %303 : vector<1x64xf32> to vector<8x64xf32>
    %305 = arith.addf %302, %304 : vector<8x64xf32>
    %cst_109 = arith.constant 0.000000e+00 : f32
    %306 = vector.broadcast %cst_109 : f32 to vector<8x64xf32>
    %307 = arith.maximumf %305, %306 : vector<8x64xf32>
    %c0_110 = arith.constant 0 : index
    %c0_111 = arith.constant 0 : index
    %308 = vector.load %arg27[%c0_110, %c0_111] : memref<64x32xbf16, #tpu.memory_space<vmem>>, vector<64x32xbf16>
    %309 = arith.truncf %307 : vector<8x64xf32> to vector<8x64xbf16>
    %cst_112 = arith.constant dense<0.000000e+00> : vector<8x32xf32>
    %310 = tpu.matmul %309, %308, %cst_112 {dimension_numbers = #tpu.dot_dimension_numbers<[1], [0], [0], [1], [0, 0, 1, 1], [], []>} : vector<8x64xbf16>, vector<64x32xbf16>, vector<8x32xf32> -> vector<8x32xf32>
    %c0_113 = arith.constant 0 : index
    %c0_114 = arith.constant 0 : index
    %311 = vector.load %arg28[%c0_113, %c0_114] : memref<1x32xf32, #tpu.memory_space<vmem>>, vector<1x32xf32>
    %312 = vector.broadcast %311 : vector<1x32xf32> to vector<8x32xf32>
    %313 = arith.addf %310, %312 : vector<8x32xf32>
    %c0_115 = arith.constant 0 : index
    %c0_116 = arith.constant 0 : index
    %314 = vector.load %arg29[%c0_115, %c0_116] : memref<32x64xbf16, #tpu.memory_space<vmem>>, vector<32x64xbf16>
    %315 = arith.truncf %273 : vector<8x32xf32> to vector<8x32xbf16>
    %cst_117 = arith.constant dense<0.000000e+00> : vector<8x64xf32>
    %316 = tpu.matmul %315, %314, %cst_117 {dimension_numbers = #tpu.dot_dimension_numbers<[1], [0], [0], [1], [0, 0, 1, 1], [], []>} : vector<8x32xbf16>, vector<32x64xbf16>, vector<8x64xf32> -> vector<8x64xf32>
    %c0_118 = arith.constant 0 : index
    %c0_119 = arith.constant 0 : index
    %317 = vector.load %arg30[%c0_118, %c0_119] : memref<1x64xf32, #tpu.memory_space<vmem>>, vector<1x64xf32>
    %318 = vector.broadcast %317 : vector<1x64xf32> to vector<8x64xf32>
    %319 = arith.addf %316, %318 : vector<8x64xf32>
    %320 = arith.mulf %319, %319 : vector<8x64xf32>
    %321 = arith.mulf %319, %320 : vector<8x64xf32>
    %cst_120 = arith.constant 4.471500e-02 : f32
    %322 = vector.broadcast %cst_120 : f32 to vector<8x64xf32>
    %323 = arith.mulf %322, %321 : vector<8x64xf32>
    %324 = arith.addf %319, %323 : vector<8x64xf32>
    %cst_121 = arith.constant 0.797884583 : f32
    %325 = vector.broadcast %cst_121 : f32 to vector<8x64xf32>
    %326 = arith.mulf %325, %324 : vector<8x64xf32>
    %327 = math.tanh %326 : vector<8x64xf32>
    %cst_122 = arith.constant 1.000000e+00 : f32
    %328 = vector.broadcast %cst_122 : f32 to vector<8x64xf32>
    %329 = arith.addf %328, %327 : vector<8x64xf32>
    %cst_123 = arith.constant 5.000000e-01 : f32
    %330 = vector.broadcast %cst_123 : f32 to vector<8x64xf32>
    %331 = arith.mulf %330, %329 : vector<8x64xf32>
    %332 = arith.mulf %319, %331 : vector<8x64xf32>
    %c0_124 = arith.constant 0 : index
    %c0_125 = arith.constant 0 : index
    %333 = vector.load %arg31[%c0_124, %c0_125] : memref<64x32xbf16, #tpu.memory_space<vmem>>, vector<64x32xbf16>
    %334 = arith.truncf %332 : vector<8x64xf32> to vector<8x64xbf16>
    %cst_126 = arith.constant dense<0.000000e+00> : vector<8x32xf32>
    %335 = tpu.matmul %334, %333, %cst_126 {dimension_numbers = #tpu.dot_dimension_numbers<[1], [0], [0], [1], [0, 0, 1, 1], [], []>} : vector<8x64xbf16>, vector<64x32xbf16>, vector<8x32xf32> -> vector<8x32xf32>
    %c0_127 = arith.constant 0 : index
    %c0_128 = arith.constant 0 : index
    %336 = vector.load %arg32[%c0_127, %c0_128] : memref<1x32xf32, #tpu.memory_space<vmem>>, vector<1x32xf32>
    %337 = vector.broadcast %336 : vector<1x32xf32> to vector<8x32xf32>
    %338 = arith.addf %335, %337 : vector<8x32xf32>
    %cst_129 = arith.constant 1.000000e-01 : f32
    %339 = vector.broadcast %cst_129 : f32 to vector<8x32xf32>
    %340 = arith.mulf %339, %338 : vector<8x32xf32>
    %341 = arith.addf %313, %340 : vector<8x32xf32>
    %c0_130 = arith.constant 0 : index
    %c0_131 = arith.constant 0 : index
    %342 = vector.load %arg21[%c0_130, %c0_131] : memref<1x32xf32, #tpu.memory_space<vmem>>, vector<1x32xf32>
    %c0_132 = arith.constant 0 : index
    %c0_133 = arith.constant 0 : index
    %343 = vector.load %arg22[%c0_132, %c0_133] : memref<1x32xf32, #tpu.memory_space<vmem>>, vector<1x32xf32>
    %cst_134 = arith.constant dense<0.000000e+00> : vector<8xf32>
    %344 = vector.multi_reduction <add>, %341, %cst_134 [1] : vector<8x32xf32> to vector<8xf32>
    %345 = vector.shape_cast %344 : vector<8xf32> to vector<8x1xf32>
    %cst_135 = arith.constant 3.200000e+01 : f32
    %346 = vector.broadcast %cst_135 : f32 to vector<8x1xf32>
    %347 = arith.divf %345, %346 : vector<8x1xf32>
    %348 = arith.mulf %341, %341 : vector<8x32xf32>
    %cst_136 = arith.constant dense<0.000000e+00> : vector<8xf32>
    %349 = vector.multi_reduction <add>, %348, %cst_136 [1] : vector<8x32xf32> to vector<8xf32>
    %350 = vector.shape_cast %349 : vector<8xf32> to vector<8x1xf32>
    %cst_137 = arith.constant 3.200000e+01 : f32
    %351 = vector.broadcast %cst_137 : f32 to vector<8x1xf32>
    %352 = arith.divf %350, %351 : vector<8x1xf32>
    %353 = arith.mulf %347, %347 : vector<8x1xf32>
    %354 = arith.subf %352, %353 : vector<8x1xf32>
    %cst_138 = arith.constant 0.000000e+00 : f32
    %355 = vector.broadcast %cst_138 : f32 to vector<8x1xf32>
    %356 = arith.maximumf %354, %355 : vector<8x1xf32>
    %357 = vector.broadcast %347 : vector<8x1xf32> to vector<8x32xf32>
    %358 = arith.subf %341, %357 : vector<8x32xf32>
    %cst_139 = arith.constant 9.99999974E-6 : f32
    %359 = vector.broadcast %cst_139 : f32 to vector<8x1xf32>
    %360 = arith.addf %356, %359 : vector<8x1xf32>
    %361 = math.rsqrt %360 : vector<8x1xf32>
    %362 = vector.broadcast %361 : vector<8x1xf32> to vector<8x32xf32>
    %363 = arith.mulf %358, %362 : vector<8x32xf32>
    %364 = vector.broadcast %342 : vector<1x32xf32> to vector<8x32xf32>
    %365 = arith.mulf %363, %364 : vector<8x32xf32>
    %366 = vector.broadcast %343 : vector<1x32xf32> to vector<8x32xf32>
    %367 = arith.addf %365, %366 : vector<8x32xf32>
    %368 = arith.addf %367, %5 : vector<8x32xf32>
    %c0_140 = arith.constant 0 : index
    %c0_141 = arith.constant 0 : index
    %369 = vector.load %arg13[%c0_140, %c0_141] : memref<32x48xbf16, #tpu.memory_space<vmem>>, vector<32x48xbf16>
    %c0_142 = arith.constant 0 : index
    %c0_143 = arith.constant 0 : index
    %370 = vector.load %arg14[%c0_142, %c0_143] : memref<1x48xf32, #tpu.memory_space<vmem>>, vector<1x48xf32>
    %371 = vector.extract_strided_slice %369 {offsets = [0, 0], sizes = [32, 16], strides = [1, 1]} : vector<32x48xbf16> to vector<32x16xbf16>
    %372 = arith.truncf %8 : vector<64x32xf32> to vector<64x32xbf16>
    %cst_144 = arith.constant dense<0.000000e+00> : vector<64x16xf32>
    %373 = tpu.matmul %372, %371, %cst_144 {dimension_numbers = #tpu.dot_dimension_numbers<[1], [0], [0], [1], [0, 0, 1, 1], [], []>} : vector<64x32xbf16>, vector<32x16xbf16>, vector<64x16xf32> -> vector<64x16xf32>
    %374 = vector.extract_strided_slice %370 {offsets = [0, 0], sizes = [1, 16], strides = [1, 1]} : vector<1x48xf32> to vector<1x16xf32>
    %375 = vector.broadcast %374 : vector<1x16xf32> to vector<64x16xf32>
    %376 = arith.addf %373, %375 : vector<64x16xf32>
    %377 = vector.extract_strided_slice %369 {offsets = [0, 16], sizes = [32, 16], strides = [1, 1]} : vector<32x48xbf16> to vector<32x16xbf16>
    %378 = arith.truncf %368 : vector<8x32xf32> to vector<8x32xbf16>
    %cst_145 = arith.constant dense<0.000000e+00> : vector<8x16xf32>
    %379 = tpu.matmul %378, %377, %cst_145 {dimension_numbers = #tpu.dot_dimension_numbers<[1], [0], [0], [1], [0, 0, 1, 1], [], []>} : vector<8x32xbf16>, vector<32x16xbf16>, vector<8x16xf32> -> vector<8x16xf32>
    %380 = vector.extract_strided_slice %370 {offsets = [0, 16], sizes = [1, 16], strides = [1, 1]} : vector<1x48xf32> to vector<1x16xf32>
    %381 = vector.broadcast %380 : vector<1x16xf32> to vector<8x16xf32>
    %382 = arith.addf %379, %381 : vector<8x16xf32>
    %383 = vector.extract_strided_slice %369 {offsets = [0, 32], sizes = [32, 16], strides = [1, 1]} : vector<32x48xbf16> to vector<32x16xbf16>
    %384 = arith.truncf %367 : vector<8x32xf32> to vector<8x32xbf16>
    %cst_146 = arith.constant dense<0.000000e+00> : vector<8x16xf32>
    %385 = tpu.matmul %384, %383, %cst_146 {dimension_numbers = #tpu.dot_dimension_numbers<[1], [0], [0], [1], [0, 0, 1, 1], [], []>} : vector<8x32xbf16>, vector<32x16xbf16>, vector<8x16xf32> -> vector<8x16xf32>
    %386 = vector.extract_strided_slice %370 {offsets = [0, 32], sizes = [1, 16], strides = [1, 1]} : vector<1x48xf32> to vector<1x16xf32>
    %387 = vector.broadcast %386 : vector<1x16xf32> to vector<8x16xf32>
    %388 = arith.addf %385, %387 : vector<8x16xf32>
    %389 = vector.extract_strided_slice %376 {offsets = [0, 0], sizes = [64, 4], strides = [1, 1]} : vector<64x16xf32> to vector<64x4xf32>
    %390 = vector.extract_strided_slice %382 {offsets = [0, 0], sizes = [8, 4], strides = [1, 1]} : vector<8x16xf32> to vector<8x4xf32>
    %391 = arith.truncf %389 : vector<64x4xf32> to vector<64x4xbf16>
    %392 = arith.truncf %390 : vector<8x4xf32> to vector<8x4xbf16>
    %cst_147 = arith.constant dense<0.000000e+00> : vector<64x8xf32>
    %393 = tpu.matmul %391, %392, %cst_147 {dimension_numbers = #tpu.dot_dimension_numbers<[1], [1], [0], [0], [0, 0, 1, 0], [], []>} : vector<64x4xbf16>, vector<8x4xbf16>, vector<64x8xf32> -> vector<64x8xf32>
    %cst_148 = arith.constant dense<0xFF800000> : vector<64xf32>
    %394 = vector.multi_reduction <maximumf>, %393, %cst_148 [1] : vector<64x8xf32> to vector<64xf32>
    %395 = vector.shape_cast %394 : vector<64xf32> to vector<64x1xf32>
    %396 = vector.broadcast %395 : vector<64x1xf32> to vector<64x8xf32>
    %397 = arith.subf %393, %396 : vector<64x8xf32>
    %398 = math.exp %397 : vector<64x8xf32>
    %cst_149 = arith.constant dense<0.000000e+00> : vector<64xf32>
    %399 = vector.multi_reduction <add>, %398, %cst_149 [1] : vector<64x8xf32> to vector<64xf32>
    %400 = vector.shape_cast %399 : vector<64xf32> to vector<64x1xf32>
    %401 = tpu.reciprocal %400 {approx = true} : vector<64x1xf32> -> vector<64x1xf32>
    %402 = vector.broadcast %401 : vector<64x1xf32> to vector<64x8xf32>
    %403 = arith.mulf %398, %402 : vector<64x8xf32>
    %404 = vector.extract_strided_slice %388 {offsets = [0, 0], sizes = [8, 4], strides = [1, 1]} : vector<8x16xf32> to vector<8x4xf32>
    %405 = arith.truncf %403 : vector<64x8xf32> to vector<64x8xbf16>
    %406 = arith.truncf %404 : vector<8x4xf32> to vector<8x4xbf16>
    %cst_150 = arith.constant dense<0.000000e+00> : vector<64x4xf32>
    %407 = tpu.matmul %405, %406, %cst_150 {dimension_numbers = #tpu.dot_dimension_numbers<[1], [0], [0], [1], [0, 0, 1, 1], [], []>} : vector<64x8xbf16>, vector<8x4xbf16>, vector<64x4xf32> -> vector<64x4xf32>
    %408 = vector.extract_strided_slice %376 {offsets = [0, 4], sizes = [64, 4], strides = [1, 1]} : vector<64x16xf32> to vector<64x4xf32>
    %409 = vector.extract_strided_slice %382 {offsets = [0, 4], sizes = [8, 4], strides = [1, 1]} : vector<8x16xf32> to vector<8x4xf32>
    %410 = arith.truncf %408 : vector<64x4xf32> to vector<64x4xbf16>
    %411 = arith.truncf %409 : vector<8x4xf32> to vector<8x4xbf16>
    %cst_151 = arith.constant dense<0.000000e+00> : vector<64x8xf32>
    %412 = tpu.matmul %410, %411, %cst_151 {dimension_numbers = #tpu.dot_dimension_numbers<[1], [1], [0], [0], [0, 0, 1, 0], [], []>} : vector<64x4xbf16>, vector<8x4xbf16>, vector<64x8xf32> -> vector<64x8xf32>
    %cst_152 = arith.constant dense<0xFF800000> : vector<64xf32>
    %413 = vector.multi_reduction <maximumf>, %412, %cst_152 [1] : vector<64x8xf32> to vector<64xf32>
    %414 = vector.shape_cast %413 : vector<64xf32> to vector<64x1xf32>
    %415 = vector.broadcast %414 : vector<64x1xf32> to vector<64x8xf32>
    %416 = arith.subf %412, %415 : vector<64x8xf32>
    %417 = math.exp %416 : vector<64x8xf32>
    %cst_153 = arith.constant dense<0.000000e+00> : vector<64xf32>
    %418 = vector.multi_reduction <add>, %417, %cst_153 [1] : vector<64x8xf32> to vector<64xf32>
    %419 = vector.shape_cast %418 : vector<64xf32> to vector<64x1xf32>
    %420 = tpu.reciprocal %419 {approx = true} : vector<64x1xf32> -> vector<64x1xf32>
    %421 = vector.broadcast %420 : vector<64x1xf32> to vector<64x8xf32>
    %422 = arith.mulf %417, %421 : vector<64x8xf32>
    %423 = vector.extract_strided_slice %388 {offsets = [0, 4], sizes = [8, 4], strides = [1, 1]} : vector<8x16xf32> to vector<8x4xf32>
    %424 = arith.truncf %422 : vector<64x8xf32> to vector<64x8xbf16>
    %425 = arith.truncf %423 : vector<8x4xf32> to vector<8x4xbf16>
    %cst_154 = arith.constant dense<0.000000e+00> : vector<64x4xf32>
    %426 = tpu.matmul %424, %425, %cst_154 {dimension_numbers = #tpu.dot_dimension_numbers<[1], [0], [0], [1], [0, 0, 1, 1], [], []>} : vector<64x8xbf16>, vector<8x4xbf16>, vector<64x4xf32> -> vector<64x4xf32>
    %427 = vector.extract_strided_slice %376 {offsets = [0, 8], sizes = [64, 4], strides = [1, 1]} : vector<64x16xf32> to vector<64x4xf32>
    %428 = vector.extract_strided_slice %382 {offsets = [0, 8], sizes = [8, 4], strides = [1, 1]} : vector<8x16xf32> to vector<8x4xf32>
    %429 = arith.truncf %427 : vector<64x4xf32> to vector<64x4xbf16>
    %430 = arith.truncf %428 : vector<8x4xf32> to vector<8x4xbf16>
    %cst_155 = arith.constant dense<0.000000e+00> : vector<64x8xf32>
    %431 = tpu.matmul %429, %430, %cst_155 {dimension_numbers = #tpu.dot_dimension_numbers<[1], [1], [0], [0], [0, 0, 1, 0], [], []>} : vector<64x4xbf16>, vector<8x4xbf16>, vector<64x8xf32> -> vector<64x8xf32>
    %cst_156 = arith.constant dense<0xFF800000> : vector<64xf32>
    %432 = vector.multi_reduction <maximumf>, %431, %cst_156 [1] : vector<64x8xf32> to vector<64xf32>
    %433 = vector.shape_cast %432 : vector<64xf32> to vector<64x1xf32>
    %434 = vector.broadcast %433 : vector<64x1xf32> to vector<64x8xf32>
    %435 = arith.subf %431, %434 : vector<64x8xf32>
    %436 = math.exp %435 : vector<64x8xf32>
    %cst_157 = arith.constant dense<0.000000e+00> : vector<64xf32>
    %437 = vector.multi_reduction <add>, %436, %cst_157 [1] : vector<64x8xf32> to vector<64xf32>
    %438 = vector.shape_cast %437 : vector<64xf32> to vector<64x1xf32>
    %439 = tpu.reciprocal %438 {approx = true} : vector<64x1xf32> -> vector<64x1xf32>
    %440 = vector.broadcast %439 : vector<64x1xf32> to vector<64x8xf32>
    %441 = arith.mulf %436, %440 : vector<64x8xf32>
    %442 = vector.extract_strided_slice %388 {offsets = [0, 8], sizes = [8, 4], strides = [1, 1]} : vector<8x16xf32> to vector<8x4xf32>
    %443 = arith.truncf %441 : vector<64x8xf32> to vector<64x8xbf16>
    %444 = arith.truncf %442 : vector<8x4xf32> to vector<8x4xbf16>
    %cst_158 = arith.constant dense<0.000000e+00> : vector<64x4xf32>
    %445 = tpu.matmul %443, %444, %cst_158 {dimension_numbers = #tpu.dot_dimension_numbers<[1], [0], [0], [1], [0, 0, 1, 1], [], []>} : vector<64x8xbf16>, vector<8x4xbf16>, vector<64x4xf32> -> vector<64x4xf32>
    %446 = vector.extract_strided_slice %376 {offsets = [0, 12], sizes = [64, 4], strides = [1, 1]} : vector<64x16xf32> to vector<64x4xf32>
    %447 = vector.extract_strided_slice %382 {offsets = [0, 12], sizes = [8, 4], strides = [1, 1]} : vector<8x16xf32> to vector<8x4xf32>
    %448 = arith.truncf %446 : vector<64x4xf32> to vector<64x4xbf16>
    %449 = arith.truncf %447 : vector<8x4xf32> to vector<8x4xbf16>
    %cst_159 = arith.constant dense<0.000000e+00> : vector<64x8xf32>
    %450 = tpu.matmul %448, %449, %cst_159 {dimension_numbers = #tpu.dot_dimension_numbers<[1], [1], [0], [0], [0, 0, 1, 0], [], []>} : vector<64x4xbf16>, vector<8x4xbf16>, vector<64x8xf32> -> vector<64x8xf32>
    %cst_160 = arith.constant dense<0xFF800000> : vector<64xf32>
    %451 = vector.multi_reduction <maximumf>, %450, %cst_160 [1] : vector<64x8xf32> to vector<64xf32>
    %452 = vector.shape_cast %451 : vector<64xf32> to vector<64x1xf32>
    %453 = vector.broadcast %452 : vector<64x1xf32> to vector<64x8xf32>
    %454 = arith.subf %450, %453 : vector<64x8xf32>
    %455 = math.exp %454 : vector<64x8xf32>
    %cst_161 = arith.constant dense<0.000000e+00> : vector<64xf32>
    %456 = vector.multi_reduction <add>, %455, %cst_161 [1] : vector<64x8xf32> to vector<64xf32>
    %457 = vector.shape_cast %456 : vector<64xf32> to vector<64x1xf32>
    %458 = tpu.reciprocal %457 {approx = true} : vector<64x1xf32> -> vector<64x1xf32>
    %459 = vector.broadcast %458 : vector<64x1xf32> to vector<64x8xf32>
    %460 = arith.mulf %455, %459 : vector<64x8xf32>
    %461 = vector.extract_strided_slice %388 {offsets = [0, 12], sizes = [8, 4], strides = [1, 1]} : vector<8x16xf32> to vector<8x4xf32>
    %462 = arith.truncf %460 : vector<64x8xf32> to vector<64x8xbf16>
    %463 = arith.truncf %461 : vector<8x4xf32> to vector<8x4xbf16>
    %cst_162 = arith.constant dense<0.000000e+00> : vector<64x4xf32>
    %464 = tpu.matmul %462, %463, %cst_162 {dimension_numbers = #tpu.dot_dimension_numbers<[1], [0], [0], [1], [0, 0, 1, 1], [], []>} : vector<64x8xbf16>, vector<8x4xbf16>, vector<64x4xf32> -> vector<64x4xf32>
    %465 = tpu.concatenate %407, %426, %445, %464 in 1 : vector<64x4xf32>, vector<64x4xf32>, vector<64x4xf32>, vector<64x4xf32> -> vector<64x16xf32>
    %c0_163 = arith.constant 0 : index
    %c0_164 = arith.constant 0 : index
    %466 = vector.load %arg15[%c0_163, %c0_164] : memref<16x32xbf16, #tpu.memory_space<vmem>>, vector<16x32xbf16>
    %467 = arith.truncf %465 : vector<64x16xf32> to vector<64x16xbf16>
    %cst_165 = arith.constant dense<0.000000e+00> : vector<64x32xf32>
    %468 = tpu.matmul %467, %466, %cst_165 {dimension_numbers = #tpu.dot_dimension_numbers<[1], [0], [0], [1], [0, 0, 1, 1], [], []>} : vector<64x16xbf16>, vector<16x32xbf16>, vector<64x32xf32> -> vector<64x32xf32>
    %c0_166 = arith.constant 0 : index
    %c0_167 = arith.constant 0 : index
    %469 = vector.load %arg16[%c0_166, %c0_167] : memref<1x32xf32, #tpu.memory_space<vmem>>, vector<1x32xf32>
    %470 = vector.broadcast %469 : vector<1x32xf32> to vector<64x32xf32>
    %471 = arith.addf %468, %470 : vector<64x32xf32>
    %472 = arith.addf %471, %3 : vector<64x32xf32>
    %c0_168 = arith.constant 0 : index
    %c0_169 = arith.constant 0 : index
    %473 = vector.load %arg39[%c0_168, %c0_169] : memref<32x64xbf16, #tpu.memory_space<vmem>>, vector<32x64xbf16>
    %474 = arith.truncf %472 : vector<64x32xf32> to vector<64x32xbf16>
    %cst_170 = arith.constant dense<0.000000e+00> : vector<64x64xf32>
    %475 = tpu.matmul %474, %473, %cst_170 {dimension_numbers = #tpu.dot_dimension_numbers<[1], [0], [0], [1], [0, 0, 1, 1], [], []>} : vector<64x32xbf16>, vector<32x64xbf16>, vector<64x64xf32> -> vector<64x64xf32>
    %c0_171 = arith.constant 0 : index
    %c0_172 = arith.constant 0 : index
    %476 = vector.load %arg40[%c0_171, %c0_172] : memref<1x64xf32, #tpu.memory_space<vmem>>, vector<1x64xf32>
    %477 = vector.broadcast %476 : vector<1x64xf32> to vector<64x64xf32>
    %478 = arith.addf %475, %477 : vector<64x64xf32>
    %479 = arith.mulf %478, %478 : vector<64x64xf32>
    %480 = arith.mulf %478, %479 : vector<64x64xf32>
    %cst_173 = arith.constant 4.471500e-02 : f32
    %481 = vector.broadcast %cst_173 : f32 to vector<64x64xf32>
    %482 = arith.mulf %481, %480 : vector<64x64xf32>
    %483 = arith.addf %478, %482 : vector<64x64xf32>
    %cst_174 = arith.constant 0.797884583 : f32
    %484 = vector.broadcast %cst_174 : f32 to vector<64x64xf32>
    %485 = arith.mulf %484, %483 : vector<64x64xf32>
    %486 = math.tanh %485 : vector<64x64xf32>
    %cst_175 = arith.constant 1.000000e+00 : f32
    %487 = vector.broadcast %cst_175 : f32 to vector<64x64xf32>
    %488 = arith.addf %487, %486 : vector<64x64xf32>
    %cst_176 = arith.constant 5.000000e-01 : f32
    %489 = vector.broadcast %cst_176 : f32 to vector<64x64xf32>
    %490 = arith.mulf %489, %488 : vector<64x64xf32>
    %491 = arith.mulf %478, %490 : vector<64x64xf32>
    %c0_177 = arith.constant 0 : index
    %c0_178 = arith.constant 0 : index
    %492 = vector.load %arg41[%c0_177, %c0_178] : memref<64x32xbf16, #tpu.memory_space<vmem>>, vector<64x32xbf16>
    %493 = arith.truncf %491 : vector<64x64xf32> to vector<64x64xbf16>
    %cst_179 = arith.constant dense<0.000000e+00> : vector<64x32xf32>
    %494 = tpu.matmul %493, %492, %cst_179 {dimension_numbers = #tpu.dot_dimension_numbers<[1], [0], [0], [1], [0, 0, 1, 1], [], []>} : vector<64x64xbf16>, vector<64x32xbf16>, vector<64x32xf32> -> vector<64x32xf32>
    %c0_180 = arith.constant 0 : index
    %c0_181 = arith.constant 0 : index
    %495 = vector.load %arg42[%c0_180, %c0_181] : memref<1x32xf32, #tpu.memory_space<vmem>>, vector<1x32xf32>
    %496 = vector.broadcast %495 : vector<1x32xf32> to vector<64x32xf32>
    %497 = arith.addf %494, %496 : vector<64x32xf32>
    %498 = arith.addf %3, %497 : vector<64x32xf32>
    %c0_182 = arith.constant 0 : index
    %c0_183 = arith.constant 0 : index
    %499 = vector.load %arg23[%c0_182, %c0_183] : memref<1x32xf32, #tpu.memory_space<vmem>>, vector<1x32xf32>
    %c0_184 = arith.constant 0 : index
    %c0_185 = arith.constant 0 : index
    %500 = vector.load %arg24[%c0_184, %c0_185] : memref<1x32xf32, #tpu.memory_space<vmem>>, vector<1x32xf32>
    %cst_186 = arith.constant dense<0.000000e+00> : vector<64xf32>
    %501 = vector.multi_reduction <add>, %498, %cst_186 [1] : vector<64x32xf32> to vector<64xf32>
    %502 = vector.shape_cast %501 : vector<64xf32> to vector<64x1xf32>
    %cst_187 = arith.constant 3.200000e+01 : f32
    %503 = vector.broadcast %cst_187 : f32 to vector<64x1xf32>
    %504 = arith.divf %502, %503 : vector<64x1xf32>
    %505 = arith.mulf %498, %498 : vector<64x32xf32>
    %cst_188 = arith.constant dense<0.000000e+00> : vector<64xf32>
    %506 = vector.multi_reduction <add>, %505, %cst_188 [1] : vector<64x32xf32> to vector<64xf32>
    %507 = vector.shape_cast %506 : vector<64xf32> to vector<64x1xf32>
    %cst_189 = arith.constant 3.200000e+01 : f32
    %508 = vector.broadcast %cst_189 : f32 to vector<64x1xf32>
    %509 = arith.divf %507, %508 : vector<64x1xf32>
    %510 = arith.mulf %504, %504 : vector<64x1xf32>
    %511 = arith.subf %509, %510 : vector<64x1xf32>
    %cst_190 = arith.constant 0.000000e+00 : f32
    %512 = vector.broadcast %cst_190 : f32 to vector<64x1xf32>
    %513 = arith.maximumf %511, %512 : vector<64x1xf32>
    %514 = vector.broadcast %504 : vector<64x1xf32> to vector<64x32xf32>
    %515 = arith.subf %498, %514 : vector<64x32xf32>
    %cst_191 = arith.constant 9.99999974E-6 : f32
    %516 = vector.broadcast %cst_191 : f32 to vector<64x1xf32>
    %517 = arith.addf %513, %516 : vector<64x1xf32>
    %518 = math.rsqrt %517 : vector<64x1xf32>
    %519 = vector.broadcast %518 : vector<64x1xf32> to vector<64x32xf32>
    %520 = arith.mulf %515, %519 : vector<64x32xf32>
    %521 = vector.broadcast %499 : vector<1x32xf32> to vector<64x32xf32>
    %522 = arith.mulf %520, %521 : vector<64x32xf32>
    %523 = vector.broadcast %500 : vector<1x32xf32> to vector<64x32xf32>
    %524 = arith.addf %522, %523 : vector<64x32xf32>
    %c0_192 = arith.constant 0 : index
    %c0_193 = arith.constant 0 : index
    %c0_194 = arith.constant 0 : index
    %525 = vector.load %arg43[%c0_192, %c0_193, %c0_194] : memref<1x8x32xf32, #tpu.memory_space<vmem>>, vector<1x8x32xf32>
    %526 = vector.shape_cast %525 : vector<1x8x32xf32> to vector<8x32xf32>
    %527 = vector.shape_cast %367 : vector<8x32xf32> to vector<1x8x32xf32>
    tpu.vector_store %arg43[%c0_192, %c0_193, %c0_194], %527 {strides = array<i32>} : memref<1x8x32xf32, #tpu.memory_space<vmem>>, vector<1x8x32xf32>,
    %c0_195 = arith.constant 0 : index
    %c0_196 = arith.constant 0 : index
    %c0_197 = arith.constant 0 : index
    %528 = vector.load %arg44[%c0_195, %c0_196, %c0_197] : memref<1x64x32xf32, #tpu.memory_space<vmem>>, vector<1x64x32xf32>
    %529 = vector.shape_cast %528 : vector<1x64x32xf32> to vector<64x32xf32>
    %530 = vector.shape_cast %524 : vector<64x32xf32> to vector<1x64x32xf32>
    tpu.vector_store %arg44[%c0_195, %c0_196, %c0_197], %530 {strides = array<i32>} : memref<1x64x32xf32, #tpu.memory_space<vmem>>, vector<1x64x32xf32>,
    return
  }
  func.func @transform_0(%arg0: i32) -> (i32, i32, i32) {
    %c0_i32 = arith.constant 0 : i32
    %c0_i32_0 = arith.constant 0 : i32
    %c0_i32_1 = arith.constant 0 : i32
    return %arg0, %c0_i32, %c0_i32_0 : i32, i32, i32
  }
  func.func @transform_1(%arg0: i32) -> (i32, i32, i32) {
    %c0_i32 = arith.constant 0 : i32
    %c0_i32_0 = arith.constant 0 : i32
    %c0_i32_1 = arith.constant 0 : i32
    return %arg0, %c0_i32, %c0_i32_0 : i32, i32, i32
  }
  func.func @transform_2(%arg0: i32) -> (i32, i32, i32) {
    %c0_i32 = arith.constant 0 : i32
    %c0_i32_0 = arith.constant 0 : i32
    %c0_i32_1 = arith.constant 0 : i32
    return %arg0, %c0_i32, %c0_i32_0 : i32, i32, i32
  }
  func.func @transform_3(%arg0: i32) -> (i32, i32, i32) {
    %c0_i32 = arith.constant 0 : i32
    %c0_i32_0 = arith.constant 0 : i32
    %c0_i32_1 = arith.constant 0 : i32
    return %arg0, %c0_i32, %c0_i32_0 : i32, i32, i32
  }
  func.func @transform_4(%arg0: i32) -> (i32, i32) {
    %c0_i32 = arith.constant 0 : i32
    %c0_i32_0 = arith.constant 0 : i32
    %c0_i32_1 = arith.constant 0 : i32
    return %c0_i32, %c0_i32_0 : i32, i32
  }
  func.func @transform_5(%arg0: i32) -> (i32, i32) {
    %c0_i32 = arith.constant 0 : i32
    %c0_i32_0 = arith.constant 0 : i32
    %c0_i32_1 = arith.constant 0 : i32
    return %c0_i32, %c0_i32_0 : i32, i32
  }
  func.func @transform_6(%arg0: i32) -> (i32, i32) {
    %c0_i32 = arith.constant 0 : i32
    %c0_i32_0 = arith.constant 0 : i32
    %c0_i32_1 = arith.constant 0 : i32
    return %c0_i32, %c0_i32_0 : i32, i32
  }
  func.func @transform_7(%arg0: i32) -> (i32, i32) {
    %c0_i32 = arith.constant 0 : i32
    %c0_i32_0 = arith.constant 0 : i32
    %c0_i32_1 = arith.constant 0 : i32
    return %c0_i32, %c0_i32_0 : i32, i32
  }
  func.func @transform_8(%arg0: i32) -> (i32, i32) {
    %c0_i32 = arith.constant 0 : i32
    %c0_i32_0 = arith.constant 0 : i32
    %c0_i32_1 = arith.constant 0 : i32
    return %c0_i32, %c0_i32_0 : i32, i32
  }
  func.func @transform_9(%arg0: i32) -> (i32, i32) {
    %c0_i32 = arith.constant 0 : i32
    %c0_i32_0 = arith.constant 0 : i32
    %c0_i32_1 = arith.constant 0 : i32
    return %c0_i32, %c0_i32_0 : i32, i32
  }
  func.func @transform_10(%arg0: i32) -> (i32, i32) {
    %c0_i32 = arith.constant 0 : i32
    %c0_i32_0 = arith.constant 0 : i32
    %c0_i32_1 = arith.constant 0 : i32
    return %c0_i32, %c0_i32_0 : i32, i32
  }
  func.func @transform_11(%arg0: i32) -> (i32, i32) {
    %c0_i32 = arith.constant 0 : i32
    %c0_i32_0 = arith.constant 0 : i32
    %c0_i32_1 = arith.constant 0 : i32
    return %c0_i32, %c0_i32_0 : i32, i32
  }
  func.func @transform_12(%arg0: i32) -> (i32, i32) {
    %c0_i32 = arith.constant 0 : i32
    %c0_i32_0 = arith.constant 0 : i32
    %c0_i32_1 = arith.constant 0 : i32
    return %c0_i32, %c0_i32_0 : i32, i32
  }
  func.func @transform_13(%arg0: i32) -> (i32, i32) {
    %c0_i32 = arith.constant 0 : i32
    %c0_i32_0 = arith.constant 0 : i32
    %c0_i32_1 = arith.constant 0 : i32
    return %c0_i32, %c0_i32_0 : i32, i32
  }
  func.func @transform_14(%arg0: i32) -> (i32, i32) {
    %c0_i32 = arith.constant 0 : i32
    %c0_i32_0 = arith.constant 0 : i32
    %c0_i32_1 = arith.constant 0 : i32
    return %c0_i32, %c0_i32_0 : i32, i32
  }
  func.func @transform_15(%arg0: i32) -> (i32, i32) {
    %c0_i32 = arith.constant 0 : i32
    %c0_i32_0 = arith.constant 0 : i32
    %c0_i32_1 = arith.constant 0 : i32
    return %c0_i32, %c0_i32_0 : i32, i32
  }
  func.func @transform_16(%arg0: i32) -> (i32, i32) {
    %c0_i32 = arith.constant 0 : i32
    %c0_i32_0 = arith.constant 0 : i32
    %c0_i32_1 = arith.constant 0 : i32
    return %c0_i32, %c0_i32_0 : i32, i32
  }
  func.func @transform_17(%arg0: i32) -> (i32, i32) {
    %c0_i32 = arith.constant 0 : i32
    %c0_i32_0 = arith.constant 0 : i32
    %c0_i32_1 = arith.constant 0 : i32
    return %c0_i32, %c0_i32_0 : i32, i32
  }
  func.func @transform_18(%arg0: i32) -> (i32, i32) {
    %c0_i32 = arith.constant 0 : i32
    %c0_i32_0 = arith.constant 0 : i32
    %c0_i32_1 = arith.constant 0 : i32
    return %c0_i32, %c0_i32_0 : i32, i32
  }
  func.func @transform_19(%arg0: i32) -> (i32, i32) {
    %c0_i32 = arith.constant 0 : i32
    %c0_i32_0 = arith.constant 0 : i32
    %c0_i32_1 = arith.constant 0 : i32
    return %c0_i32, %c0_i32_0 : i32, i32
  }
  func.func @transform_20(%arg0: i32) -> (i32, i32) {
    %c0_i32 = arith.constant 0 : i32
    %c0_i32_0 = arith.constant 0 : i32
    %c0_i32_1 = arith.constant 0 : i32
    return %c0_i32, %c0_i32_0 : i32, i32
  }
  func.func @transform_21(%arg0: i32) -> (i32, i32) {
    %c0_i32 = arith.constant 0 : i32
    %c0_i32_0 = arith.constant 0 : i32
    %c0_i32_1 = arith.constant 0 : i32
    return %c0_i32, %c0_i32_0 : i32, i32
  }
  func.func @transform_22(%arg0: i32) -> (i32, i32) {
    %c0_i32 = arith.constant 0 : i32
    %c0_i32_0 = arith.constant 0 : i32
    %c0_i32_1 = arith.constant 0 : i32
    return %c0_i32, %c0_i32_0 : i32, i32
  }
  func.func @transform_23(%arg0: i32) -> (i32, i32) {
    %c0_i32 = arith.constant 0 : i32
    %c0_i32_0 = arith.constant 0 : i32
    %c0_i32_1 = arith.constant 0 : i32
    return %c0_i32, %c0_i32_0 : i32, i32
  }
  func.func @transform_24(%arg0: i32) -> (i32, i32) {
    %c0_i32 = arith.constant 0 : i32
    %c0_i32_0 = arith.constant 0 : i32
    %c0_i32_1 = arith.constant 0 : i32
    return %c0_i32, %c0_i32_0 : i32, i32
  }
  func.func @transform_25(%arg0: i32) -> (i32, i32) {
    %c0_i32 = arith.constant 0 : i32
    %c0_i32_0 = arith.constant 0 : i32
    %c0_i32_1 = arith.constant 0 : i32
    return %c0_i32, %c0_i32_0 : i32, i32
  }
  func.func @transform_26(%arg0: i32) -> (i32, i32) {
    %c0_i32 = arith.constant 0 : i32
    %c0_i32_0 = arith.constant 0 : i32
    %c0_i32_1 = arith.constant 0 : i32
    return %c0_i32, %c0_i32_0 : i32, i32
  }
  func.func @transform_27(%arg0: i32) -> (i32, i32) {
    %c0_i32 = arith.constant 0 : i32
    %c0_i32_0 = arith.constant 0 : i32
    %c0_i32_1 = arith.constant 0 : i32
    return %c0_i32, %c0_i32_0 : i32, i32
  }
  func.func @transform_28(%arg0: i32) -> (i32, i32) {
    %c0_i32 = arith.constant 0 : i32
    %c0_i32_0 = arith.constant 0 : i32
    %c0_i32_1 = arith.constant 0 : i32
    return %c0_i32, %c0_i32_0 : i32, i32
  }
  func.func @transform_29(%arg0: i32) -> (i32, i32) {
    %c0_i32 = arith.constant 0 : i32
    %c0_i32_0 = arith.constant 0 : i32
    %c0_i32_1 = arith.constant 0 : i32
    return %c0_i32, %c0_i32_0 : i32, i32
  }
  func.func @transform_30(%arg0: i32) -> (i32, i32) {
    %c0_i32 = arith.constant 0 : i32
    %c0_i32_0 = arith.constant 0 : i32
    %c0_i32_1 = arith.constant 0 : i32
    return %c0_i32, %c0_i32_0 : i32, i32
  }
  func.func @transform_31(%arg0: i32) -> (i32, i32) {
    %c0_i32 = arith.constant 0 : i32
    %c0_i32_0 = arith.constant 0 : i32
    %c0_i32_1 = arith.constant 0 : i32
    return %c0_i32, %c0_i32_0 : i32, i32
  }
  func.func @transform_32(%arg0: i32) -> (i32, i32) {
    %c0_i32 = arith.constant 0 : i32
    %c0_i32_0 = arith.constant 0 : i32
    %c0_i32_1 = arith.constant 0 : i32
    return %c0_i32, %c0_i32_0 : i32, i32
  }
  func.func @transform_33(%arg0: i32) -> (i32, i32) {
    %c0_i32 = arith.constant 0 : i32
    %c0_i32_0 = arith.constant 0 : i32
    %c0_i32_1 = arith.constant 0 : i32
    return %c0_i32, %c0_i32_0 : i32, i32
  }
  func.func @transform_34(%arg0: i32) -> (i32, i32) {
    %c0_i32 = arith.constant 0 : i32
    %c0_i32_0 = arith.constant 0 : i32
    %c0_i32_1 = arith.constant 0 : i32
    return %c0_i32, %c0_i32_0 : i32, i32
  }
  func.func @transform_35(%arg0: i32) -> (i32, i32) {
    %c0_i32 = arith.constant 0 : i32
    %c0_i32_0 = arith.constant 0 : i32
    %c0_i32_1 = arith.constant 0 : i32
    return %c0_i32, %c0_i32_0 : i32, i32
  }
  func.func @transform_36(%arg0: i32) -> (i32, i32) {
    %c0_i32 = arith.constant 0 : i32
    %c0_i32_0 = arith.constant 0 : i32
    %c0_i32_1 = arith.constant 0 : i32
    return %c0_i32, %c0_i32_0 : i32, i32
  }
  func.func @transform_37(%arg0: i32) -> (i32, i32) {
    %c0_i32 = arith.constant 0 : i32
    %c0_i32_0 = arith.constant 0 : i32
    %c0_i32_1 = arith.constant 0 : i32
    return %c0_i32, %c0_i32_0 : i32, i32
  }
  func.func @transform_38(%arg0: i32) -> (i32, i32) {
    %c0_i32 = arith.constant 0 : i32
    %c0_i32_0 = arith.constant 0 : i32
    %c0_i32_1 = arith.constant 0 : i32
    return %c0_i32, %c0_i32_0 : i32, i32
  }
  func.func @transform_39(%arg0: i32) -> (i32, i32) {
    %c0_i32 = arith.constant 0 : i32
    %c0_i32_0 = arith.constant 0 : i32
    %c0_i32_1 = arith.constant 0 : i32
    return %c0_i32, %c0_i32_0 : i32, i32
  }
  func.func @transform_40(%arg0: i32) -> (i32, i32) {
    %c0_i32 = arith.constant 0 : i32
    %c0_i32_0 = arith.constant 0 : i32
    %c0_i32_1 = arith.constant 0 : i32
    return %c0_i32, %c0_i32_0 : i32, i32
  }
  func.func @transform_41(%arg0: i32) -> (i32, i32) {
    %c0_i32 = arith.constant 0 : i32
    %c0_i32_0 = arith.constant 0 : i32
    %c0_i32_1 = arith.constant 0 : i32
    return %c0_i32, %c0_i32_0 : i32, i32
  }
  func.func @transform_42(%arg0: i32) -> (i32, i32, i32) {
    %c0_i32 = arith.constant 0 : i32
    %c0_i32_0 = arith.constant 0 : i32
    %c0_i32_1 = arith.constant 0 : i32
    return %arg0, %c0_i32, %c0_i32_0 : i32, i32, i32
  }
  func.func @transform_43(%arg0: i32) -> (i32, i32, i32) {
    %c0_i32 = arith.constant 0 : i32
    %c0_i32_0 = arith.constant 0 : i32
    %c0_i32_1 = arith.constant 0 : i32
    return %arg0, %c0_i32, %c0_i32_0 : i32, i32, i32
  }
}

</mosaic_0001>

<bundles_post_ra>
// kernel: tpu_custom_call.1
= control target key start
LH: loop header
LB: loop body
LE: loop exit
PB: predicated region body
PF: predicated region fallthrough
CT: control target
= control target key end

     0   :  { %s6903_s6 = smov 1   ;;  %s6904_s10 = smov 2   ;;  %s8539_s0 = inlined_call_operand.smem [shape: u32[44], index: -1, kind: input, shape index: {}] }
   0x1   :  { %s6972_s5 = sld [smem:[%s8539_s0]]   ;;  %s6905_s14 = smov 3  }
   0x2   :  { %s6977_s9 = sld [smem:[%s8539_s0 + %s6903_s6]]   ;;  %s6906_s18 = smov 4  }
   0x3   :  { %s6982_s13 = sld [smem:[%s8539_s0 + %s6904_s10]]   ;;  %s6907_s22 = smov 5  }
   0x4   :  { %s6987_s17 = sld [smem:[%s8539_s0 + %s6905_s14]]   ;;  %s6908_s26 = smov 6  }
   0x5   :  { %s6992_s21 = sld [smem:[%s8539_s0 + %s6906_s18]]   ;;  %s6909_s30 = smov 7  }
   0x6   :  { %s6997_s25 = sld [smem:[%s8539_s0 + %s6907_s22]]   ;;  %s6910_s4 = smov 8  }
   0x7   :  { %8573 = sst [smem:[#allocation5_spill]] %s6972_s5  ;;  %s6911_s10 = smov 9  }
   0x8   :  { %8574 = sst [smem:[#allocation6_spill]] %s6977_s9  ;;  %s6912_s15 = smov 10  }
   0x9   :  { %8575 = sst [smem:[#allocation7_spill]] %s6982_s13  ;;  %s6913_s20 = smov 11  }
   0xa   :  { %s7002_s29 = sld [smem:[%s8539_s0 + %s6908_s26]]   ;;  %s6914_s26 = smov 12  }
   0xb   :  { %8576 = sst [smem:[#allocation8_spill]] %s6992_s21  ;;  %s6915_s1 = smov 13  }
   0xc   :  { %8577 = sst [smem:[#allocation9_spill]] %s6997_s25  ;;  %s6916_s7 = smov 14  }
   0xd   :  { %s7007_s3 = sld [smem:[%s8539_s0 + %s6909_s30]]   ;;  %s6918_s22 = smov 16  }
   0xe   :  { %s7012_s8 = sld [smem:[%s8539_s0 + %s6910_s4]]   ;;  %s6919_s28 = smov 17  }
   0xf   :  { %s7017_s14 = sld [smem:[%s8539_s0 + %s6911_s10]]  }
  0x10   :  { %s7022_s19 = sld [smem:[%s8539_s0 + %s6912_s15]]   ;;  %s6917_s15 = smov 15  }
  0x11   :  { %s7027_s24 = sld [smem:[%s8539_s0 + %s6913_s20]]  }
  0x12   :  { %s7032_s30 = sld [smem:[%s8539_s0 + %s6914_s26]]  }
  0x13   :  { %8578 = sst [smem:[#allocation10_spill]] %s7007_s3 }
  0x14   :  { %8579 = sst [smem:[#allocation11_spill]] %s7012_s8 }
  0x15   :  { %s7037_s6 = sld [smem:[%s8539_s0 + %s6915_s1]]  }
  0x16   :  { %s7042_s12 = sld [smem:[%s8539_s0 + %s6916_s7]]   ;;  %s6920_s7 = smov 18  }
  0x17   :  { %8580 = sst [smem:[#allocation12_spill]] %s7027_s24 }
  0x18   :  { %8581 = sst [smem:[#allocation13_spill]] %s7032_s30 }
  0x19   :  { %s7047_s20 = sld [smem:[%s8539_s0 + %s6917_s15]]   ;;  %s6921_s15 = smov 19  }
  0x1a   :  { %s7052_s27 = sld [smem:[%s8539_s0 + %s6918_s22]]   ;;  %s6922_s22 = smov 20  }
  0x1b   :  { %8582 = sst [smem:[#allocation14_spill]] %s7037_s6 }
  0x1c   :  { %8583 = sst [smem:[#allocation15_spill]] %s7042_s12 }
  0x1d   :  { %s7057_s4 = sld [smem:[%s8539_s0 + %s6919_s28]]   ;;  %s6923_s28 = smov 21  }
  0x1e   :  { %s7062_s12 = sld [smem:[%s8539_s0 + %s6920_s7]]   ;;  %s6924_s7 = smov 22  }
  0x1f   :  { %8584 = sst [smem:[#allocation16_spill]] %s7047_s20 }
  0x20   :  { %s7067_s20 = sld [smem:[%s8539_s0 + %s6921_s15]]   ;;  %s6925_s15 = smov 23  }
  0x21   :  { %s7072_s6 = sld [smem:[%s8539_s0 + %s6922_s22]]   ;;  %s6926_s22 = smov 24  }
  0x22   :  { %s7077_s30 = sld [smem:[%s8539_s0 + %s6923_s28]]   ;;  %s6927_s28 = smov 25  }
  0x23   :  { %8585 = sst [smem:[#allocation17_spill]] %s7057_s4 }
  0x24   :  { %8586 = sst [smem:[#allocation18_spill]] %s7062_s12 }
  0x25   :  { %s7082_s12 = sld [smem:[%s8539_s0 + %s6924_s7]]   ;;  %s6928_s7 = smov 26  }
  0x26   :  { %8587 = sst [smem:[#allocation19_spill]] %s7067_s20 }
  0x27   :  { %8588 = sst [smem:[#allocation20_spill]] %s7072_s6 }
  0x28   :  { %8589 = sst [smem:[#allocation21_spill]] %s7077_s30 }
  0x29   :  { %s7087_s20 = sld [smem:[%s8539_s0 + %s6925_s15]]   ;;  %s6929_s15 = smov 27  }
  0x2a   :  { %s7092_s6 = sld [smem:[%s8539_s0 + %s6926_s22]]   ;;  %s6930_s22 = smov 28  }
  0x2b   :  { %8590 = sst [smem:[#allocation22_spill]] %s7082_s12 }
  0x2c   :  { %s7097_s30 = sld [smem:[%s8539_s0 + %s6927_s28]]   ;;  %s6931_s28 = smov 29  }
  0x2d   :  { %s7102_s12 = sld [smem:[%s8539_s0 + %s6928_s7]]   ;;  %s6932_s7 = smov 30  }
  0x2f   :  { %8591 = sst [smem:[#allocation23_spill]] %s7087_s20 }
  0x30   :  { %8592 = sst [smem:[#allocation24_spill]] %s7092_s6 }
  0x31   :  { %s7107_s20 = sld [smem:[%s8539_s0 + %s6929_s15]]   ;;  %s6933_s15 = smov 31  }
  0x32   :  { %8593 = sst [smem:[#allocation25_spill]] %s7097_s30 }
  0x33   :  { %8594 = sst [smem:[#allocation26_spill]] %s7102_s12 }
  0x34   :  { %s7112_s6 = sld [smem:[%s8539_s0 + %s6930_s22]]   ;;  %s6934_s22 = smov 32  }
  0x35   :  { %s7117_s30 = sld [smem:[%s8539_s0 + %s6931_s28]]   ;;  %s6935_s28 = smov 33  }
  0x36   :  { %s7122_s12 = sld [smem:[%s8539_s0 + %s6932_s7]]   ;;  %s6936_s7 = smov 34  }
  0x37   :  { %8595 = sst [smem:[#allocation27_spill]] %s7107_s20 }
  0x38   :  { %s7127_s20 = sld [smem:[%s8539_s0 + %s6933_s15]]   ;;  %s6937_s15 = smov 35  }
  0x3a   :  { %8596 = sst [smem:[#allocation28_spill]] %s7112_s6 }
  0x3b   :  { %8597 = sst [smem:[#allocation29_spill]] %s7117_s30 }
  0x3c   :  { %8598 = sst [smem:[#allocation30_spill]] %s7122_s12 }
  0x3d   :  { %s7132_s6 = sld [smem:[%s8539_s0 + %s6934_s22]]   ;;  %s6938_s22 = smov 36  }
  0x3e   :  { %8599 = sst [smem:[#allocation31_spill]] %s7127_s20 }
  0x3f   :  { %s7137_s30 = sld [smem:[%s8539_s0 + %s6935_s28]]   ;;  %s6939_s28 = smov 37  }
  0x40   :  { %s7142_s12 = sld [smem:[%s8539_s0 + %s6936_s7]]   ;;  %s6940_s7 = smov 38  }
  0x41   :  { %s7147_s20 = sld [smem:[%s8539_s0 + %s6937_s15]]   ;;  %s6941_s15 = smov 39  }
  0x42   :  { %s7152_s24 = sld [smem:[%s8539_s0 + %s6938_s22]]   ;;  %s6942_s22 = smov 40  }
  0x43   :  { %8600 = sst [smem:[#allocation32_spill]] %s7132_s6 }
  0x45   :  { %8601 = sst [smem:[#allocation33_spill]] %s7137_s30 }
  0x46   :  { %8602 = sst [smem:[#allocation34_spill]] %s7142_s12 }
  0x47   :  { %8603 = sst [smem:[#allocation35_spill]] %s7147_s20 }
  0x48   :  { %8604 = sst [smem:[#allocation36_spill]] %s7152_s24 }
  0x49   :  { %s7157_s30 = sld [smem:[%s8539_s0 + %s6939_s28]]   ;;  %s6943_s28 = smov 41  }
  0x4a   :  { %s7162_s12 = sld [smem:[%s8539_s0 + %s6940_s7]]   ;;  %s6944_s7 = smov 42  }
  0x4b   :  { %s7167_s20 = sld [smem:[%s8539_s0 + %s6941_s15]]   ;;  %s6945_s15 = smov 43  }
  0x4c   :  { %s7172_s24 = sld [smem:[%s8539_s0 + %s6942_s22]]  }
  0x4f   :  { %8605 = sst [smem:[#allocation37_spill]] %s7157_s30 }
  0x50   :  { %8606 = sst [smem:[#allocation38_spill]] %s7162_s12 }
  0x51   :  { %8607 = sst [smem:[#allocation39_spill]] %s7167_s20 }
  0x52   :  { %s7177_s30 = sld [smem:[%s8539_s0 + %s6943_s28]]  }
  0x53   :  { %s7182_s12 = sld [smem:[%s8539_s0 + %s6944_s7]]  }
  0x54   :  { %s7187_s20 = sld [smem:[%s8539_s0 + %s6945_s15]]  }
  0x55   :  { %93 = vsyncpa [#allocation3], 0 }
  0x56   :  { %95 = vsyncpa [#allocation3 + $0x1], 0  ;;  %s7189_s22 = smov 0   ;;  %s7191_s23 = smov 0  }
  0x57   :  { %s7193_s26 = smov 0   ;;  %s7195_s28 = smov 0  }
  0x58 LB: > { %s8608_s8 = sld [smem:[#allocation11_spill]]  ;;  %s8609_s6 = sld [smem:[#allocation32_spill]]  ;;  %s6897_s26 = sphi %s7193_s26, %s8659_s26   ;;  %s6893_s23 = sphi %s7191_s23, %s8658_s23   ;;  %s6889_s22 = sphi %s7189_s22, %s8657_s22   ;;  %s6901_s28 = sphi %s7195_s28, %s8660_s28  }
  0x59   : > { %s8610_s21 = sld [smem:[#allocation8_spill]]  ;;  %s7210_s0 = sadd.s32 4294967295, %s6901_s28  }
  0x5a   : > { %8611 = sst [smem:[#allocation40_spill]] %s6897_s26  ;;  %s5654_s1 = sadd.s32 4294967294, %s6901_s28  }
  0x5b   : > { %s7214_s2 = sadd.s32 1, %s6901_s28   ;;  %s1010_s7 = sadd.s32 1, %s6897_s26 }
  0x5c   : > { %s1007_s10 = ssub.s32 %s6901_s28, %s7214_s2  ;;  %p1020_p0 = scmp.ne.s32.totalorder %s6897_s26, %s6893_s23 }
  0x5d   : > { %p1008_p1 = scmp.eq.s32.totalorder %s1007_s10, 0  ;;  %p1021_p2 = scmp.eq.s32.totalorder %s7210_s0, 1 }
  0x5e   : > { %p1026_p3 = scmp.ne.s32.totalorder %s6893_s23, %s6889_s22  ;;  %p1027_p4 = scmp.eq.s32.totalorder %s5654_s1, 1 }
  0x5f   : > { %s7225_s11 = scalar_select %p1008_p1, %s6897_s26, %s1010_s7  }
  0x60   : > { %p7227_p5 = por %p1021_p2, %p1020_p0  ;;  %p7231_p6 = por %p1027_p4, %p1026_p3 }
  0x61   : > { %8612 = sst [smem:[#allocation41_spill]] %s7225_s11  ;;  %p5657_p7 = scmp.ge.s32.totalorder %s6901_s28, 1 }
  0x62   : > { %p1215_p8 = scmp.lt.s32.totalorder %s6901_s28, 3 }
  0x64   : > { %p1216_p9 = pnand %p5657_p7, %p1215_p8 }
  0x65   : > { %s8615_s5 = sld [smem:[#allocation5_spill]] (!%p1216_p9)  ;;  %v6592_v0 = vld [vmem:[%s8610_s21] sm:$0xff] (!%p1216_p9)   ;;  %s8616_s13 = sld [smem:[#allocation7_spill]] (!%p1216_p9)  ;;  %v6946_v1 = vmov (!%p1216_p9), 0.0   ;;  %v6593_v2 = vld [vmem:[%s8610_s21 + $0x8] sm:$0xff] (!%p1216_p9)   ;;  %vm6947_vm0 = vmmov (!%p1216_p9), 0  }
  0x66   : > { %1219 = sbr.rel (%p1216_p9) target bundleno = 8217 (0x2019), region = 188  ;;  %5999 = vmatprep.subr.bf16.mxu0 (!%p1216_p9), %v6946_v1  ;;  %6007 = vmatprep.subr.bf16.mxu1 (!%p1216_p9), %v6946_v1  ;;  %p1337_p10 = scmp.lt.s32.totalorder (!%p1216_p9), %s7210_s0, 1  ;;  %vm1412_vm1 = vcmask (!%p1216_p9), 261120   ;;  %vm1513_vm2 = vcmask (!%p1216_p9), 64512   ;;  %vm1576_vm3 = vcmask (!%p1216_p9), 1043456   ;;  %vm1964_vm4 = vcmask (!%p1216_p9), 130048  }
  0x67   : > { %6000 = vmatpush3.bf16.msra.mxu0 (!%p1216_p9), %v6592_v0  ;;  %6003 = vmatprep.mubr.msk.bf16.mxu0 (!%p1216_p9), %vm6947_vm0, %v6946_v1  ;;  %s8617_s25 = sld [smem:[#allocation9_spill]] (!%p1216_p9)  ;;  %s6952_s21 = smov (!%p1216_p9), 72   ;;  %vm1966_vm5 = vcmask (!%p1216_p9), 195584   ;;  %vm2322_vm6 = vcmask (!%p1216_p9), 31744   ;;  %vm2378_vm7 = vcmask (!%p1216_p9), 523264   ;;  %vm2857_vm8 = vcmask (!%p1216_p9), 97280  }
  0x68   : > { %6001 = vmatprep.subr.bf16.mxu0 (!%p1216_p9), %v6946_v1  ;;  %6011 = vmatprep.mubr.msk.bf16.mxu1 (!%p1216_p9), %vm6947_vm0, %v6946_v1  ;;  %s6954_s11 = smov (!%p1216_p9), 104   ;;  %s6955_s26 = smov (!%p1216_p9), 64  }
  0x69   : > { %s8618_s3 = sld [smem:[#allocation10_spill]] (!%p1216_p9)  ;;  %s8619_s9 = sld [smem:[#allocation6_spill]] (!%p1216_p9) }
  0x6a   : > { %s8620_s4 = sld [smem:[#allocation17_spill]] (!%p1216_p9) }
  0x6b   : > { %6002 = vmatpush3.bf16.msra.mxu0 (!%p1216_p9), %v6593_v2 }
  0x6c   : > { %6015 = vmatprep.subr.bf16.mxu0 (!%p1216_p9), %v6946_v1 }
  0x6d   : > { %s7248_s18 = scalar_select %p1337_p10, %s7210_s0, 1  ;;  %v7267_v7 = vld [vmem:[%s8617_s25] ss:$0 sm:$0xff] }
  0x6e   : > { %s8564_s25 = smov 112  }
  0x6f   : > { %s5659_s1 = sshll.u32 %s7248_s18, 3 }
  0x70   : > { %s1340_s7 = scalar_lea.vmem %s8615_s5, %s5659_s1  ;;  %s7254_s10 = scalar_lea.vmem %s8616_s13, %s5659_s1 }
  0x71   : > { %v7256_v3 = vld [vmem:[%s1340_s7] sm:$0xff]  ;;  %s8560_s1 = smov 120   ;;  %s8554_s7 = smov 96  }
  0x72   : > { %v7259_v4 = vld [vmem:[%s7254_s10] sm:$0xff]  ;;  %s6950_s5 = smov 80   ;;  %s6951_s13 = smov 88   ;;  %v1456_v26 = vpack.c.bf16 %v7256_v3, %v7256_v3 }
  0x73   : > { %v1387_v5 = vadd.f32 %v7259_v4, %v7256_v3 }
  0x75   : > { %v1393_v6 = vpack.c.bf16 %v1387_v5, %v1387_v5 }
  0x77   : > { %6004 = vmatmul.mubr.msk.bf16.vlgmr.msra.gmra.mrb[0].mxu0 %vm1412_vm1, %v1393_v6 }
  0x78   : > { %6017 = vmatprep.mubr.msk.bf16.mxu0 %vm6947_vm0, %v6946_v1 }
 0x14a   : > { %v1450_v8 = vpop.f32.mrb[0].mxu0 }
 0x14b   : > { %v1451_v9 = vadd.f32 %v7267_v7, %v1450_v8  ;;  %v6005_v10 = vpop.f32.mrb[1].mxu0 }
 0x14c   : > { %v1453_v11 = vpop.f32.mrb[2].mxu0 }
 0x14d   : > { %v1509_v12 = vpack.c.bf16 %v1451_v9, %v1451_v9  ;;  %v6006_v13 = vpop.f32.mrb[3].mxu0 }
 0x14f   : > { %1620 = vrot.lane.b32.xlu1 %v1509_v12, %s8560_s1  ;;  %1511 = vrot.lane.b32.xlu0 %v1509_v12, %s8554_s7 }
 0x153   : > { %1733 = vrot.lane.b32.xlu1 %v1509_v12, %s6950_s5  ;;  %1622 = vrot.lane.b32.xlu0 %v1509_v12, %s6951_s13  ;;  %s8550_s5 = smov 8   ;;  %s6957_s13 = smov 16  }
 0x157   : > { %1843 = vrot.lane.b32.xlu1 %v1509_v12, %s6952_s21  ;;  %1731 = vrot.lane.b32.xlu0 %v1509_v12, %s8564_s25  ;;  %s6958_s21 = smov 24  }
 0x15b   : > { %1841 = vrot.lane.b32.xlu0 %v1509_v12, %s6954_s11  ;;  %1457 = vrot.lane.b32.xlu1 %v6592_v0, %s6955_s26 }
 0x15f   : > { %1459 = vrot.lane.b32.xlu0 %v6593_v2, %s6955_s26 }
 0x1c1   : > { %v1512_v14 = vpop.permute.xlu0 %1511  ;;  %v1621_v16 = vpop.permute.xlu1 %1620 }
 0x1c2   : > { %v1518_v15 = vsel %vm1513_vm2, %v1512_v14, 0 }
 0x1c3   : > { %6016 = vmatpush3.bf16.xpose.msra.mxu0 %v1518_v15 }
 0x1c4   : > { %6027 = vmatprep.subr.bf16.mxu0 %v6946_v1 }
 0x1c5   : > { %v1623_v17 = vpop.permute.xlu0 %1622  ;;  %v1734_v19 = vpop.permute.xlu1 %1733 }
 0x1c6   : > { %v1628_v18 = vsel %vm1513_vm2, %v1623_v17, 0  ;;  %v1739_v22 = vsel %vm1513_vm2, %v1734_v19, 0 }
 0x1c9   : > { %v1732_v20 = vpop.permute.xlu0 %1731  ;;  %v1844_v21 = vpop.permute.xlu1 %1843 }
 0x1ca   : > { %6018 = vmatmul.mubr.msk.bf16.vlgmr.msra.gmra.mrb[4].mxu0 %vm1513_vm2, %v1509_v12  ;;  %v1849_v27 = vsel %vm1513_vm2, %v1844_v21, 0 }
 0x1cb   : > { %6028 = vmatpush3.bf16.xpose.msra.mxu0 %v1628_v18  ;;  %6029 = vmatprep.mubr.msk.bf16.mxu0 %vm6947_vm0, %v6946_v1 }
 0x1cc   : > { %6039 = vmatprep.subr.bf16.mxu0 %v6946_v1 }
 0x1cd   : > { %v1842_v23 = vpop.permute.xlu0 %1841  ;;  %v1458_v24 = vpop.permute.xlu1 %1457 }
 0x1ce   : > { %6008 = vmatpush3.bf16.msra.mxu1 %v1458_v24 }
 0x1cf   : > { %6009 = vmatprep.subr.bf16.mxu1 %v6946_v1 }
 0x1d1   : > { %v1460_v25 = vpop.permute.xlu0 %1459 }
 0x1d2   : > { %6030 = vmatmul.mubr.msk.bf16.vlgmr.msra.gmra.mrb[8].mxu0 %vm1513_vm2, %v1621_v16  ;;  %6010 = vmatpush3.bf16.msra.mxu1 %v1460_v25 }
 0x1d3   : > { %6040 = vmatpush3.bf16.xpose.msra.mxu0 %v1739_v22  ;;  %6041 = vmatprep.mubr.msk.bf16.mxu0 %vm6947_vm0, %v6946_v1 }
 0x1d4   : > { %6051 = vmatprep.subr.bf16.mxu0 %v6946_v1  ;;  %6021 = vmatprep.subr.bf16.mxu1 %v6946_v1 }
 0x1d5   : > { %6012 = vmatmul.mubr.msk.bf16.vlgmr.msra.gmra.mrb[0].mxu1 %vm1412_vm1, %v1456_v26 }
 0x1d6   : > { %6023 = vmatprep.mubr.msk.bf16.mxu1 %vm6947_vm0, %v6946_v1 }
 0x1da   : > { %6042 = vmatmul.mubr.msk.bf16.vlgmr.msra.gmra.mrb[12].mxu0 %vm1513_vm2, %v1732_v20 }
 0x1db   : > { %6052 = vmatpush3.bf16.xpose.msra.mxu0 %v1849_v27  ;;  %6053 = vmatprep.mubr.msk.bf16.mxu0 %vm6947_vm0, %v6946_v1 }
 0x1dc   : > { %6063 = vmatprep.subr.bf16.mxu0 %v6946_v1 }
 0x1e2   : > { %6054 = vmatmul.mubr.msk.bf16.vlgmr.msra.gmra.mrb[16].mxu0 %vm1513_vm2, %v1842_v23 }
 0x1e3   : > { %6067 = vmatprep.mubr.msk.bf16.mxu0 %vm6947_vm0, %v6946_v1 }
 0x29d   : > { %v1554_v28 = vpop.f32.mrb[4].mxu0 }
 0x29e   : > { %v6019_v29 = vpop.f32.mrb[5].mxu0  ;;  %v1560_v30 = vsel %vm1513_vm2, %v1554_v28, -inf }
 0x29f   : > { %1561 = vmax.xlane.f32.xlu1 %v1560_v30  ;;  %v1557_v31 = vpop.f32.mrb[6].mxu0 }
 0x2a0   : > { %v6020_v32 = vpop.f32.mrb[7].mxu0 }
 0x2a5   : > { %v1664_v33 = vpop.f32.mrb[8].mxu0 }
 0x2a6   : > { %v6031_v34 = vpop.f32.mrb[9].mxu0  ;;  %v1670_v35 = vsel %vm1513_vm2, %v1664_v33, -inf }
 0x2a7   : > { %1671 = vmax.xlane.f32.xlu0 %v1670_v35  ;;  %v1667_v36 = vpop.f32.mrb[10].mxu0 }
 0x2a8   : > { %v6032_v37 = vpop.f32.mrb[11].mxu0  ;;  %v1503_v48 = vpop.f32.mrb[0].mxu1 }
 0x2a9   : > { %v6013_v49 = vpop.f32.mrb[1].mxu1 }
 0x2aa   : > { %v1506_v50 = vpop.f32.mrb[2].mxu1 }
 0x2ab   : > { %v6014_v51 = vpop.f32.mrb[3].mxu1 }
 0x2ad   : > { %v1775_v38 = vpop.f32.mrb[12].mxu0 }
 0x2ae   : > { %v6043_v39 = vpop.f32.mrb[13].mxu0  ;;  %v1781_v40 = vsel %vm1513_vm2, %v1775_v38, -inf }
 0x2af   : > { %1782 = vmax.xlane.f32.xlu0 %v1781_v40  ;;  %v1778_v41 = vpop.f32.mrb[14].mxu0 }
 0x2b0   : > { %v6044_v42 = vpop.f32.mrb[15].mxu0  ;;  %v6594_v41 = vld [vmem:[%s7002_s29] sm:$0xff]  }
 0x2b1   : > { %6064 = vmatpush3.bf16.msra.mxu0 %v6594_v41 }
 0x2b2   : > { %6065 = vmatprep.subr.bf16.mxu0 %v6946_v1 }
 0x2b5   : > { %v1885_v43 = vpop.f32.mrb[16].mxu0 }
 0x2b6   : > { %v6055_v44 = vpop.f32.mrb[17].mxu0  ;;  %v1891_v45 = vsel %vm1513_vm2, %v1885_v43, -inf }
 0x2b7   : > { %1892 = vmax.xlane.f32.xlu1 %v1891_v45  ;;  %v1888_v46 = vpop.f32.mrb[18].mxu0 }
 0x2b8   : > { %v6056_v47 = vpop.f32.mrb[19].mxu0  ;;  %v6595_v46 = vld [vmem:[%s7002_s29 + $0x8] sm:$0xff]  }
 0x2b9   : > { %6066 = vmatpush3.bf16.msra.mxu0 %v6595_v46 }
 0x2c5   : > { %1463 = vrot.lane.b32.xlu0 %v7267_v7, %s6955_s26  ;;  %s7356_s26 = sshll.u32 %s7248_s18, 6  ;;  %s8562_s18 = smov 124  }
 0x32c   : > { %v1562_v52 = vpop.xlane.xlu1 %1561 }
 0x32d   : > { %v1563_v53 = vsub.f32 %v1554_v28, %v1562_v52 }
 0x32f   : > { %v1564_v54 = vmul.f32 1.442695, %v1563_v53 }
 0x331   : > { %6628 = vpow2.f32 %v1564_v54 }
 0x334   : > { %v1672_v55 = vpop.xlane.xlu0 %1671 }
 0x335   : > { %v1673_v56 = vsub.f32 %v1664_v33, %v1672_v55 }
 0x337   : > { %v1674_v57 = vmul.f32 1.442695, %v1673_v56 }
 0x339   : > { %6630 = vpow2.f32 %v1674_v57 }
 0x33b   : > { %v6629_v58 = vpop.eup %6628 }
 0x33c   : > { %v1783_v59 = vpop.xlane.xlu0 %1782  ;;  %v1566_v60 = vsel %vm1513_vm2, %v6629_v58, 0.0 }
 0x33d   : > { %v1784_v61 = vsub.f32 %v1775_v38, %v1783_v59  ;;  %1567 = vadd.xlane.f32.xlu1 %v1566_v60 }
 0x33f   : > { %v1785_v62 = vmul.f32 1.442695, %v1784_v61 }
 0x340   : > { %v1464_v63 = vpop.permute.xlu0 %1463 }
 0x341   : > { %6632 = vpow2.f32 %v1785_v62  ;;  %v1504_v0 = vadd.f32 %v1503_v48, %v1464_v63  ;;  %v6596_v62 = vld [vmem:[%s8608_s8] sm:$0xff]   ;;  %v6597_v63 = vld [vmem:[%s8608_s8 + $0x8] sm:$0xff]  }
 0x343   : > { %v6631_v2 = vpop.eup %6630  ;;  %v1572_v5 = vpack.c.bf16 %v1504_v0, %v1504_v0  ;;  %v5680_v0 = vld [vmem:[%s8618_s3] ss:$0 sm:$0xff]  ;;  %s8632_s3 = sld [smem:[#allocation30_spill]] }
 0x344   : > { %v1893_v6 = vpop.xlane.xlu1 %1892  ;;  %v1676_v7 = vsel %vm1513_vm2, %v6631_v2, 0.0 }
 0x345   : > { %v1894_v8 = vsub.f32 %v1885_v43, %v1893_v6  ;;  %1677 = vadd.xlane.f32.xlu1 %v1676_v7  ;;  %1793 = vrot.lane.b32.xlu0 %v1572_v5, %s8564_s25  ;;  %v1578_v9 = vsel %vm1576_vm3, %v1572_v5, 0 }
 0x346   : > { %6022 = vmatpush3.bf16.msra.mxu1 %v1578_v9 }
 0x347   : > { %v1895_v10 = vmul.f32 1.442695, %v1894_v8  ;;  %6033 = vmatprep.subr.bf16.mxu1 %v6946_v1 }
 0x349   : > { %6634 = vpow2.f32 %v1895_v10  ;;  %1903 = vrot.lane.b32.xlu0 %v1572_v5, %s6954_s11  ;;  %s7360_s11 = scalar_lea.vmem %s8619_s9, %s7356_s26 }
 0x34b   : > { %v6633_v11 = vpop.eup %6632 }
 0x34c   : > { %v1787_v12 = vsel %vm1513_vm2, %v6633_v11, 0.0 }
 0x34d   : > { %1788 = vadd.xlane.f32.xlu1 %v1787_v12 }
 0x353   : > { %v6635_v13 = vpop.eup %6634 }
 0x354   : > { %v1897_v14 = vsel %vm1513_vm2, %v6635_v13, 0.0 }
 0x355   : > { %1898 = vadd.xlane.f32.xlu1 %v1897_v14 }
 0x366   : > { %1683 = vrot.lane.b32.xlu1 %v1572_v5, %s8560_s1 }
 0x3b7   : > { %v1794_v28 = vpop.permute.xlu0 %1793 }
 0x3b8   : > { %v1799_v29 = vsel %vm1576_vm3, %v1794_v28, 0 }
 0x3bb   : > { %v1904_v31 = vpop.permute.xlu0 %1903 }
 0x3bc   : > { %v1909_v34 = vsel %vm1576_vm3, %v1904_v31, 0 }
 0x3ca   : > { %v1568_v15 = vpop.xlane.xlu1 %1567 }
 0x3cb   : > { %6636 = vrcp.f32 %v1568_v15 }
 0x3d2   : > { %v1678_v17 = vpop.xlane.xlu1 %1677 }
 0x3d3   : > { %6638 = vrcp.f32 %v1678_v17 }
 0x3d5   : > { %v6637_v16 = vpop.eup %6636 }
 0x3d6   : > { %v1570_v18 = vmul.f32 %v6637_v16, %v6629_v58 }
 0x3d8   : > { %v1571_v19 = vpack.c.bf16 %v1570_v18, %v1570_v18 }
 0x3da   : > { %6024 = vmatmul.mubr.msk.bf16.vlgmr.msra.gmra.mrb[4].mxu1 %vm1513_vm2, %v1571_v19  ;;  %v1789_v20 = vpop.xlane.xlu1 %1788  ;;  %v7384_v19 = vld [vmem:[%s7017_s14] ss:$0 sm:$0xff] }
 0x3db   : > { %6035 = vmatprep.mubr.msk.bf16.mxu1 %vm6947_vm0, %v6946_v1  ;;  %6640 = vrcp.f32 %v1789_v20 }
 0x3dd   : > { %v6639_v21 = vpop.eup %6638 }
 0x3de   : > { %v1680_v23 = vmul.f32 %v6639_v21, %v6631_v2 }
 0x3e0   : > { %v1681_v26 = vpack.c.bf16 %v1680_v23, %v1680_v23  ;;  %v7393_v23 = vld [vmem:[%s7360_s11 + $0x18] sm:$0xff] }
 0x3e2   : > { %v1899_v22 = vpop.xlane.xlu1 %1898 }
 0x3e3   : > { %6642 = vrcp.f32 %v1899_v22  ;;  %v7390_v22 = vld [vmem:[%s7360_s11 + $0x10] sm:$0xff] }
 0x3e5   : > { %v6641_v27 = vpop.eup %6640 }
 0x3e6   : > { %v1684_v24 = vpop.permute.xlu1 %1683  ;;  %v1791_v30 = vmul.f32 %v6641_v27, %v6633_v11  ;;  %v7398_v27 = vld [vmem:[%s7360_s11 + $0x20] sm:$0xff] }
 0x3e7   : > { %v1689_v25 = vsel %vm1576_vm3, %v1684_v24, 0 }
 0x3e8   : > { %6034 = vmatpush3.bf16.msra.mxu1 %v1689_v25  ;;  %v1792_v32 = vpack.c.bf16 %v1791_v30, %v1791_v30  ;;  %v7401_v30 = vld [vmem:[%s7360_s11 + $0x28] sm:$0xff] }
 0x3e9   : > { %6045 = vmatprep.subr.bf16.mxu1 %v6946_v1 }
 0x3eb   : > { %6036 = vmatmul.mubr.msk.bf16.vlgmr.msra.gmra.mrb[8].mxu1 %vm1513_vm2, %v1681_v26 }
 0x3ec   : > { %6046 = vmatpush3.bf16.msra.mxu1 %v1799_v29  ;;  %6047 = vmatprep.mubr.msk.bf16.mxu1 %vm6947_vm0, %v6946_v1 }
 0x3ed   : > { %6057 = vmatprep.subr.bf16.mxu1 %v6946_v1  ;;  %v6643_v33 = vpop.eup %6642 }
 0x3ee   : > { %v1901_v35 = vmul.f32 %v6643_v33, %v6635_v13  ;;  %v7371_v13 = vld [vmem:[%s7360_s11 + $0x8] sm:$0xff] }
 0x3f0   : > { %v1902_v36 = vpack.c.bf16 %v1901_v35, %v1901_v35 }
 0x3f3   : > { %6048 = vmatmul.mubr.msk.bf16.vlgmr.msra.gmra.mrb[12].mxu1 %vm1513_vm2, %v1792_v32 }
 0x3f4   : > { %6058 = vmatpush3.bf16.msra.mxu1 %v1909_v34  ;;  %6059 = vmatprep.mubr.msk.bf16.mxu1 %vm6947_vm0, %v6946_v1 }
 0x3f5   : > { %6071 = vmatprep.subr.bf16.mxu1 %v6946_v1 }
 0x3fb   : > { %6060 = vmatmul.mubr.msk.bf16.vlgmr.msra.gmra.mrb[16].mxu1 %vm1513_vm2, %v1902_v36 }
 0x3fc   : > { %6075 = vmatprep.mubr.msk.bf16.mxu1 %vm6947_vm0, %v6946_v1  ;;  %6072 = vmatpush3.bf16.msra.mxu1 %v6596_v62 }
 0x3fd   : > { %6073 = vmatprep.subr.bf16.mxu1 %v6946_v1 }
 0x400   : > { %6074 = vmatpush3.bf16.msra.mxu1 %v6597_v63 }
 0x4ad   : > { %v1614_v37 = vpop.f32.mrb[4].mxu1 }
 0x4ae   : > { %v6025_v38 = vpop.f32.mrb[5].mxu1 }
 0x4af   : > { %v1617_v39 = vpop.f32.mrb[6].mxu1 }
 0x4b0   : > { %v6026_v40 = vpop.f32.mrb[7].mxu1 }
 0x4be   : > { %v1725_v42 = vpop.f32.mrb[8].mxu1 }
 0x4bf   : > { %1952 = vrot.lane.b32.xlu0 %v1725_v42, %s8550_s5  ;;  %v6037_v43 = vpop.f32.mrb[9].mxu1 }
 0x4c0   : > { %v1728_v44 = vpop.f32.mrb[10].mxu1  ;;  %v7412_v43 = vld [vmem:[%s7360_s11 + $0x30] sm:$0xff] }
 0x4c1   : > { %v6038_v45 = vpop.f32.mrb[11].mxu1 }
 0x4c2   : > { %v7417_v45 = vld [vmem:[%s7360_s11 + $0x38] sm:$0xff] }
 0x4c6   : > { %v1835_v47 = vpop.f32.mrb[12].mxu1 }
 0x4c7   : > { %1956 = vrot.lane.b32.xlu0 %v1835_v47, %s6957_s13  ;;  %v6049_v48 = vpop.f32.mrb[13].mxu1  ;;  %s7364_s13 = scalar_lea.vmem %s6987_s17, %s7356_s26 }
 0x4c8   : > { %v1838_v49 = vpop.f32.mrb[14].mxu1  ;;  %v1371_v14 = vld [vmem:[%s7364_s13] sm:$0xff]  ;;  %v1372_v15 = vld [vmem:[%s7364_s13 + $0x8] sm:$0xff]  ;;  %v1373_v25 = vld [vmem:[%s7364_s13 + $0x10] sm:$0xff] }
 0x4c9   : > { %v6050_v50 = vpop.f32.mrb[15].mxu1  ;;  %v1380_v17 = vadd.f32 %v1372_v15, %v7371_v13  ;;  %v1374_v26 = vld [vmem:[%s7364_s13 + $0x18] sm:$0xff]  ;;  %v1375_v31 = vld [vmem:[%s7364_s13 + $0x20] sm:$0xff]  ;;  %v1376_v32 = vld [vmem:[%s7364_s13 + $0x28] sm:$0xff]  ;;  %v1381_v35 = vadd.f32 %v1373_v25, %v7390_v22 }
 0x4ca   : > { %v1382_v36 = vadd.f32 %v1374_v26, %v7393_v23  ;;  %v1383_v38 = vadd.f32 %v1375_v31, %v7398_v27  ;;  %v1384_v39 = vadd.f32 %v1376_v32, %v7401_v30  ;;  %v1377_v46 = vld [vmem:[%s7364_s13 + $0x30] sm:$0xff]  ;;  %v1378_v47 = vld [vmem:[%s7364_s13 + $0x38] sm:$0xff]  ;;  %s8552_s13 = smov 4  }
 0x4cb   : > { %v1385_v48 = vadd.f32 %v1377_v46, %v7412_v43  ;;  %v1386_v49 = vadd.f32 %v1378_v47, %v7417_v45 }
 0x4cc   : > { %v7409_v42 = vpack.c.bf16 %v1382_v36, %v1381_v35  ;;  %v7414_v44 = vpack.c.bf16 %v1384_v39, %v1383_v38  ;;  %v2228_v39 = vpack.c.bf16 %v7393_v23, %v7390_v22 }
 0x4cd   : > { %v7428_v50 = vpack.c.bf16 %v1386_v49, %v1385_v48 }
 0x4ce   : > { %v1945_v51 = vpop.f32.mrb[16].mxu1 }
 0x4cf   : > { %1960 = vrot.lane.b32.xlu1 %v1945_v51, %s6958_s21  ;;  %v6061_v52 = vpop.f32.mrb[17].mxu1  ;;  %s8558_s21 = smov 116  }
 0x4d0   : > { %v1948_v53 = vpop.f32.mrb[18].mxu1 }
 0x4d1   : > { %v6062_v54 = vpop.f32.mrb[19].mxu1  ;;  %v5684_v53 = vld [vmem:[%s7052_s27] ss:$0 sm:$0xff] }
 0x531   : > { %v1953_v55 = vpop.permute.xlu0 %1952 }
 0x532   : > { %v1963_v57 = vsel %vm1513_vm2, %v1614_v37, %v1953_v55  ;;  %v5685_v55 = vld [vmem:[%s8620_s4] ss:$0 sm:$0xff] }
 0x539   : > { %v1957_v56 = vpop.permute.xlu0 %1956 }
 0x53a   : > { %v1965_v58 = vsel %vm1964_vm4, %v1963_v57, %v1957_v56 }
 0x541   : > { %v1961_v59 = vpop.permute.xlu1 %1960 }
 0x542   : > { %v1967_v60 = vsel %vm1966_vm5, %v1965_v58, %v1961_v59 }
 0x543   : > { %v1972_v61 = vpack.c.bf16 %v1967_v60, %v1967_v60 }
 0x545   : > { %6068 = vmatmul.mubr.msk.bf16.vlgmr.msra.gmra.mrb[20].mxu0 %vm1412_vm1, %v1972_v61 }
 0x618   : > { %v2029_v2 = vpop.f32.mrb[20].mxu0 }
 0x619   : > { %v2030_v5 = vadd.f32 %v5680_v0, %v2029_v2  ;;  %v6069_v6 = vpop.f32.mrb[21].mxu0 }
 0x61a   : > { %v2032_v7 = vpop.f32.mrb[22].mxu0 }
 0x61b   : > { %v7348_v8 = vadd.f32 %v2030_v5, %v7256_v3  ;;  %v6070_v9 = vpop.f32.mrb[23].mxu0  ;;  %v7368_v3 = vld [vmem:[%s7360_s11] sm:$0xff] }
 0x61c   : > { %v1379_v16 = vadd.f32 %v1371_v14, %v7368_v3  ;;  %v2227_v38 = vpack.c.bf16 %v7371_v13, %v7368_v3  ;;  %v2230_v3 = vpack.c.bf16 %v7417_v45, %v7412_v43 }
 0x61d   : > { %v2038_v10 = vsel %vm1412_vm1, %v7348_v8, 0.0  ;;  %v2043_v11 = vmul.f32 %v7348_v8, %v7348_v8 }
 0x61e   : > { %2039 = vadd.xlane.f32.xlu0 %v2038_v10  ;;  %v7379_v18 = vpack.c.bf16 %v1380_v17, %v1379_v16 }
 0x61f   : > { %v2044_v12 = vsel %vm1412_vm1, %v2043_v11, 0.0 }
 0x620   : > { %2045 = vadd.xlane.f32.xlu1 %v2044_v12  ;;  %6083 = vmatprep.mubr.msk.bf16.mxu0 %vm1412_vm1, %v7379_v18 }
 0x631   : > { %2143 = vrot.lane.b32.xlu1 %v6597_v63, %s8564_s25 }
 0x634   : > { %2141 = vrot.lane.b32.xlu0 %v6596_v62, %s8564_s25 }
 0x635   : > { %2231 = vrot.lane.b32.xlu1 %v6596_v62, %s8554_s7 }
 0x638   : > { %2147 = vrot.lane.b32.xlu0 %v7384_v19, %s8564_s25  ;;  %s8631_s25 = sld [smem:[#allocation28_spill]] }
 0x63c   : > { %2233 = vrot.lane.b32.xlu0 %v6597_v63, %s8554_s7 }
 0x6ab   : > { %v2040_v20 = vpop.xlane.xlu0 %2039 }
 0x6ac   : > { %v2042_v21 = vmul.f32 0.03125, %v2040_v20 }
 0x6ad   : > { %v2046_v24 = vpop.xlane.xlu1 %2045 }
 0x6ae   : > { %v2048_v28 = vmul.f32 %v2042_v21, %v2042_v21  ;;  %v2047_v29 = vmul.f32 0.03125, %v2046_v24  ;;  %v2051_v51 = vsub.f32 %v7348_v8, %v2042_v21 }
 0x6af   : > { %v2142_v33 = vpop.permute.xlu0 %2141 }
 0x6b0   : > { %v2049_v34 = vsub.f32 %v2047_v29, %v2048_v28  ;;  %6079 = vmatprep.subr.bf16.mxu0 %v2142_v33 }
 0x6b1   : > { %6080 = vmatpush3.bf16.msra.mxu0 %v2142_v33  ;;  %v2144_v37 = vpop.permute.xlu1 %2143 }
 0x6b2   : > { %v2050_v40 = vmax.f32 %v2049_v34, 0.0  ;;  %6081 = vmatprep.subr.bf16.mxu0 %v2144_v37 }
 0x6b3   : > { %v2148_v60 = vpop.permute.xlu0 %2147 }
 0x6b4   : > { %v2052_v41 = vadd.f32 1e-05, %v2050_v40  ;;  %v2229_v40 = vpack.c.bf16 %v7401_v30, %v7398_v27 }
 0x6b5   : > { %6082 = vmatpush3.bf16.msra.mxu0 %v2144_v37  ;;  %v2232_v36 = vpop.permute.xlu1 %2231 }
 0x6b6   : > { %6644 = vrsqrt.f32 %v2052_v41  ;;  %6103 = vmatprep.subr.bf16.mxu0 %v6946_v1  ;;  %6091 = vmatprep.subr.bf16.mxu1 %v2232_v36 }
 0x6b7   : > { %v2234_v37 = vpop.permute.xlu0 %2233 }
 0x6b8   : > { %6084 = vmatmul.mubr.msk.bf16.vlgmr.msra.gmra.mrb[24].mxu0 %vm1412_vm1, %v7409_v42 }
 0x6b9   : > { %6087 = vmatprep.mubr.msk.bf16.mxu0 %vm1412_vm1, %v7414_v44 }
 0x6c0   : > { %v6645_v52 = vpop.eup %6644  ;;  %6088 = vmatmul.mubr.msk.bf16.gmra.mrb[28].mxu0 %vm1412_vm1, %v7428_v50 }
 0x6c1   : > { %v2054_v54 = vmul.f32 %v6645_v52, %v2051_v51  ;;  %6111 = vmatprep.mubr.msk.bf16.mxu0 %vm6947_vm0, %v6946_v1 }
 0x6c3   : > { %v2061_v56 = vmul.f32 %v5684_v53, %v2054_v54 }
 0x6c5   : > { %v7437_v57 = vadd.f32 %v5685_v55, %v2061_v56 }
 0x6c7   : > { %v2069_v58 = vadd.f32 %v7437_v57, %v7259_v4 }
 0x6c9   : > { %v2075_v59 = vpack.c.bf16 %v2069_v58, %v2069_v58 }
 0x6cb   : > { %6076 = vmatmul.mubr.msk.bf16.vlgmr.msra.gmra.mrb[20].mxu1 %vm1412_vm1, %v2075_v59 }
 0x6cc   : > { %6092 = vmatpush3.bf16.msra.mxu1 %v2232_v36  ;;  %6095 = vmatprep.mubr.msk.bf16.mxu1 %vm1412_vm1, %v2227_v38 }
 0x6cd   : > { %6093 = vmatprep.subr.bf16.mxu1 %v2234_v37 }
 0x6d0   : > { %6094 = vmatpush3.bf16.msra.mxu1 %v2234_v37 }
 0x6d1   : > { %6115 = vmatprep.subr.bf16.mxu1 %v6946_v1 }
 0x6d3   : > { %6096 = vmatmul.mubr.msk.bf16.vlgmr.msra.gmra.mrb[24].mxu1 %vm1412_vm1, %v2228_v39 }
 0x6d4   : > { %6099 = vmatprep.mubr.msk.bf16.mxu1 %vm1412_vm1, %v2229_v40 }
 0x6db   : > { %6100 = vmatmul.mubr.msk.bf16.gmra.mrb[28].mxu1 %vm1412_vm1, %v2230_v3 }
 0x6dc   : > { %6123 = vmatprep.mubr.msk.bf16.mxu1 %vm6947_vm0, %v6946_v1 }
 0x78b   : > { %v6085_v61 = vpop.f32.mrb[24].mxu0 }
 0x78c   : > { %v2196_v62 = vpop.f32.mrb[25].mxu0  ;;  %v2205_v0 = vadd.f32 %v6085_v61, %v2148_v60 }
 0x78d   : > { %v6086_v63 = vpop.f32.mrb[26].mxu0  ;;  %v2197_v6 = vadd.f32 %v2196_v62, %v2148_v60 }
 0x78e   : > { %v2208_v2 = vadd.f32 %v6086_v63, %v2148_v60  ;;  %v2199_v5 = vpop.f32.mrb[27].mxu0 }
 0x78f   : > { %v2200_v7 = vadd.f32 %v2199_v5, %v2148_v60 }
 0x790   : > { %v7442_v8 = vpack.c.bf16 %v2208_v2, %v2205_v0 }
 0x791   : > { %v7444_v9 = vpack.c.bf16 %v2200_v7, %v2197_v6 }
 0x792   : > { %v2330_v25 = vsel %vm2322_vm6, %v7442_v8, 0 }
 0x793   : > { %v6089_v10 = vpop.f32.mrb[28].mxu0  ;;  %v2327_v4 = vsel %vm2322_vm6, %v7444_v9, 0 }
 0x794   : > { %v2212_v11 = vpop.f32.mrb[29].mxu0  ;;  %6104 = vmatpush3.bf16.xpose.msra.mxu0 %v2327_v4  ;;  %v2221_v14 = vadd.f32 %v6089_v10, %v2148_v60 }
 0x795   : > { %v6090_v12 = vpop.f32.mrb[30].mxu0  ;;  %6105 = vmatprep.subr.bf16.mxu0 %v6946_v1  ;;  %v2213_v17 = vadd.f32 %v2212_v11, %v2148_v60 }
 0x796   : > { %v2224_v15 = vadd.f32 %v6090_v12, %v2148_v60  ;;  %v2215_v16 = vpop.f32.mrb[31].mxu0 }
 0x797   : > { %v2216_v20 = vadd.f32 %v2215_v16, %v2148_v60 }
 0x798   : > { %v7449_v21 = vpack.c.bf16 %v2224_v15, %v2221_v14 }
 0x799   : > { %v7451_v24 = vpack.c.bf16 %v2216_v20, %v2213_v17 }
 0x79a   : > { %v2336_v33 = vsel %vm2322_vm6, %v7449_v21, 0 }
 0x79b   : > { %v2333_v32 = vsel %vm2322_vm6, %v7451_v24, 0 }
 0x79c   : > { %6106 = vmatpush3.bf16.xpose.msra.mxu0 %v2330_v25 }
 0x79d   : > { %6107 = vmatprep.subr.bf16.mxu0 %v6946_v1 }
 0x79e   : > { %v2131_v26 = vpop.f32.mrb[20].mxu1 }
 0x79f   : > { %v6077_v28 = vpop.f32.mrb[21].mxu1  ;;  %v2132_v34 = vadd.f32 %v7384_v19, %v2131_v26 }
 0x7a0   : > { %v2134_v29 = vpop.f32.mrb[22].mxu1 }
 0x7a1   : > { %v6078_v31 = vpop.f32.mrb[23].mxu1  ;;  %v7463_v35 = vpack.c.bf16 %v2132_v34, %v2132_v34 }
 0x7a4   : > { %6108 = vmatpush3.bf16.xpose.msra.mxu0 %v2333_v32 }
 0x7a5   : > { %6109 = vmatprep.subr.bf16.mxu0 %v6946_v1 }
 0x7a6   : > { %v6097_v41 = vpop.f32.mrb[24].mxu1 }
 0x7a7   : > { %v2286_v43 = vpop.f32.mrb[25].mxu1 }
 0x7a8   : > { %v6098_v45 = vpop.f32.mrb[26].mxu1 }
 0x7a9   : > { %v2289_v46 = vpop.f32.mrb[27].mxu1 }
 0x7ac   : > { %6110 = vmatpush3.bf16.xpose.msra.mxu0 %v2336_v33 }
 0x7ad   : > { %6139 = vmatprep.subr.bf16.mxu0 %v6946_v1 }
 0x7ae   : > { %v6101_v53 = vpop.f32.mrb[28].mxu1 }
 0x7af   : > { %v2302_v54 = vpop.f32.mrb[29].mxu1 }
 0x7b0   : > { %v6102_v55 = vpop.f32.mrb[30].mxu1 }
 0x7b1   : > { %v2305_v56 = vpop.f32.mrb[31].mxu1 }
 0x7b3   : > { %6112 = vmatmul.mubr.msk.bf16.vlgmr.msra.gmra.mrb[32].mxu0 %vm2322_vm6, %v7463_v35 }
 0x7b4   : > { %6147 = vmatprep.mubr.msk.bf16.mxu0 %vm6947_vm0, %v6946_v1 }
 0x886   : > { %v2372_v13 = vpop.f32.mrb[32].mxu0 }
 0x887   : > { %v6113_v22 = vpop.f32.mrb[33].mxu0  ;;  %v2379_v23 = vsel %vm2378_vm7, %v2372_v13, -inf }
 0x888   : > { %2380 = vmax.xlane.f32.xlu1 %v2379_v23  ;;  %v2375_v27 = vpop.f32.mrb[34].mxu0 }
 0x889   : > { %v6114_v30 = vpop.f32.mrb[35].mxu0 }
 0x899   : > { %2445 = vrot.lane.b32.xlu1 %v7444_v9, %s8562_s18 }
 0x89d   : > { %2447 = vrot.lane.b32.xlu1 %v7442_v8, %s8562_s18 }
 0x8a1   : > { %2451 = vrot.lane.b32.xlu1 %v7449_v21, %s8562_s18 }
 0x915   : > { %v2381_v47 = vpop.xlane.xlu1 %2380 }
 0x916   : > { %v2382_v48 = vsub.f32 %v2372_v13, %v2381_v47 }
 0x918   : > { %v2383_v49 = vmul.f32 1.442695, %v2382_v48 }
 0x919   : > { %v2446_v15 = vpop.permute.xlu1 %2445 }
 0x91a   : > { %6646 = vpow2.f32 %v2383_v49  ;;  %v2457_v16 = vsel %vm2322_vm6, %v2446_v15, 0 }
 0x91d   : > { %v2448_v17 = vpop.permute.xlu1 %2447 }
 0x91e   : > { %v2460_v20 = vsel %vm2322_vm6, %v2448_v17, 0 }
 0x921   : > { %v2452_v28 = vpop.permute.xlu1 %2451 }
 0x922   : > { %v2466_v29 = vsel %vm2322_vm6, %v2452_v28, 0 }
 0x924   : > { %v6647_v51 = vpop.eup %6646 }
 0x925   : > { %v2385_v52 = vsel %vm2378_vm7, %v6647_v51, 0.0 }
 0x926   : > { %2386 = vadd.xlane.f32.xlu0 %v2385_v52 }
 0x93c   : > { %2237 = vrot.lane.b32.xlu0 %v7384_v19, %s8554_s7  ;;  %s8622_s7 = sld [smem:[#allocation12_spill]] }
 0x940   : > { %2449 = vrot.lane.b32.xlu0 %v7451_v24, %s8562_s18 }
 0x944   : > { %2439 = vrot.lane.b32.xlu0 %v7463_v35, %s8562_s18 }
 0x9b3   : > { %v2387_v58 = vpop.xlane.xlu0 %2386 }
 0x9b4   : > { %6648 = vrcp.f32 %v2387_v58 }
 0x9b7   : > { %v2238_v59 = vpop.permute.xlu0 %2237 }
 0x9b8   : > { %v2287_v60 = vadd.f32 %v2286_v43, %v2238_v59  ;;  %v2290_v61 = vadd.f32 %v2289_v46, %v2238_v59  ;;  %v2295_v62 = vadd.f32 %v6097_v41, %v2238_v59  ;;  %v2298_v63 = vadd.f32 %v6098_v45, %v2238_v59 }
 0x9b9   : > { %v2303_v0 = vadd.f32 %v2302_v54, %v2238_v59  ;;  %v2306_v2 = vadd.f32 %v2305_v56, %v2238_v59  ;;  %v2311_v5 = vadd.f32 %v6101_v53, %v2238_v59  ;;  %v2314_v6 = vadd.f32 %v6102_v55, %v2238_v59 }
 0x9ba   : > { %v7498_v7 = vpack.c.bf16 %v2290_v61, %v2287_v60  ;;  %v7500_v19 = vpack.c.bf16 %v2298_v63, %v2295_v62 }
 0x9bb   : > { %v7502_v10 = vpack.c.bf16 %v2306_v2, %v2303_v0  ;;  %v7504_v4 = vpack.c.bf16 %v2314_v6, %v2311_v5  ;;  %v2450_v25 = vpop.permute.xlu0 %2449 }
 0x9bc   : > { %2524 = vrot.lane.b32.xlu0 %v7498_v7, %s8562_s18  ;;  %6116 = vmatpush3.bf16.msra.mxu1 %v7498_v7  ;;  %v2463_v26 = vsel %vm2322_vm6, %v2450_v25, 0 }
 0x9bd   : > { %6117 = vmatprep.subr.bf16.mxu1 %v6946_v1 }
 0x9be   : > { %v6649_v11 = vpop.eup %6648 }
 0x9bf   : > { %v2389_v12 = vmul.f32 %v6649_v11, %v6647_v51  ;;  %v2440_v31 = vpop.permute.xlu0 %2439 }
 0x9c0   : > { %6118 = vmatpush3.bf16.msra.mxu1 %v7500_v19 }
 0x9c1   : > { %6119 = vmatprep.subr.bf16.mxu1 %v6946_v1  ;;  %v2390_v14 = vpack.c.bf16 %v2389_v12, %v2389_v12 }
 0x9c4   : > { %6120 = vmatpush3.bf16.msra.mxu1 %v7502_v10 }
 0x9c5   : > { %6121 = vmatprep.subr.bf16.mxu1 %v6946_v1 }
 0x9c8   : > { %6122 = vmatpush3.bf16.msra.mxu1 %v7504_v4 }
 0x9c9   : > { %6127 = vmatprep.subr.bf16.mxu1 %v6946_v1 }
 0x9cb   : > { %6124 = vmatmul.mubr.msk.bf16.vlgmr.msra.gmra.mrb[32].mxu1 %vm2378_vm7, %v2390_v14 }
 0x9cc   : > { %6135 = vmatprep.mubr.msk.bf16.mxu1 %vm6947_vm0, %v6946_v1 }
 0x9d1   : > { %6128 = vmatpush3.bf16.xpose.msra.mxu1 %v2457_v16 }
 0x9d2   : > { %6129 = vmatprep.subr.bf16.mxu1 %v6946_v1 }
 0x9d9   : > { %6130 = vmatpush3.bf16.xpose.msra.mxu1 %v2460_v20 }
 0x9da   : > { %6131 = vmatprep.subr.bf16.mxu1 %v6946_v1 }
 0x9e1   : > { %6132 = vmatpush3.bf16.xpose.msra.mxu1 %v2463_v26 }
 0x9e2   : > { %6133 = vmatprep.subr.bf16.mxu1 %v6946_v1 }
 0x9e9   : > { %6134 = vmatpush3.bf16.xpose.msra.mxu1 %v2466_v29 }
 0x9ea   : > { %6163 = vmatprep.subr.bf16.mxu1 %v6946_v1 }
 0x9f0   : > { %6136 = vmatmul.mubr.msk.bf16.vlgmr.msra.gmra.mrb[36].mxu1 %vm2322_vm6, %v2440_v31 }
 0x9f1   : > { %6171 = vmatprep.mubr.msk.bf16.mxu1 %vm6947_vm0, %v6946_v1 }
 0xa2e   : > { %v2525_v32 = vpop.permute.xlu0 %2524 }
 0xa2f   : > { %6140 = vmatpush3.bf16.msra.mxu0 %v2525_v32 }
 0xa30   : > { %6141 = vmatprep.subr.bf16.mxu0 %v6946_v1 }
 0xa9e   : > { %v7531_v33 = vpop.f32.mrb[32].mxu1 }
 0xa9f   : > { %v6125_v34 = vpop.f32.mrb[33].mxu1 }
 0xaa0   : > { %v2435_v36 = vpop.f32.mrb[34].mxu1 }
 0xaa1   : > { %v6126_v37 = vpop.f32.mrb[35].mxu1 }
 0xac3   : > { %v2502_v38 = vpop.f32.mrb[36].mxu1 }
 0xac4   : > { %v6137_v39 = vpop.f32.mrb[37].mxu1  ;;  %v2508_v40 = vsel %vm2378_vm7, %v2502_v38, -inf }
 0xac5   : > { %2509 = vmax.xlane.f32.xlu1 %v2508_v40  ;;  %v2505_v3 = vpop.f32.mrb[38].mxu1 }
 0xac6   : > { %v6138_v13 = vpop.f32.mrb[39].mxu1 }
 0xac7   : > { %v6598_v13 = vld [vmem:[%s8609_s6] sm:$0xff]  }
 0xad6   : > { %2526 = vrot.lane.b32.xlu1 %v7500_v19, %s8562_s18 }
 0xada   : > { %2528 = vrot.lane.b32.xlu1 %v7502_v10, %s8562_s18 }
 0xade   : > { %2581 = vrot.lane.b32.xlu1 %v7444_v9, %s8560_s1 }
 0xae2   : > { %2585 = vrot.lane.b32.xlu1 %v7451_v24, %s8560_s1 }
 0xae6   : > { %2579 = vrot.lane.b32.xlu1 %v7463_v35, %s8560_s1 }
 0xaea   : > { %2658 = vrot.lane.b32.xlu1 %v7500_v19, %s8560_s1 }
 0xaee   : > { %2662 = vrot.lane.b32.xlu1 %v7504_v4, %s8560_s1 }
 0xb52   : > { %v2510_v22 = vpop.xlane.xlu1 %2509 }
 0xb53   : > { %v2511_v23 = vsub.f32 %v2502_v38, %v2510_v22  ;;  %v6599_v22 = vld [vmem:[%s8609_s6 + $0x8] sm:$0xff]   ;;  %s6963_s6 = smov [#allocation2]  }
 0xb54   : > { %s6843_s8 = sshll.u32 %s6963_s6, 4  ;;  %s6844_s8 = int_to_ptr.vmem [resolvable:$false] %s6843_s8 }
 0xb55   : > { %v2512_v27 = vmul.f32 1.442695, %v2511_v23  ;;  %v2922_v23 = vpack.c.bf16 %v7437_v57, %v7437_v57  ;;  %s6845_s9 = scalar_lea.vmem %s6844_s8, 256 }
 0xb56   : > { %v2527_v30 = vpop.permute.xlu1 %2526 }
 0xb57   : > { %6650 = vpow2.f32 %v2512_v27  ;;  %6142 = vmatpush3.bf16.msra.mxu0 %v2527_v30 }
 0xb58   : > { %6143 = vmatprep.subr.bf16.mxu0 %v6946_v1 }
 0xb5a   : > { %v2529_v41 = vpop.permute.xlu1 %2528 }
 0xb5b   : > { %6144 = vmatpush3.bf16.msra.mxu0 %v2529_v41 }
 0xb5c   : > { %6145 = vmatprep.subr.bf16.mxu0 %v6946_v1 }
 0xb5e   : > { %v2582_v51 = vpop.permute.xlu1 %2581 }
 0xb5f   : > { %v2593_v53 = vsel %vm2322_vm6, %v2582_v51, 0 }
 0xb61   : > { %v6651_v43 = vpop.eup %6650 }
 0xb62   : > { %v2514_v45 = vsel %vm2378_vm7, %v6651_v43, 0.0  ;;  %v2586_v56 = vpop.permute.xlu1 %2585 }
 0xb63   : > { %2515 = vadd.xlane.f32.xlu0 %v2514_v45  ;;  %v2599_v58 = vsel %vm2322_vm6, %v2586_v56, 0 }
 0xb66   : > { %v2580_v61 = vpop.permute.xlu1 %2579 }
 0xb6a   : > { %v2659_v25 = vpop.permute.xlu1 %2658 }
 0xb79   : > { %2530 = vrot.lane.b32.xlu0 %v7504_v4, %s8562_s18  ;;  %s8627_s18 = sld [smem:[#allocation24_spill]] }
 0xb7d   : > { %2583 = vrot.lane.b32.xlu0 %v7442_v8, %s8560_s1 }
 0xb81   : > { %2587 = vrot.lane.b32.xlu0 %v7449_v21, %s8560_s1 }
 0xbf0   : > { %v2516_v46 = vpop.xlane.xlu0 %2515 }
 0xbf1   : > { %6652 = vrcp.f32 %v2516_v46 }
 0xbf4   : > { %v2531_v47 = vpop.permute.xlu0 %2530 }
 0xbf5   : > { %6146 = vmatpush3.bf16.msra.mxu0 %v2531_v47 }
 0xbf6   : > { %6151 = vmatprep.subr.bf16.mxu0 %v6946_v1 }
 0xbf8   : > { %v2584_v54 = vpop.permute.xlu0 %2583 }
 0xbf9   : > { %v2596_v55 = vsel %vm2322_vm6, %v2584_v54, 0 }
 0xbfb   : > { %v6653_v48 = vpop.eup %6652 }
 0xbfc   : > { %v2518_v49 = vmul.f32 %v6653_v48, %v6651_v43  ;;  %v2588_v59 = vpop.permute.xlu0 %2587 }
 0xbfd   : > { %v2602_v60 = vsel %vm2322_vm6, %v2588_v59, 0 }
 0xbfe   : > { %v2519_v52 = vpack.c.bf16 %v2518_v49, %v2518_v49 }
 0xc00   : > { %6148 = vmatmul.mubr.msk.bf16.vlgmr.msra.gmra.mrb[36].mxu0 %vm2378_vm7, %v2519_v52 }
 0xc01   : > { %6152 = vmatpush3.bf16.xpose.msra.mxu0 %v2593_v53  ;;  %6159 = vmatprep.mubr.msk.bf16.mxu0 %vm6947_vm0, %v6946_v1 }
 0xc02   : > { %6153 = vmatprep.subr.bf16.mxu0 %v6946_v1 }
 0xc09   : > { %6154 = vmatpush3.bf16.xpose.msra.mxu0 %v2596_v55 }
 0xc0a   : > { %6155 = vmatprep.subr.bf16.mxu0 %v6946_v1 }
 0xc11   : > { %6156 = vmatpush3.bf16.xpose.msra.mxu0 %v2599_v58 }
 0xc12   : > { %6157 = vmatprep.subr.bf16.mxu0 %v6946_v1 }
 0xc19   : > { %6158 = vmatpush3.bf16.xpose.msra.mxu0 %v2602_v60 }
 0xc1a   : > { %6187 = vmatprep.subr.bf16.mxu0 %v6946_v1 }
 0xc20   : > { %6160 = vmatmul.mubr.msk.bf16.vlgmr.msra.gmra.mrb[40].mxu0 %vm2322_vm6, %v2580_v61 }
 0xc21   : > { %6195 = vmatprep.mubr.msk.bf16.mxu0 %vm6947_vm0, %v6946_v1 }
 0xcd3   : > { %v7572_v62 = vpop.f32.mrb[36].mxu0 }
 0xcd4   : > { %v6149_v63 = vpop.f32.mrb[37].mxu0 }
 0xcd5   : > { %v2576_v0 = vpop.f32.mrb[38].mxu0 }
 0xcd6   : > { %v6150_v2 = vpop.f32.mrb[39].mxu0 }
 0xcf3   : > { %v2638_v5 = vpop.f32.mrb[40].mxu0 }
 0xcf4   : > { %v6161_v6 = vpop.f32.mrb[41].mxu0  ;;  %v2644_v11 = vsel %vm2378_vm7, %v2638_v5, -inf }
 0xcf5   : > { %2645 = vmax.xlane.f32.xlu0 %v2644_v11  ;;  %v2641_v12 = vpop.f32.mrb[42].mxu0 }
 0xcf6   : > { %v6162_v14 = vpop.f32.mrb[43].mxu0 }
 0xd0b   : > { %2656 = vrot.lane.b32.xlu0 %v7498_v7, %s8560_s1 }
 0xd0f   : > { %2660 = vrot.lane.b32.xlu0 %v7502_v10, %s8560_s1  ;;  %s8625_s1 = sld [smem:[#allocation35_spill]] }
 0xd13   : > { %2713 = vrot.lane.b32.xlu0 %v7444_v9, %s8558_s21 }
 0xd17   : > { %2717 = vrot.lane.b32.xlu0 %v7451_v24, %s8558_s21 }
 0xd1b   : > { %2711 = vrot.lane.b32.xlu0 %v7463_v35, %s8558_s21  ;;  %v2663_v35 = vpop.permute.xlu1 %2662 }
 0xd1f   : > { %2788 = vrot.lane.b32.xlu0 %v7498_v7, %s8558_s21 }
 0xd82   : > { %v2646_v15 = vpop.xlane.xlu0 %2645 }
 0xd83   : > { %v2647_v16 = vsub.f32 %v2638_v5, %v2646_v15 }
 0xd85   : > { %v2648_v17 = vmul.f32 1.442695, %v2647_v16 }
 0xd86   : > { %v2657_v20 = vpop.permute.xlu0 %2656 }
 0xd87   : > { %6654 = vpow2.f32 %v2648_v17  ;;  %6164 = vmatpush3.bf16.msra.mxu1 %v2657_v20 }
 0xd88   : > { %6165 = vmatprep.subr.bf16.mxu1 %v6946_v1 }
 0xd8a   : > { %v2661_v26 = vpop.permute.xlu0 %2660 }
 0xd8b   : > { %6166 = vmatpush3.bf16.msra.mxu1 %v2659_v25 }
 0xd8c   : > { %6167 = vmatprep.subr.bf16.mxu1 %v6946_v1 }
 0xd8e   : > { %v2714_v9 = vpop.permute.xlu0 %2713 }
 0xd8f   : > { %6168 = vmatpush3.bf16.msra.mxu1 %v2661_v26  ;;  %v2725_v38 = vsel %vm2322_vm6, %v2714_v9, 0 }
 0xd90   : > { %6169 = vmatprep.subr.bf16.mxu1 %v6946_v1 }
 0xd91   : > { %v6655_v24 = vpop.eup %6654 }
 0xd92   : > { %v2718_v7 = vpop.permute.xlu0 %2717  ;;  %v2650_v28 = vsel %vm2378_vm7, %v6655_v24, 0.0 }
 0xd93   : > { %2651 = vadd.xlane.f32.xlu1 %v2650_v28  ;;  %6170 = vmatpush3.bf16.msra.mxu1 %v2663_v35  ;;  %v2731_v39 = vsel %vm2322_vm6, %v2718_v7, 0 }
 0xd94   : > { %6175 = vmatprep.subr.bf16.mxu1 %v6946_v1 }
 0xd96   : > { %v2712_v29 = vpop.permute.xlu0 %2711 }
 0xd9a   : > { %v2789_v31 = vpop.permute.xlu0 %2788 }
 0xd9b   : > { %6188 = vmatpush3.bf16.msra.mxu0 %v2789_v31 }
 0xd9c   : > { %6189 = vmatprep.subr.bf16.mxu0 %v6946_v1 }
 0xda4   : > { %2715 = vrot.lane.b32.xlu1 %v7442_v8, %s8558_s21 }
 0xda8   : > { %2719 = vrot.lane.b32.xlu1 %v7449_v21, %s8558_s21 }
 0xe20   : > { %v2652_v32 = vpop.xlane.xlu1 %2651 }
 0xe21   : > { %6656 = vrcp.f32 %v2652_v32 }
 0xe24   : > { %v2716_v8 = vpop.permute.xlu1 %2715 }
 0xe25   : > { %v2728_v21 = vsel %vm2322_vm6, %v2716_v8, 0 }
 0xe28   : > { %v2720_v40 = vpop.permute.xlu1 %2719 }
 0xe29   : > { %v2734_v3 = vsel %vm2322_vm6, %v2720_v40, 0 }
 0xe2b   : > { %v6657_v34 = vpop.eup %6656 }
 0xe2c   : > { %v2654_v36 = vmul.f32 %v6657_v34, %v6655_v24 }
 0xe2e   : > { %v2655_v37 = vpack.c.bf16 %v2654_v36, %v2654_v36 }
 0xe30   : > { %6172 = vmatmul.mubr.msk.bf16.vlgmr.msra.gmra.mrb[40].mxu1 %vm2378_vm7, %v2655_v37  ;;  %v5713_v37 = vld [vmem:[%s8625_s1] ss:$0 sm:$0xff]  ;;  %s8628_s1 = sld [smem:[#allocation26_spill]] }
 0xe31   : > { %6176 = vmatpush3.bf16.xpose.msra.mxu1 %v2725_v38  ;;  %6183 = vmatprep.mubr.msk.bf16.mxu1 %vm6947_vm0, %v6946_v1 }
 0xe32   : > { %6177 = vmatprep.subr.bf16.mxu1 %v6946_v1 }
 0xe39   : > { %6178 = vmatpush3.bf16.xpose.msra.mxu1 %v2728_v21 }
 0xe3a   : > { %6179 = vmatprep.subr.bf16.mxu1 %v6946_v1 }
 0xe41   : > { %6180 = vmatpush3.bf16.xpose.msra.mxu1 %v2731_v39 }
 0xe42   : > { %6181 = vmatprep.subr.bf16.mxu1 %v6946_v1 }
 0xe49   : > { %6182 = vmatpush3.bf16.xpose.msra.mxu1 %v2734_v3 }
 0xe4a   : > { %6205 = vmatprep.subr.bf16.mxu1 %v6946_v1 }
 0xe50   : > { %6184 = vmatmul.mubr.msk.bf16.vlgmr.msra.gmra.mrb[44].mxu1 %vm2322_vm6, %v2712_v29 }
 0xe51   : > { %6206 = vmatpush3.bf16.msra.mxu1 %v6598_v13  ;;  %6209 = vmatprep.mubr.msk.bf16.mxu1 %vm6947_vm0, %v6946_v1 }
 0xe52   : > { %6207 = vmatprep.subr.bf16.mxu1 %v6946_v1 }
 0xe55   : > { %6208 = vmatpush3.bf16.msra.mxu1 %v6599_v22 }
 0xe56   : > { %6213 = vmatprep.subr.bf16.mxu1 %v6946_v1 }
 0xe58   : > { %6210 = vmatmul.mubr.msk.bf16.vlgmr.msra.gmra.mrb[48].mxu1 %vm1412_vm1, %v2922_v23 }
 0xe59   : > { %6217 = vmatprep.mubr.msk.bf16.mxu1 %vm6947_vm0, %v6946_v1 }
 0xf03   : > { %v2705_v27 = vpop.f32.mrb[40].mxu1 }
 0xf04   : > { %v6173_v30 = vpop.f32.mrb[41].mxu1 }
 0xf05   : > { %v2708_v41 = vpop.f32.mrb[42].mxu1 }
 0xf06   : > { %v6174_v43 = vpop.f32.mrb[43].mxu1 }
 0xf23   : > { %v2770_v45 = vpop.f32.mrb[44].mxu1 }
 0xf24   : > { %v6185_v46 = vpop.f32.mrb[45].mxu1  ;;  %v2776_v47 = vsel %vm2378_vm7, %v2770_v45, -inf }
 0xf25   : > { %2777 = vmax.xlane.f32.xlu1 %v2776_v47  ;;  %v2773_v48 = vpop.f32.mrb[46].mxu1 }
 0xf26   : > { %v6186_v49 = vpop.f32.mrb[47].mxu1 }
 0xf36   : > { %2790 = vrot.lane.b32.xlu1 %v7500_v19, %s8558_s21 }
 0xf3a   : > { %2792 = vrot.lane.b32.xlu1 %v7502_v10, %s8558_s21 }
 0xf3e   : > { %2844 = vrot.lane.b32.xlu1 %v7572_v62, %s8552_s13  ;;  %v6600_v62 = vld [vmem:[%s7022_s19] sm:$0xff]   ;;  %s8556_s13 = smov 12  }
 0xfb2   : > { %v2778_v51 = vpop.xlane.xlu1 %2777 }
 0xfb3   : > { %v2779_v52 = vsub.f32 %v2770_v45, %v2778_v51 }
 0xfb5   : > { %v2780_v53 = vmul.f32 1.442695, %v2779_v52 }
 0xfb6   : > { %v2791_v54 = vpop.permute.xlu1 %2790 }
 0xfb7   : > { %6658 = vpow2.f32 %v2780_v53  ;;  %6190 = vmatpush3.bf16.msra.mxu0 %v2791_v54 }
 0xfb8   : > { %6191 = vmatprep.subr.bf16.mxu0 %v6946_v1 }
 0xfba   : > { %v2793_v55 = vpop.permute.xlu1 %2792 }
 0xfbb   : > { %6192 = vmatpush3.bf16.msra.mxu0 %v2793_v55 }
 0xfbc   : > { %6193 = vmatprep.subr.bf16.mxu0 %v6946_v1 }
 0xfbe   : > { %v2845_v5 = vpop.permute.xlu1 %2844 }
 0xfbf   : > { %v2855_v11 = vsel %vm2322_vm6, %v7531_v33, %v2845_v5  ;;  %v5706_v33 = vld [vmem:[%s8622_s7] ss:$0 sm:$0xff]  ;;  %s8626_s7 = sld [smem:[#allocation37_spill]] }
 0xfc1   : > { %v6659_v19 = vpop.eup %6658 }
 0xfc2   : > { %v2782_v10 = vsel %vm2378_vm7, %v6659_v19, 0.0 }
 0xfc3   : > { %2783 = vadd.xlane.f32.xlu0 %v2782_v10 }
 0xfc5   : > { %v5717_v48 = vld [vmem:[%s8626_s7] ss:$0 sm:$0xff]  ;;  %s8630_s7 = sld [smem:[#allocation19_spill]] }
 0xfd9   : > { %2794 = vrot.lane.b32.xlu0 %v7504_v4, %s8558_s21  ;;  %s8624_s21 = sld [smem:[#allocation33_spill]] }
 0xfdd   : > { %2848 = vrot.lane.b32.xlu0 %v2705_v27, %s8550_s5  ;;  %s8621_s5 = sld [smem:[#allocation34_spill]] }
 0xfdf   : > { %v5709_v36 = vld [vmem:[%s8624_s21] ss:$0 sm:$0xff]  ;;  %s8629_s21 = sld [smem:[#allocation18_spill]] }
 0xfe0   : > { %v6419_v38 = vadd.f32 %v5713_v37, %v5709_v36 }
 0xfe3   : > { %v6601_v17 = vld [vmem:[%s8621_s5] sm:$0xff]   ;;  %v6602_v20 = vld [vmem:[%s8621_s5 + $0x8] sm:$0xff]  }
 0xfe4   : > { %6214 = vmatpush3.bf16.msra.mxu1 %v6601_v17 }
 0xfe5   : > { %6215 = vmatprep.subr.bf16.mxu1 %v6946_v1 }
 0xfe8   : > { %6216 = vmatpush3.bf16.msra.mxu1 %v6602_v20 }
 0xfe9   : > { %6233 = vmatprep.subr.bf16.mxu1 %v6946_v1 }
0x1050   : > { %v2784_v56 = vpop.xlane.xlu0 %2783 }
0x1051   : > { %6660 = vrcp.f32 %v2784_v56 }
0x1054   : > { %v2795_v58 = vpop.permute.xlu0 %2794 }
0x1055   : > { %6194 = vmatpush3.bf16.msra.mxu0 %v2795_v58  ;;  %v6607_v58 = vld [vmem:[%s8627_s18] sm:$0xff]  }
0x1056   : > { %6199 = vmatprep.subr.bf16.mxu0 %v6946_v1 }
0x1058   : > { %v2849_v6 = vpop.permute.xlu0 %2848 }
0x1059   : > { %v2856_v12 = vsel %vm1513_vm2, %v2855_v11, %v2849_v6 }
0x105b   : > { %v6661_v59 = vpop.eup %6660 }
0x105c   : > { %v2786_v60 = vmul.f32 %v6661_v59, %v6659_v19  ;;  %v6608_v59 = vld [vmem:[%s8627_s18 + $0x8] sm:$0xff]  }
0x105e   : > { %v2787_v61 = vpack.c.bf16 %v2786_v60, %v2786_v60  ;;  %v6611_v60 = vld [vmem:[%s8628_s1] sm:$0xff]  }
0x1060   : > { %6196 = vmatmul.mubr.msk.bf16.vlgmr.msra.gmra.mrb[44].mxu0 %vm2378_vm7, %v2787_v61 }
0x1061   : > { %6201 = vmatprep.mubr.msk.bf16.mxu0 %vm6947_vm0, %v6946_v1  ;;  %6200 = vmatpush3.bf16.msra.mxu0 %v6600_v62 }
0x1062   : > { %6221 = vmatprep.subr.bf16.mxu0 %v6946_v1 }
0x1133   : > { %v2837_v4 = vpop.f32.mrb[44].mxu0 }
0x1134   : > { %2852 = vrot.lane.b32.xlu1 %v2837_v4, %s8556_s13  ;;  %v6197_v63 = vpop.f32.mrb[45].mxu0  ;;  %s8623_s13 = sld [smem:[#allocation36_spill]] }
0x1135   : > { %v2840_v0 = vpop.f32.mrb[46].mxu0 }
0x1136   : > { %v6198_v2 = vpop.f32.mrb[47].mxu0 }
0x113a   : > { %v6603_v29 = vld [vmem:[%s8623_s13] sm:$0xff]   ;;  %v6604_v31 = vld [vmem:[%s8623_s13 + $0x8] sm:$0xff]   ;;  %v6605_v32 = vld [vmem:[%s8623_s13 + $0x10] sm:$0xff]  }
0x113b   : > { %v6606_v34 = vld [vmem:[%s8623_s13 + $0x18] sm:$0xff]  }
0x11a6   : > { %v2853_v14 = vpop.permute.xlu1 %2852 }
0x11a7   : > { %v2858_v15 = vsel %vm2857_vm8, %v2856_v12, %v2853_v14  ;;  %v5723_v14 = vld [vmem:[%s8629_s21] ss:$0 sm:$0xff]  ;;  %s8633_s21 = sld [smem:[#allocation25_spill]] }
0x11a8   : > { %v2861_v16 = vpack.c.bf16 %v2858_v15, %v2858_v15 }
0x11aa   : > { %6202 = vmatmul.mubr.msk.bf16.vlgmr.msra.gmra.mrb[48].mxu0 %vm1964_vm4, %v2861_v16  ;;  %v5724_v16 = vld [vmem:[%s8630_s7] ss:$0 sm:$0xff]  ;;  %s8634_s7 = sld [smem:[#allocation29_spill]] }
0x11ab   : > { %6229 = vmatprep.mubr.msk.bf16.mxu0 %vm6947_vm0, %v6946_v1  ;;  %6222 = vmatpush3.bf16.msra.mxu0 %v6603_v29  ;;  %v6617_v29 = vld [vmem:[%s8632_s3 + $0x10] sm:$0xff]  }
0x11ac   : > { %6223 = vmatprep.subr.bf16.mxu0 %v6946_v1 }
0x11af   : > { %6224 = vmatpush3.bf16.msra.mxu0 %v6604_v31  ;;  %v6618_v31 = vld [vmem:[%s8632_s3 + $0x18] sm:$0xff]  }
0x11b0   : > { %6225 = vmatprep.subr.bf16.mxu0 %v6946_v1 }
0x11b3   : > { %6226 = vmatpush3.bf16.msra.mxu0 %v6605_v32  ;;  %v5725_v32 = vld [vmem:[%s8633_s21] ss:$0 sm:$0xff]  ;;  %s8636_s21 = smov 112  }
0x11b4   : > { %6227 = vmatprep.subr.bf16.mxu0 %v6946_v1 }
0x11b7   : > { %6228 = vmatpush3.bf16.msra.mxu0 %v6606_v34 }
0x11b8   : > { %6241 = vmatprep.subr.bf16.mxu0 %v6946_v1 }
0x127d   : > { %v2912_v25 = vpop.f32.mrb[48].mxu0 }
0x127e   : > { %v2913_v26 = vadd.f32 %v5706_v33, %v2912_v25  ;;  %v6203_v9 = vpop.f32.mrb[49].mxu0  ;;  %v6609_v33 = vld [vmem:[%s8631_s25] sm:$0xff]  }
0x127f   : > { %v2915_v24 = vpop.f32.mrb[50].mxu0 }
0x1280   : > { %v2985_v35 = vadd.f32 %v2913_v26, %v7437_v57  ;;  %v6204_v7 = vpop.f32.mrb[51].mxu0  ;;  %v6610_v26 = vld [vmem:[%s8631_s25 + $0x8] sm:$0xff]   ;;  %v6613_v24 = vld [vmem:[%s8628_s1 + $0x10] sm:$0xff]  }
0x1281   : > { %v6615_v7 = vld [vmem:[%s8632_s3] sm:$0xff]  }
0x1282   : > { %v2990_v28 = vpack.c.bf16 %v2985_v35, %v2985_v35  ;;  %v6614_v35 = vld [vmem:[%s8628_s1 + $0x18] sm:$0xff]  }
0x1284   : > { %6218 = vmatmul.mubr.msk.bf16.vlgmr.msra.gmra.mrb[48].mxu1 %vm1412_vm1, %v2990_v28  ;;  %v6616_v28 = vld [vmem:[%s8632_s3 + $0x8] sm:$0xff]   ;;  %s8638_s3 = sld [smem:[#allocation27_spill]] }
0x1285   : > { %6237 = vmatprep.mubr.msk.bf16.mxu1 %vm6947_vm0, %v6946_v1  ;;  %6234 = vmatpush3.bf16.msra.mxu1 %v6607_v58 }
0x1286   : > { %6235 = vmatprep.subr.bf16.mxu1 %v6946_v1 }
0x1289   : > { %6236 = vmatpush3.bf16.msra.mxu1 %v6608_v59 }
0x128a   : > { %6253 = vmatprep.subr.bf16.mxu1 %v6946_v1  ;;  %v5729_v58 = vld [vmem:[%s8638_s3] ss:$0 sm:$0xff]  ;;  %s8640_s3 = smov 124  }
0x1357   : > { %v3047_v8 = vpop.f32.mrb[48].mxu1 }
0x1358   : > { %v6420_v21 = vadd.f32 %v6419_v38, %v3047_v8  ;;  %v6219_v39 = vpop.f32.mrb[49].mxu1 }
0x1359   : > { %v3050_v40 = vpop.f32.mrb[50].mxu1 }
0x135a   : > { %v3054_v3 = vmul.f32 %v6420_v21, %v6420_v21  ;;  %v6220_v13 = vpop.f32.mrb[51].mxu1  ;;  %v5735_v40 = vld [vmem:[%s8634_s7] ss:$0 sm:$0xff]  ;;  %s8637_s7 = sld [smem:[#allocation31_spill]] }
0x135c   : > { %v3055_v22 = vmul.f32 %v6420_v21, %v3054_v3 }
0x135e   : > { %v3056_v23 = vmul.f32 0.044715, %v3055_v22 }
0x1360   : > { %v3057_v27 = vadd.f32 %v6420_v21, %v3056_v23 }
0x1362   : > { %v3058_v30 = vmul.f32 0.7978846, %v3057_v27 }
0x1364   : > { %6662 = vtanh.f32 %v3058_v30 }
0x136e   : > { %v6663_v41 = vpop.eup %6662 }
0x136f   : > { %v3060_v43 = vadd.f32 1.0, %v6663_v41 }
0x1371   : > { %v3061_v45 = vmul.f32 0.5, %v3060_v43 }
0x1373   : > { %v3062_v46 = vmul.f32 %v6420_v21, %v3061_v45 }
0x1375   : > { %v3071_v47 = vpack.c.bf16 %v3062_v46, %v3062_v46 }
0x1377   : > { %6230 = vmatmul.mubr.msk.bf16.vlgmr.msra.gmra.mrb[52].mxu0 %vm2378_vm7, %v3071_v47 }
0x1378   : > { %6249 = vmatprep.mubr.msk.bf16.mxu0 %vm6947_vm0, %v6946_v1  ;;  %6242 = vmatpush3.bf16.msra.mxu0 %v6611_v60 }
0x1379   : > { %6243 = vmatprep.subr.bf16.mxu0 %v6946_v1 }
0x144a   : > { %v3140_v49 = vpop.f32.mrb[52].mxu0 }
0x144b   : > { %v3141_v51 = vadd.f32 %v5717_v48, %v3140_v49  ;;  %v6231_v52 = vpop.f32.mrb[53].mxu0 }
0x144c   : > { %v3143_v53 = vpop.f32.mrb[54].mxu0 }
0x144d   : > { %v3146_v54 = vadd.f32 %v3141_v51, %v7437_v57  ;;  %v6232_v55 = vpop.f32.mrb[55].mxu0  ;;  %v6612_v57 = vld [vmem:[%s8628_s1 + $0x8] sm:$0xff]   ;;  %s8635_s1 = sld [smem:[#allocation13_spill]] }
0x144e   : > { %6244 = vmatpush3.bf16.msra.mxu0 %v6612_v57 }
0x144f   : > { %v3149_v19 = vsel %vm1412_vm1, %v3146_v54, 0.0  ;;  %v3153_v10 = vmul.f32 %v3146_v54, %v3146_v54  ;;  %6245 = vmatprep.subr.bf16.mxu0 %v6946_v1  ;;  %v3334_v9 = vpack.c.bf16 %v3146_v54, %v3146_v54 }
0x1450   : > { %3150 = vadd.xlane.f32.xlu0 %v3149_v19 }
0x1451   : > { %v3154_v56 = vsel %vm1412_vm1, %v3153_v10, 0.0 }
0x1452   : > { %3155 = vadd.xlane.f32.xlu1 %v3154_v56  ;;  %6246 = vmatpush3.bf16.msra.mxu0 %v6613_v24  ;;  %v5739_v56 = vld [vmem:[%s8637_s7] ss:$0 sm:$0xff]  ;;  %s1327_s7 = sand.u32 1, %s6893_s23  }
0x1453   : > { %6247 = vmatprep.subr.bf16.mxu0 %v6946_v1  ;;  %v7718_v53 = vld [vmem:[%s8635_s1 + $0x8] sm:$0xff]   ;;  %s7761_s4 = sshll.u32 %s1327_s7, 3 }
0x1454   : > { %s1329_s5 = scalar_lea.vmem [#allocation2], %s7761_s4 }
0x1456   : > { %6248 = vmatpush3.bf16.msra.mxu0 %v6614_v35 }
0x14dd   : > { %v3151_v61 = vpop.xlane.xlu0 %3150 }
0x14de   : > { %v3152_v62 = vmul.f32 0.03125, %v3151_v61 }
0x14df   : > { %v3156_v4 = vpop.xlane.xlu1 %3155 }
0x14e0   : > { %v3158_v63 = vmul.f32 %v3152_v62, %v3152_v62  ;;  %v3157_v0 = vmul.f32 0.03125, %v3156_v4  ;;  %v3161_v11 = vsub.f32 %v3146_v54, %v3152_v62 }
0x14e2   : > { %v3159_v2 = vsub.f32 %v3157_v0, %v3158_v63 }
0x14e4   : > { %v3160_v5 = vmax.f32 %v3159_v2, 0.0 }
0x14e6   : > { %v3162_v6 = vadd.f32 1e-05, %v3160_v5 }
0x14e8   : > { %6664 = vrsqrt.f32 %v3162_v6 }
0x14f2   : > { %v6665_v12 = vpop.eup %6664 }
0x14f3   : > { %v3164_v15 = vmul.f32 %v6665_v12, %v3161_v11 }
0x14f5   : > { %v3171_v17 = vmul.f32 %v5723_v14, %v3164_v15 }
0x14f7   : > { %v3178_v20 = vadd.f32 %v5724_v16, %v3171_v17 }
0x14f9   : > { %v3183_v25 = vpack.c.bf16 %v3178_v20, %v3178_v20 }
0x14fb   : > { %6238 = vmatmul.mubr.msk.bf16.vlgmr.msra.gmra.mrb[52].mxu1 %vm1412_vm1, %v3183_v25 }
0x14fc   : > { %6254 = vmatpush3.bf16.msra.mxu1 %v6609_v33  ;;  %6257 = vmatprep.mubr.msk.bf16.mxu1 %vm6947_vm0, %v6946_v1 }
0x14fd   : > { %6255 = vmatprep.subr.bf16.mxu1 %v6946_v1 }
0x1500   : > { %6256 = vmatpush3.bf16.msra.mxu1 %v6610_v26 }
0x1501   : > { %6261 = vmatprep.subr.bf16.mxu1 %v6946_v1 }
0x1503   : > { %6258 = vmatmul.mubr.msk.bf16.vlgmr.msra.gmra.mrb[56].mxu1 %vm1412_vm1, %v3334_v9 }
0x1504   : > { %6269 = vmatprep.mubr.msk.bf16.mxu1 %vm6947_vm0, %v6946_v1  ;;  %6262 = vmatpush3.bf16.msra.mxu1 %v6615_v7 }
0x1505   : > { %6263 = vmatprep.subr.bf16.mxu1 %v6946_v1 }
0x1508   : > { %6264 = vmatpush3.bf16.msra.mxu1 %v6616_v28 }
0x1509   : > { %6265 = vmatprep.subr.bf16.mxu1 %v6946_v1 }
0x150c   : > { %6266 = vmatpush3.bf16.msra.mxu1 %v6617_v29 }
0x150d   : > { %6267 = vmatprep.subr.bf16.mxu1 %v6946_v1 }
0x1510   : > { %6268 = vmatpush3.bf16.msra.mxu1 %v6618_v31 }
0x1511   : > { %6285 = vmatprep.subr.bf16.mxu1 %v6946_v1 }
0x15ce   : > { %v3240_v34 = vpop.f32.mrb[52].mxu1 }
0x15cf   : > { %v3241_v36 = vadd.f32 %v5725_v32, %v3240_v34  ;;  %v6239_v37 = vpop.f32.mrb[53].mxu1 }
0x15d0   : > { %v3243_v38 = vpop.f32.mrb[54].mxu1 }
0x15d1   : > { %v3246_v8 = vmax.f32 %v3241_v36, 0.0  ;;  %v6240_v21 = vpop.f32.mrb[55].mxu1 }
0x15d3   : > { %v3255_v39 = vpack.c.bf16 %v3246_v8, %v3246_v8 }
0x15d5   : > { %6250 = vmatmul.mubr.msk.bf16.vlgmr.msra.gmra.mrb[56].mxu0 %vm2378_vm7, %v3255_v39 }
0x15d6   : > { %v3391_v3 = vpop.f32.mrb[56].mxu1  ;;  %6277 = vmatprep.mubr.msk.bf16.mxu0 %vm1412_vm1, %v7379_v18  ;;  %v7713_v18 = vld [vmem:[%s8635_s1] sm:$0xff]   ;;  %s8639_s1 = sld [smem:[#allocation14_spill]] }
0x15d7   : > { %v3392_v13 = vadd.f32 %v5735_v40, %v3391_v3  ;;  %v6259_v22 = vpop.f32.mrb[57].mxu1  ;;  %3613 = vrot.lane.b32.xlu1 %v7713_v18, %s8636_s21  ;;  %6273 = vmatprep.subr.bf16.mxu0 %v7713_v18 }
0x15d8   : > { %v3394_v23 = vpop.f32.mrb[58].mxu1  ;;  %6274 = vmatpush3.bf16.msra.mxu0 %v7713_v18 }
0x15d9   : > { %v3397_v27 = vmul.f32 %v3392_v13, %v3392_v13  ;;  %v6260_v30 = vpop.f32.mrb[59].mxu1  ;;  %6275 = vmatprep.subr.bf16.mxu0 %v7718_v53 }
0x15db   : > { %v3398_v41 = vmul.f32 %v3397_v27, %v3392_v13 }
0x15dc   : > { %6276 = vmatpush3.bf16.msra.mxu0 %v7718_v53  ;;  %v7741_v5 = vld [vmem:[%s8639_s1] ss:$0 sm:$0xff]  ;;  %s8641_s1 = sld [smem:[#allocation20_spill]] }
0x15dd   : > { %v3399_v43 = vmul.f32 0.044715, %v3398_v41  ;;  %6293 = vmatprep.subr.bf16.mxu0 %v6946_v1  ;;  %3619 = vrot.lane.b32.xlu1 %v7741_v5, %s8636_s21 }
0x15df   : > { %v3400_v45 = vadd.f32 %v3399_v43, %v3392_v13  ;;  %6278 = vmatmul.mubr.msk.bf16.vlgmr.msra.gmra.mrb[60].mxu0 %vm1412_vm1, %v7409_v42 }
0x15e0   : > { %6281 = vmatprep.mubr.msk.bf16.mxu0 %vm1412_vm1, %v7414_v44 }
0x15e1   : > { %v3401_v46 = vmul.f32 0.7978846, %v3400_v45 }
0x15e2   : > { %v5745_v27 = vld [vmem:[%s8641_s1] ss:$0 sm:$0xff]  ;;  %s8644_s1 = smov 116  }
0x15e3   : > { %6666 = vtanh.f32 %v3401_v46  ;;  %v6830_v46 = vld [vmem:[%s7254_s10] sm:$0xff]  ;;  %s8643_s10 = smov 120  }
0x15e7   : > { %6282 = vmatmul.mubr.msk.bf16.gmra.mrb[64].mxu0 %vm1412_vm1, %v7428_v50 }
0x15e8   : > { %6297 = vmatprep.mubr.msk.bf16.mxu0 %vm6947_vm0, %v6946_v1 }
0x15ed   : > { %v6667_v47 = vpop.eup %6666 }
0x15ee   : > { %v3403_v48 = vadd.f32 1.0, %v6667_v47 }
0x15f0   : > { %v3404_v49 = vmul.f32 0.5, %v3403_v48 }
0x15f2   : > { %v3405_v51 = vmul.f32 %v3404_v49, %v3392_v13 }
0x15f4   : > { %v3414_v52 = vpack.c.bf16 %v3405_v51, %v3405_v51 }
0x15f6   : > { %6270 = vmatmul.mubr.msk.bf16.vlgmr.msra.gmra.mrb[60].mxu1 %vm2378_vm7, %v3414_v52 }
0x15f7   : > { %6289 = vmatprep.mubr.msk.bf16.mxu1 %vm6947_vm0, %v6946_v1 }
0x1649   : > { %v3614_v2 = vpop.permute.xlu1 %3613 }
0x164a   : > { %6286 = vmatpush3.bf16.msra.mxu1 %v3614_v2 }
0x164b   : > { %6287 = vmatprep.subr.bf16.mxu1 %v6946_v1 }
0x164f   : > { %v3620_v49 = vpop.permute.xlu1 %3619 }
0x16a8   : > { %v3324_v54 = vpop.f32.mrb[56].mxu0 }
0x16a9   : > { %v6251_v55 = vpop.f32.mrb[57].mxu0  ;;  %v3325_v61 = vadd.f32 %v5729_v58, %v3324_v54 }
0x16aa   : > { %v3327_v19 = vpop.f32.mrb[58].mxu0 }
0x16ab   : > { %v6252_v10 = vpop.f32.mrb[59].mxu0 }
0x16b2   : > { %v6279_v6 = vpop.f32.mrb[60].mxu0 }
0x16b3   : > { %v3590_v11 = vadd.f32 %v6279_v6, %v7741_v5  ;;  %v3581_v12 = vpop.f32.mrb[61].mxu0 }
0x16b4   : > { %v3582_v14 = vadd.f32 %v7741_v5, %v3581_v12  ;;  %v6280_v15 = vpop.f32.mrb[62].mxu0 }
0x16b5   : > { %v3593_v16 = vadd.f32 %v6280_v15, %v7741_v5  ;;  %v3584_v17 = vpop.f32.mrb[63].mxu0 }
0x16b6   : > { %v3585_v20 = vadd.f32 %v7741_v5, %v3584_v17 }
0x16b7   : > { %v7749_v33 = vpack.c.bf16 %v3593_v16, %v3590_v11 }
0x16b8   : > { %v3718_v25 = vpack.c.bf16 %v3585_v20, %v3582_v14 }
0x16ba   : > { %v6283_v26 = vpop.f32.mrb[64].mxu0 }
0x16bb   : > { %v3606_v9 = vadd.f32 %v6283_v26, %v7741_v5  ;;  %v3597_v24 = vpop.f32.mrb[65].mxu0 }
0x16bc   : > { %v3598_v35 = vadd.f32 %v7741_v5, %v3597_v24  ;;  %v6284_v7 = vpop.f32.mrb[66].mxu0 }
0x16bd   : > { %v3609_v28 = vadd.f32 %v6284_v7, %v7741_v5  ;;  %v3600_v29 = vpop.f32.mrb[67].mxu0 }
0x16be   : > { %v3601_v31 = vadd.f32 %v7741_v5, %v3600_v29 }
0x16bf   : > { %v3721_v32 = vpack.c.bf16 %v3609_v28, %v3606_v9 }
0x16c0   : > { %v3720_v34 = vpack.c.bf16 %v3601_v31, %v3598_v35 }
0x16c9   : > { %v3483_v59 = vpop.f32.mrb[60].mxu1 }
0x16ca   : > { %v3484_v60 = vadd.f32 %v5739_v56, %v3483_v59  ;;  %v6271_v57 = vpop.f32.mrb[61].mxu1 }
0x16cb   : > { %v3486_v42 = vpop.f32.mrb[62].mxu1 }
0x16cc   : > { %v3489_v62 = vmul.f32 0.1, %v3484_v60  ;;  %v6272_v44 = vpop.f32.mrb[63].mxu1 }
0x16ce   : > { %v3490_v4 = vadd.f32 %v3489_v62, %v3325_v61 }
0x16d0   : > { %v3493_v50 = vsel %vm1412_vm1, %v3490_v4, 0.0  ;;  %v3497_v63 = vmul.f32 %v3490_v4, %v3490_v4 }
0x16d1   : > { %3494 = vadd.xlane.f32.xlu0 %v3493_v50 }
0x16d2   : > { %v3498_v0 = vsel %vm1412_vm1, %v3497_v63, 0.0 }
0x16d5   : > { %3499 = vadd.xlane.f32.xlu0 %v3498_v0 }
0x16eb   : > { %3615 = vrot.lane.b32.xlu0 %v7718_v53, %s8636_s21  ;;  %s8642_s21 = sld [smem:[#allocation21_spill]] }
0x16ef   : > { %3980 = vrot.lane.b32.xlu0 %v3718_v25, %s8640_s3 }
0x16f1   : > { %v5746_v41 = vld [vmem:[%s8642_s21] ss:$0 sm:$0xff]  ;;  %s8645_s21 = smov 96  }
0x16f3   : > { %3984 = vrot.lane.b32.xlu0 %v3720_v34, %s8640_s3 }
0x175e   : > { %v3495_v36 = vpop.xlane.xlu0 %3494 }
0x175f   : > { %v3496_v37 = vmul.f32 0.03125, %v3495_v36 }
0x1761   : > { %v3502_v8 = vmul.f32 %v3496_v37, %v3496_v37  ;;  %v3505_v22 = vsub.f32 %v3490_v4, %v3496_v37 }
0x1762   : > { %v3500_v38 = vpop.xlane.xlu0 %3499 }
0x1763   : > { %v3501_v21 = vmul.f32 0.03125, %v3500_v38 }
0x1765   : > { %v3503_v39 = vsub.f32 %v3501_v21, %v3502_v8 }
0x1766   : > { %v3616_v40 = vpop.permute.xlu0 %3615 }
0x1767   : > { %v3504_v3 = vmax.f32 %v3503_v39, 0.0  ;;  %6288 = vmatpush3.bf16.msra.mxu1 %v3616_v40 }
0x1769   : > { %v3506_v13 = vadd.f32 1e-05, %v3504_v3 }
0x176a   : > { %v3981_v58 = vpop.permute.xlu0 %3980 }
0x176b   : > { %6668 = vrsqrt.f32 %v3506_v13 }
0x176e   : > { %v3985_v59 = vpop.permute.xlu0 %3984 }
0x1775   : > { %v6669_v23 = vpop.eup %6668 }
0x1776   : > { %v3508_v30 = vmul.f32 %v6669_v23, %v3505_v22 }
0x1778   : > { %v3515_v43 = vmul.f32 %v5745_v27, %v3508_v30 }
0x177a   : > { %v7764_v45 = vadd.f32 %v5746_v41, %v3515_v43 }
0x177c   : > { %v3523_v47 = vadd.f32 %v6830_v46, %v7764_v45  ;;  %5460 = vst.msk [vmem:[%s1329_s5] sm:$0xff] %vm1412_vm1, %v7764_v45  ;;  %v3665_v16 = vpack.c.bf16 %v7764_v45, %v7764_v45 }
0x177e   : > { %v3612_v48 = vpack.c.bf16 %v3523_v47, %v3523_v47 }
0x1780   : > { %6290 = vmatmul.mubr.msk.bf16.vlgmr.msra.gmra.mrb[64].mxu1 %vm1412_vm1, %v3612_v48 }
0x1781   : > { %6303 = vmatprep.mubr.msk.bf16.mxu1 %vm2322_vm6, %v3718_v25 }
0x1853   : > { %v3659_v51 = vpop.f32.mrb[64].mxu1 }
0x1854   : > { %v3660_v52 = vadd.f32 %v3659_v51, %v3620_v49  ;;  %v6291_v54 = vpop.f32.mrb[65].mxu1 }
0x1855   : > { %v3662_v55 = vpop.f32.mrb[66].mxu1 }
0x1856   : > { %v3722_v19 = vpack.c.bf16 %v3660_v52, %v3660_v52  ;;  %v6292_v10 = vpop.f32.mrb[67].mxu1 }
0x1858   : > { %3989 = vrot.lane.b32.xlu1 %v3722_v19, %s8640_s3  ;;  %6425 = vmatprep.subr.msk.bf16.mxu1 %vm2322_vm6, %v3722_v19  ;;  %v3736_v56 = vsel %vm2322_vm6, %v3722_v19, 0 }
0x1859   : > { %4254 = vrot.lane.b32.xlu0 %v3722_v19, %s8643_s10  ;;  %6302 = vmatpush3.bf16.xpose.msra.mxu1 %v3736_v56 }
0x185c   : > { %3982 = vrot.lane.b32.xlu1 %v7749_v33, %s8640_s3 }
0x185d   : > { %4248 = vrot.lane.b32.xlu0 %v7749_v33, %s8643_s10 }
0x1860   : > { %3986 = vrot.lane.b32.xlu1 %v3721_v32, %s8640_s3  ;;  %6304 = vmatmul.mubr.msk.bf16.vlgmr.msra.gmra.mrb[68].mxu1 %vm2322_vm6, %v7749_v33 }
0x1861   : > { %4252 = vrot.lane.b32.xlu0 %v3721_v32, %s8643_s10  ;;  %6307 = vmatprep.mubr.msk.bf16.mxu1 %vm2322_vm6, %v3720_v34 }
0x1864   : > { %4246 = vrot.lane.b32.xlu1 %v3718_v25, %s8643_s10 }
0x1865   : > { %4510 = vrot.lane.b32.xlu0 %v3718_v25, %s8644_s1 }
0x1868   : > { %4250 = vrot.lane.b32.xlu1 %v3720_v34, %s8643_s10  ;;  %6308 = vmatmul.mubr.msk.bf16.gmra.mrb[72].mxu1 %vm2322_vm6, %v3721_v32 }
0x1869   : > { %4514 = vrot.lane.b32.xlu0 %v3720_v34, %s8644_s1  ;;  %6323 = vmatprep.mubr.msk.bf16.mxu1 %vm2322_vm6, %v3981_v58 }
0x186c   : > { %4518 = vrot.lane.b32.xlu1 %v3722_v19, %s8644_s1 }
0x186d   : > { %3666 = vrot.lane.b32.xlu0 %v7713_v18, %s8645_s21 }
0x1870   : > { %4512 = vrot.lane.b32.xlu1 %v7749_v33, %s8644_s1 }
0x1874   : > { %4516 = vrot.lane.b32.xlu1 %v3721_v32, %s8644_s1 }
0x1878   : > { %3668 = vrot.lane.b32.xlu1 %v7718_v53, %s8645_s21 }
0x18ca   : > { %v3990_v60 = vpop.permute.xlu1 %3989 }
0x18cb   : > { %v4004_v57 = vsel %vm2322_vm6, %v3990_v60, 0  ;;  %v4255_v42 = vpop.permute.xlu0 %4254  ;;  %6427 = vmatprep.subr.msk.bf16.mxu1 %vm2322_vm6, %v3990_v60 }
0x18cc   : > { %6322 = vmatpush3.bf16.xpose.msra.mxu1 %v4004_v57  ;;  %v4269_v4 = vsel %vm2322_vm6, %v4255_v42, 0 }
0x18cd   : > { %6429 = vmatprep.subr.msk.bf16.mxu1 %vm2322_vm6, %v4255_v42 }
0x18ce   : > { %v3983_v61 = vpop.permute.xlu1 %3982 }
0x18cf   : > { %v4249_v18 = vpop.permute.xlu0 %4248 }
0x18d2   : > { %v3987_v62 = vpop.permute.xlu1 %3986 }
0x18d3   : > { %v4253_v44 = vpop.permute.xlu0 %4252  ;;  %6324 = vmatmul.mubr.msk.bf16.vlgmr.msra.gmra.mrb[76].mxu1 %vm2322_vm6, %v3983_v61 }
0x18d4   : > { %6342 = vmatpush3.bf16.xpose.msra.mxu1 %v4269_v4  ;;  %6327 = vmatprep.mubr.msk.bf16.mxu1 %vm2322_vm6, %v3985_v59 }
0x18d6   : > { %v4247_v53 = vpop.permute.xlu1 %4246 }
0x18d7   : > { %v4511_v50 = vpop.permute.xlu0 %4510 }
0x18da   : > { %v4251_v63 = vpop.permute.xlu1 %4250 }
0x18db   : > { %v4515_v0 = vpop.permute.xlu0 %4514  ;;  %6328 = vmatmul.mubr.msk.bf16.gmra.mrb[80].mxu1 %vm2322_vm6, %v3987_v62 }
0x18dc   : > { %6343 = vmatprep.mubr.msk.bf16.mxu1 %vm2322_vm6, %v4247_v53 }
0x18de   : > { %v4519_v2 = vpop.permute.xlu1 %4518 }
0x18df   : > { %6431 = vmatprep.subr.msk.bf16.mxu1 %vm2322_vm6, %v4519_v2  ;;  %v3667_v6 = vpop.permute.xlu0 %3666  ;;  %v4533_v12 = vsel %vm2322_vm6, %v4519_v2, 0 }
0x18e0   : > { %6294 = vmatpush3.bf16.msra.mxu0 %v3667_v6 }
0x18e1   : > { %6295 = vmatprep.subr.bf16.mxu0 %v6946_v1 }
0x18e2   : > { %v4513_v11 = vpop.permute.xlu1 %4512 }
0x18e3   : > { %6344 = vmatmul.mubr.msk.bf16.vlgmr.msra.gmra.mrb[84].mxu1 %vm2322_vm6, %v4249_v18 }
0x18e4   : > { %6362 = vmatpush3.bf16.xpose.msra.mxu1 %v4533_v12  ;;  %6347 = vmatprep.mubr.msk.bf16.mxu1 %vm2322_vm6, %v4251_v63 }
0x18e6   : > { %v4517_v14 = vpop.permute.xlu1 %4516 }
0x18ea   : > { %v3669_v15 = vpop.permute.xlu1 %3668 }
0x18eb   : > { %6296 = vmatpush3.bf16.msra.mxu0 %v3669_v15  ;;  %6348 = vmatmul.mubr.msk.bf16.gmra.mrb[88].mxu1 %vm2322_vm6, %v4253_v44 }
0x18ec   : > { %6363 = vmatprep.mubr.msk.bf16.mxu1 %vm2322_vm6, %v4511_v50 }
0x18ee   : > { %6298 = vmatmul.mubr.msk.bf16.vlgmr.msra.gmra.mrb[68].mxu0 %vm1412_vm1, %v3665_v16 }
0x18f3   : > { %6364 = vmatmul.mubr.msk.bf16.vlgmr.msra.gmra.mrb[92].mxu1 %vm2322_vm6, %v4513_v11 }
0x18f4   : > { %6367 = vmatprep.mubr.msk.bf16.mxu1 %vm2322_vm6, %v4515_v0 }
0x18fb   : > { %6368 = vmatmul.mubr.msk.bf16.gmra.mrb[96].mxu1 %vm2322_vm6, %v4517_v14 }
0x1933   : > { %v7823_v1 = vpop.f32.mrb[68].mxu1 }
0x1934   : > { %v7825_v17 = vpop.f32.mrb[69].mxu1  ;;  %v3809_v20 = vsel %vm1513_vm2, %v7823_v1, -inf }
0x1935   : > { %3810 = vmax.xlane.f32.xlu0 %v3809_v20  ;;  %v7829_v33 = vpop.f32.mrb[70].mxu1  ;;  %v3803_v9 = vsel %vm1513_vm2, %v7825_v17, -inf }
0x1936   : > { %v7831_v25 = vpop.f32.mrb[71].mxu1  ;;  %v3812_v7 = vsel %vm1513_vm2, %v7829_v33, -inf }
0x1937   : > { %v3806_v26 = vsel %vm1513_vm2, %v7831_v25, -inf }
0x1938   : > { %3807 = vmax.xlane.f32.xlu1 %v3806_v26 }
0x1939   : > { %3804 = vmax.xlane.f32.xlu0 %v3803_v9 }
0x193b   : > { %v7837_v24 = vpop.f32.mrb[72].mxu1 }
0x193c   : > { %v7839_v35 = vpop.f32.mrb[73].mxu1  ;;  %v3821_v28 = vsel %vm1513_vm2, %v7837_v24, -inf }
0x193d   : > { %3813 = vmax.xlane.f32.xlu0 %v3812_v7  ;;  %3822 = vmax.xlane.f32.xlu1 %v3821_v28  ;;  %v7845_v29 = vpop.f32.mrb[74].mxu1  ;;  %v3815_v32 = vsel %vm1513_vm2, %v7839_v35, -inf }
0x193e   : > { %v7847_v31 = vpop.f32.mrb[75].mxu1  ;;  %v3824_v34 = vsel %vm1513_vm2, %v7845_v29, -inf }
0x193f   : > { %v3818_v36 = vsel %vm1513_vm2, %v7847_v31, -inf }
0x1941   : > { %3816 = vmax.xlane.f32.xlu1 %v3815_v32  ;;  %3825 = vmax.xlane.f32.xlu0 %v3824_v34 }
0x1945   : > { %3819 = vmax.xlane.f32.xlu0 %v3818_v36 }
0x19a6   : > { %v7855_v37 = vpop.f32.mrb[76].mxu1 }
0x19a7   : > { %v7857_v38 = vpop.f32.mrb[77].mxu1  ;;  %v4077_v8 = vsel %vm1513_vm2, %v7855_v37, -inf }
0x19a8   : > { %4078 = vmax.xlane.f32.xlu1 %v4077_v8  ;;  %v7861_v21 = vpop.f32.mrb[78].mxu1  ;;  %v4071_v3 = vsel %vm1513_vm2, %v7857_v38, -inf }
0x19a9   : > { %v7863_v39 = vpop.f32.mrb[79].mxu1  ;;  %v4080_v40 = vsel %vm1513_vm2, %v7861_v21, -inf }
0x19aa   : > { %4081 = vmax.xlane.f32.xlu0 %v4080_v40  ;;  %v4074_v13 = vsel %vm1513_vm2, %v7863_v39, -inf }
0x19ac   : > { %4072 = vmax.xlane.f32.xlu1 %v4071_v3 }
0x19ae   : > { %v7871_v22 = vpop.f32.mrb[80].mxu1  ;;  %4075 = vmax.xlane.f32.xlu0 %v4074_v13 }
0x19af   : > { %v7873_v23 = vpop.f32.mrb[81].mxu1  ;;  %v4089_v27 = vsel %vm1513_vm2, %v7871_v22, -inf }
0x19b0   : > { %4090 = vmax.xlane.f32.xlu1 %v4089_v27  ;;  %v7877_v30 = vpop.f32.mrb[82].mxu1  ;;  %v4083_v45 = vsel %vm1513_vm2, %v7873_v23, -inf }
0x19b1   : > { %v7879_v41 = vpop.f32.mrb[83].mxu1  ;;  %v4092_v43 = vsel %vm1513_vm2, %v7877_v30, -inf }
0x19b2   : > { %4093 = vmax.xlane.f32.xlu0 %v4092_v43  ;;  %v4086_v46 = vsel %vm1513_vm2, %v7879_v41, -inf }
0x19b4   : > { %4084 = vmax.xlane.f32.xlu1 %v4083_v45 }
0x19b6   : > { %v7887_v47 = vpop.f32.mrb[84].mxu1  ;;  %4087 = vmax.xlane.f32.xlu0 %v4086_v46 }
0x19b7   : > { %v7889_v48 = vpop.f32.mrb[85].mxu1  ;;  %v4342_v49 = vsel %vm1513_vm2, %v7887_v47, -inf }
0x19b8   : > { %4343 = vmax.xlane.f32.xlu1 %v4342_v49  ;;  %v7893_v51 = vpop.f32.mrb[86].mxu1  ;;  %v4336_v55 = vsel %vm1513_vm2, %v7889_v48, -inf }
0x19b9   : > { %v7895_v52 = vpop.f32.mrb[87].mxu1  ;;  %v4345_v54 = vsel %vm1513_vm2, %v7893_v51, -inf }
0x19ba   : > { %4346 = vmax.xlane.f32.xlu0 %v4345_v54  ;;  %v4339_v19 = vsel %vm1513_vm2, %v7895_v52, -inf }
0x19bc   : > { %4337 = vmax.xlane.f32.xlu1 %v4336_v55 }
0x19be   : > { %v7903_v10 = vpop.f32.mrb[88].mxu1  ;;  %4340 = vmax.xlane.f32.xlu0 %v4339_v19 }
0x19bf   : > { %v7905_v56 = vpop.f32.mrb[89].mxu1  ;;  %v4354_v58 = vsel %vm1513_vm2, %v7903_v10, -inf }
0x19c0   : > { %4355 = vmax.xlane.f32.xlu1 %v4354_v58  ;;  %v7909_v59 = vpop.f32.mrb[90].mxu1  ;;  %v4348_v44 = vsel %vm1513_vm2, %v7905_v56, -inf }
0x19c1   : > { %v7911_v60 = vpop.f32.mrb[68].mxu0  ;;  %v7913_v57 = vpop.f32.mrb[91].mxu1  ;;  %v4357_v42 = vsel %vm1513_vm2, %v7909_v59, -inf }
0x19c2   : > { %v6299_v61 = vpop.f32.mrb[69].mxu0  ;;  %v3811_v18 = vpop.xlane.xlu0 %3810  ;;  %4358 = vmax.xlane.f32.xlu0 %v4357_v42  ;;  %v4351_v50 = vsel %vm1513_vm2, %v7913_v57, -inf }
0x19c3   : > { %v3715_v62 = vpop.f32.mrb[70].mxu0  ;;  %v3829_v53 = vsub.f32 %v7823_v1, %v3811_v18 }
0x19c4   : > { %v6300_v4 = vpop.f32.mrb[71].mxu0  ;;  %4349 = vmax.xlane.f32.xlu1 %v4348_v44 }
0x19c5   : > { %v3839_v12 = vmul.f32 1.442695, %v3829_v53  ;;  %v3808_v26 = vpop.xlane.xlu1 %3807 }
0x19c6   : > { %v3805_v63 = vpop.xlane.xlu0 %3804  ;;  %v7922_v0 = vpop.f32.mrb[92].mxu1  ;;  %4352 = vmax.xlane.f32.xlu0 %v4351_v50  ;;  %v3828_v36 = vsub.f32 %v7831_v25, %v3808_v26 }
0x19c7   : > { %v7924_v2 = vpop.f32.mrb[93].mxu1  ;;  %v4606_v6 = vsel %vm1513_vm2, %v7922_v0, -inf  ;;  %v3827_v14 = vsub.f32 %v7825_v17, %v3805_v63  ;;  %6670 = vpow2.f32 %v3839_v12 }
0x19c8   : > { %4607 = vmax.xlane.f32.xlu1 %v4606_v6  ;;  %v7928_v11 = vpop.f32.mrb[94].mxu1  ;;  %v4600_v20 = vsel %vm1513_vm2, %v7924_v2, -inf  ;;  %v3837_v45 = vmul.f32 1.442695, %v3828_v36 }
0x19c9   : > { %v7931_v15 = vpop.f32.mrb[95].mxu1  ;;  %v4609_v16 = vsel %vm1513_vm2, %v7928_v11, -inf  ;;  %v3835_v9 = vmul.f32 1.442695, %v3827_v14 }
0x19ca   : > { %v3814_v1 = vpop.xlane.xlu0 %3813  ;;  %4610 = vmax.xlane.f32.xlu0 %v4609_v16  ;;  %v4603_v28 = vsel %vm1513_vm2, %v7931_v15, -inf  ;;  %v3823_v3 = vpop.xlane.xlu1 %3822 }
0x19cb   : > { %v3830_v7 = vsub.f32 %v7829_v33, %v3814_v1  ;;  %6672 = vpow2.f32 %v3835_v9  ;;  %v3833_v25 = vsub.f32 %v7837_v24, %v3823_v3 }
0x19cc   : > { %4601 = vmax.xlane.f32.xlu1 %v4600_v20 }
0x19cd   : > { %v3841_v8 = vmul.f32 1.442695, %v3830_v7  ;;  %v3847_v54 = vmul.f32 1.442695, %v3833_v25 }
0x19ce   : > { %4604 = vmax.xlane.f32.xlu0 %v4603_v28  ;;  %v7940_v17 = vpop.f32.mrb[96].mxu1  ;;  %v3826_v27 = vpop.xlane.xlu0 %3825 }
0x19cf   : > { %v7942_v32 = vpop.f32.mrb[97].mxu1  ;;  %v4618_v34 = vsel %vm1513_vm2, %v7940_v17, -inf  ;;  %6674 = vpow2.f32 %v3841_v8  ;;  %v3834_v55 = vsub.f32 %v7845_v29, %v3826_v27  ;;  %v3817_v14 = vpop.xlane.xlu1 %3816 }
0x19d0   : > { %4619 = vmax.xlane.f32.xlu1 %v4618_v34  ;;  %v7947_v40 = vpop.f32.mrb[98].mxu1  ;;  %v4612_v43 = vsel %vm1513_vm2, %v7942_v32, -inf  ;;  %6676 = vpow2.f32 %v3837_v45  ;;  %v3831_v16 = vsub.f32 %v7839_v35, %v3817_v14 }
0x19d1   : > { %v7949_v33 = vpop.f32.mrb[99].mxu1  ;;  %v4621_v13 = vsel %vm1513_vm2, %v7947_v40, -inf  ;;  %v7958_v49 = vpop.eup %6670  ;;  %6678 = vpow2.f32 %v3847_v54  ;;  %v3849_v24 = vmul.f32 1.442695, %v3834_v55 }
0x19d2   : > { %4622 = vmax.xlane.f32.xlu0 %v4621_v13  ;;  %v4615_v46 = vsel %vm1513_vm2, %v7949_v33, -inf  ;;  %v3820_v19 = vpop.xlane.xlu0 %3819  ;;  %v3857_v58 = vsel %vm1513_vm2, %v7958_v49, 0.0  ;;  %v3843_v1 = vmul.f32 1.442695, %v3831_v16 }
0x19d3   : > { %v3832_v61 = vsub.f32 %v7847_v31, %v3820_v19  ;;  %6680 = vpow2.f32 %v3849_v24 }
0x19d4   : > { %4613 = vmax.xlane.f32.xlu1 %v4612_v43 }
0x19d5   : > { %v7963_v42 = vpop.eup %6672  ;;  %v3845_v44 = vmul.f32 1.442695, %v3832_v61 }
0x19d6   : > { %4616 = vmax.xlane.f32.xlu0 %v4615_v46  ;;  %v3851_v18 = vsel %vm1513_vm2, %v7963_v42, 0.0 }
0x19d7   : > { %6682 = vpow2.f32 %v3845_v44 }
0x19d8   : > { %6684 = vpow2.f32 %v3843_v1 }
0x19d9   : > { %v7968_v62 = vpop.eup %6674 }
0x19da   : > { %3858 = vadd.xlane.f32.xlu0 %v3857_v58  ;;  %v3860_v29 = vsel %vm1513_vm2, %v7968_v62, 0.0  ;;  %v7972_v4 = vpop.eup %6676 }
0x19db   : > { %v3854_v31 = vsel %vm1513_vm2, %v7972_v4, 0.0  ;;  %v7978_v53 = vpop.eup %6678 }
0x19dc   : > { %v3869_v50 = vsel %vm1513_vm2, %v7978_v53, 0.0 }
0x19dd   : > { %v7982_v63 = vpop.eup %6680 }
0x19de   : > { %3852 = vadd.xlane.f32.xlu0 %v3851_v18  ;;  %v3872_v6 = vsel %vm1513_vm2, %v7982_v63, 0.0 }
0x19e1   : > { %v7986_v12 = vpop.eup %6682 }
0x19e2   : > { %3861 = vadd.xlane.f32.xlu0 %v3860_v29  ;;  %v7991_v20 = vpop.eup %6684 }
0x19e3   : > { %v3863_v26 = vsel %vm1513_vm2, %v7991_v20, 0.0 }
0x19e5   : > { %3672 = vrot.lane.b32.xlu1 %v7741_v5, %s8645_s21  ;;  %v3866_v5 = vsel %vm1513_vm2, %v7986_v12, 0.0  ;;  %s8649_s21 = smov 12  }
0x19e6   : > { %3855 = vadd.xlane.f32.xlu0 %v3854_v31 }
0x19ea   : > { %3870 = vadd.xlane.f32.xlu0 %v3869_v50 }
0x19ee   : > { %3873 = vadd.xlane.f32.xlu0 %v3872_v6 }
0x19f2   : > { %3867 = vadd.xlane.f32.xlu0 %v3866_v5 }
0x1a09   : > { %3864 = vadd.xlane.f32.xlu1 %v3863_v26 }
0x1a35   : > { %v4079_v9 = vpop.xlane.xlu1 %4078 }
0x1a36   : > { %v4097_v7 = vsub.f32 %v7855_v37, %v4079_v9 }
0x1a37   : > { %v4082_v28 = vpop.xlane.xlu0 %4081 }
0x1a38   : > { %v4107_v34 = vmul.f32 1.442695, %v4097_v7  ;;  %v4098_v36 = vsub.f32 %v7861_v21, %v4082_v28 }
0x1a39   : > { %v4073_v8 = vpop.xlane.xlu1 %4072 }
0x1a3a   : > { %6686 = vpow2.f32 %v4107_v34  ;;  %v4095_v3 = vsub.f32 %v7857_v38, %v4073_v8  ;;  %v4109_v13 = vmul.f32 1.442695, %v4098_v36 }
0x1a3b   : > { %v4076_v35 = vpop.xlane.xlu0 %4075 }
0x1a3c   : > { %v4103_v27 = vmul.f32 1.442695, %v4095_v3  ;;  %v4096_v43 = vsub.f32 %v7863_v39, %v4076_v35 }
0x1a3d   : > { %v4091_v45 = vpop.xlane.xlu1 %4090 }
0x1a3e   : > { %6688 = vpow2.f32 %v4103_v27  ;;  %v4101_v25 = vsub.f32 %v7871_v22, %v4091_v45  ;;  %v4105_v37 = vmul.f32 1.442695, %v4096_v43 }
0x1a3f   : > { %v4094_v46 = vpop.xlane.xlu0 %4093  ;;  %6690 = vpow2.f32 %v4109_v13 }
0x1a40   : > { %v4115_v54 = vmul.f32 1.442695, %v4101_v25  ;;  %v4102_v38 = vsub.f32 %v7877_v30, %v4094_v46 }
0x1a41   : > { %v4085_v55 = vpop.xlane.xlu1 %4084 }
0x1a42   : > { %6692 = vpow2.f32 %v4115_v54  ;;  %v4099_v21 = vsub.f32 %v7873_v23, %v4085_v55  ;;  %v4117_v29 = vmul.f32 1.442695, %v4102_v38 }
0x1a43   : > { %v4088_v19 = vpop.xlane.xlu0 %4087  ;;  %6694 = vpow2.f32 %v4105_v37 }
0x1a44   : > { %v8001_v58 = vpop.eup %6686  ;;  %v4111_v24 = vmul.f32 1.442695, %v4099_v21  ;;  %v4100_v23 = vsub.f32 %v7879_v41, %v4088_v19 }
0x1a45   : > { %v4344_v39 = vpop.xlane.xlu1 %4343  ;;  %v4125_v61 = vsel %vm1513_vm2, %v8001_v58, 0.0 }
0x1a46   : > { %v4362_v22 = vsub.f32 %v7887_v47, %v4344_v39  ;;  %4126 = vadd.xlane.f32.xlu0 %v4125_v61  ;;  %6696 = vpow2.f32 %v4111_v24  ;;  %v4113_v16 = vmul.f32 1.442695, %v4100_v23 }
0x1a47   : > { %v4347_v18 = vpop.xlane.xlu0 %4346 }
0x1a48   : > { %v8007_v44 = vpop.eup %6688  ;;  %v4372_v31 = vmul.f32 1.442695, %v4362_v22  ;;  %v4363_v1 = vsub.f32 %v7893_v51, %v4347_v18 }
0x1a49   : > { %v4338_v50 = vpop.xlane.xlu1 %4337  ;;  %v4119_v30 = vsel %vm1513_vm2, %v8007_v44, 0.0  ;;  %v8012_v6 = vpop.eup %6690 }
0x1a4a   : > { %6698 = vpow2.f32 %v4372_v31  ;;  %v4360_v14 = vsub.f32 %v7889_v48, %v4338_v50  ;;  %4120 = vadd.xlane.f32.xlu0 %v4119_v30  ;;  %v4128_v7 = vsel %vm1513_vm2, %v8012_v6, 0.0  ;;  %v4374_v36 = vmul.f32 1.442695, %v4363_v1 }
0x1a4b   : > { %v4341_v47 = vpop.xlane.xlu0 %4340  ;;  %6700 = vpow2.f32 %v4117_v29 }
0x1a4c   : > { %v8015_v5 = vpop.eup %6692  ;;  %v4368_v26 = vmul.f32 1.442695, %v4360_v14  ;;  %v4361_v51 = vsub.f32 %v7895_v52, %v4341_v47 }
0x1a4d   : > { %v4356_v41 = vpop.xlane.xlu1 %4355  ;;  %v4137_v9 = vsel %vm1513_vm2, %v8015_v5, 0.0  ;;  %v8022_v28 = vpop.eup %6694 }
0x1a4e   : > { %6702 = vpow2.f32 %v4368_v26  ;;  %v4366_v48 = vsub.f32 %v7903_v10, %v4356_v41  ;;  %4138 = vadd.xlane.f32.xlu1 %v4137_v9  ;;  %4129 = vadd.xlane.f32.xlu0 %v4128_v7  ;;  %v4122_v35 = vsel %vm1513_vm2, %v8022_v28, 0.0  ;;  %v4370_v45 = vmul.f32 1.442695, %v4361_v51 }
0x1a4f   : > { %v4359_v34 = vpop.xlane.xlu0 %4358  ;;  %6704 = vpow2.f32 %v4113_v16 }
0x1a50   : > { %v4380_v8 = vmul.f32 1.442695, %v4366_v48  ;;  %v8028_v13 = vpop.eup %6696  ;;  %v4367_v25 = vsub.f32 %v7909_v59, %v4359_v34 }
0x1a51   : > { %v4350_v3 = vpop.xlane.xlu1 %4349  ;;  %v4131_v54 = vsel %vm1513_vm2, %v8028_v13, 0.0 }
0x1a52   : > { %6706 = vpow2.f32 %v4380_v8  ;;  %v4364_v27 = vsub.f32 %v7905_v56, %v4350_v3  ;;  %4123 = vadd.xlane.f32.xlu0 %v4122_v35  ;;  %v4382_v19 = vmul.f32 1.442695, %v4367_v25 }
0x1a53   : > { %v4353_v43 = vpop.xlane.xlu0 %4352  ;;  %6708 = vpow2.f32 %v4374_v36 }
0x1a54   : > { %v8031_v10 = vpop.eup %6698  ;;  %v4376_v46 = vmul.f32 1.442695, %v4364_v27  ;;  %v4365_v59 = vsub.f32 %v7913_v57, %v4353_v43 }
0x1a55   : > { %v4608_v52 = vpop.xlane.xlu1 %4607  ;;  %v4390_v37 = vsel %vm1513_vm2, %v8031_v10, 0.0  ;;  %v8038_v55 = vpop.eup %6700 }
0x1a56   : > { %6710 = vpow2.f32 %v4376_v46  ;;  %4391 = vadd.xlane.f32.xlu1 %v4390_v37  ;;  %4132 = vadd.xlane.f32.xlu0 %v4131_v54  ;;  %v4140_v39 = vsel %vm1513_vm2, %v8038_v55, 0.0  ;;  %v4378_v29 = vmul.f32 1.442695, %v4365_v59  ;;  %v4626_v23 = vsub.f32 %v7922_v0, %v4608_v52 }
0x1a57   : > { %v4611_v56 = vpop.xlane.xlu0 %4610  ;;  %6712 = vpow2.f32 %v4370_v45 }
0x1a58   : > { %v8040_v21 = vpop.eup %6702  ;;  %6714 = vpow2.f32 %v4382_v19  ;;  %v4636_v47 = vmul.f32 1.442695, %v4626_v23 }
0x1a59   : > { %v4602_v38 = vpop.xlane.xlu1 %4601  ;;  %v4384_v24 = vsel %vm1513_vm2, %v8040_v21, 0.0  ;;  %v8047_v61 = vpop.eup %6704  ;;  %6716 = vpow2.f32 %v4378_v29 }
0x1a5a   : > { %4385 = vadd.xlane.f32.xlu1 %v4384_v24  ;;  %4141 = vadd.xlane.f32.xlu0 %v4140_v39  ;;  %v4134_v31 = vsel %vm1513_vm2, %v8047_v61, 0.0  ;;  %v4624_v16 = vsub.f32 %v7924_v2, %v4602_v38  ;;  %6718 = vpow2.f32 %v4636_v47  ;;  %v4627_v2 = vsub.f32 %v7928_v11, %v4611_v56 }
0x1a5b   : > { %v4605_v22 = vpop.xlane.xlu0 %4604 }
0x1a5c   : > { %v8049_v18 = vpop.eup %6706  ;;  %v4632_v48 = vmul.f32 1.442695, %v4624_v16  ;;  %v4638_v27 = vmul.f32 1.442695, %v4627_v2  ;;  %v4625_v43 = vsub.f32 %v7931_v15, %v4605_v22 }
0x1a5d   : > { %v4402_v57 = vsel %vm1513_vm2, %v8049_v18, 0.0  ;;  %v8056_v50 = vpop.eup %6708  ;;  %v4620_v30 = vpop.xlane.xlu1 %4619 }
0x1a5e   : > { %4403 = vadd.xlane.f32.xlu1 %v4402_v57  ;;  %4135 = vadd.xlane.f32.xlu0 %v4134_v31  ;;  %v4393_v41 = vsel %vm1513_vm2, %v8056_v50, 0.0  ;;  %6720 = vpow2.f32 %v4632_v48  ;;  %v4630_v45 = vsub.f32 %v7940_v17, %v4620_v30  ;;  %v4634_v37 = vmul.f32 1.442695, %v4625_v43 }
0x1a5f   : > { %v8061_v1 = vpop.xlane.xlu0 %4622  ;;  %6722 = vpow2.f32 %v4638_v27 }
0x1a60   : > { %v8058_v14 = vpop.eup %6710  ;;  %v4631_v0 = vsub.f32 %v7947_v40, %v8061_v1  ;;  %v4644_v54 = vmul.f32 1.442695, %v4630_v45  ;;  %6724 = vpow2.f32 %v4634_v37 }
0x1a61   : > { %v4396_v26 = vsel %vm1513_vm2, %v8058_v14, 0.0  ;;  %v8069_v9 = vpop.eup %6712  ;;  %v8071_v7 = vpop.xlane.xlu1 %4613 }
0x1a62   : > { %4397 = vadd.xlane.f32.xlu1 %v4396_v26  ;;  %4394 = vadd.xlane.f32.xlu0 %v4393_v41  ;;  %v4387_v51 = vsel %vm1513_vm2, %v8069_v9, 0.0  ;;  %v8080_v8 = vpop.eup %6714  ;;  %6726 = vpow2.f32 %v4644_v54 }
0x1a63   : > { %v8074_v34 = vpop.xlane.xlu0 %4616  ;;  %v4405_v46 = vsel %vm1513_vm2, %v8080_v8, 0.0  ;;  %v8089_v52 = vpop.eup %6716 }
0x1a64   : > { %v4629_v36 = vsub.f32 %v7949_v33, %v8074_v34  ;;  %v4399_v17 = vsel %vm1513_vm2, %v8089_v52, 0.0  ;;  %v8097_v56 = vpop.eup %6718 }
0x1a65   : > { %v3673_v3 = vpop.permute.xlu1 %3672  ;;  %v4654_v59 = vsel %vm1513_vm2, %v8097_v56, 0.0 }
0x1a66   : > { %4388 = vadd.xlane.f32.xlu0 %v4387_v51  ;;  %v3713_v35 = vadd.f32 %v7911_v60, %v3673_v3  ;;  %v4628_v51 = vsub.f32 %v7942_v32, %v8071_v7 }
0x1a67   : > { %v3859_v11 = vpop.xlane.xlu0 %3858 }
0x1a68   : > { %v8085_v25 = vpack.c.bf16 %v3713_v35, %v3713_v35  ;;  %v8101_v38 = vpop.eup %6720 }
0x1a69   : > { %v4648_v39 = vsel %vm1513_vm2, %v8101_v38, 0.0  ;;  %v8107_v22 = vpop.eup %6722 }
0x1a6a   : > { %4406 = vadd.xlane.f32.xlu0 %v4405_v46  ;;  %6426 = vmatprep.subr.msk.bf16.mxu0 %vm1576_vm3, %v8085_v25  ;;  %v3909_v60 = vsel %vm1576_vm3, %v8085_v25, 0  ;;  %v4657_v29 = vsel %vm1513_vm2, %v8107_v22, 0.0  ;;  %v8111_v23 = vpop.eup %6724 }
0x1a6b   : > { %6312 = vmatpush3.bf16.msra.mxu0 %v3909_v60  ;;  %v3853_v15 = vpop.xlane.xlu0 %3852  ;;  %v4651_v47 = vsel %vm1513_vm2, %v8111_v23, 0.0 }
0x1a6c   : > { %v8113_v57 = vpop.eup %6726 }
0x1a6d   : > { %v4666_v35 = vsel %vm1513_vm2, %v8113_v57, 0.0 }
0x1a6e   : > { %4400 = vadd.xlane.f32.xlu0 %v4399_v17 }
0x1a6f   : > { %v3862_v19 = vpop.xlane.xlu0 %3861 }
0x1a70   : > { %6728 = vrcp.f32 %v3862_v19 }
0x1a71   : > { %6730 = vrcp.f32 %v3853_v15 }
0x1a72   : > { %4655 = vadd.xlane.f32.xlu0 %v4654_v59  ;;  %6732 = vrcp.f32 %v3859_v11  ;;  %v4640_v11 = vmul.f32 1.442695, %v4628_v51  ;;  %v4646_v59 = vmul.f32 1.442695, %v4631_v0 }
0x1a73   : > { %4164 = vrot.lane.b32.xlu1 %v8085_v25, %s8640_s3  ;;  %v3856_v24 = vpop.xlane.xlu0 %3855  ;;  %s8646_s3 = smov 4  }
0x1a74   : > { %6734 = vrcp.f32 %v3856_v24 }
0x1a75   : > { %6736 = vpow2.f32 %v4640_v11 }
0x1a76   : > { %4649 = vadd.xlane.f32.xlu0 %v4648_v39 }
0x1a7a   : > { %4658 = vadd.xlane.f32.xlu0 %v4657_v29  ;;  %v6729_v31 = vpop.eup %6728 }
0x1a7b   : > { %v6731_v30 = vpop.eup %6730  ;;  %v3886_v41 = vmul.f32 %v6729_v31, %v7968_v62  ;;  %v3871_v62 = vpop.xlane.xlu0 %3870 }
0x1a7c   : > { %v6733_v16 = vpop.eup %6732  ;;  %v3883_v2 = vmul.f32 %v6731_v30, %v7963_v42 }
0x1a7d   : > { %v3885_v3 = vmul.f32 %v6733_v16, %v7958_v49 }
0x1a7e   : > { %4652 = vadd.xlane.f32.xlu0 %v4651_v47  ;;  %v6735_v26 = vpop.eup %6734 }
0x1a7f   : > { %v3884_v48 = vmul.f32 %v6735_v26, %v7972_v4  ;;  %v3892_v43 = vpack.c.bf16 %v3886_v41, %v3885_v3  ;;  %v3874_v42 = vpop.xlane.xlu0 %3873  ;;  %v8127_v4 = vpop.eup %6736 }
0x1a80   : > { %6738 = vrcp.f32 %v3874_v42  ;;  %v4660_v32 = vsel %vm1513_vm2, %v8127_v4, 0.0 }
0x1a81   : > { %v3891_v27 = vpack.c.bf16 %v3884_v48, %v3883_v2 }
0x1a82   : > { %4667 = vadd.xlane.f32.xlu0 %v4666_v35 }
0x1a83   : > { %6313 = vmatprep.mubr.msk.bf16.mxu0 %vm1513_vm2, %v3891_v27  ;;  %v3868_v45 = vpop.xlane.xlu0 %3867 }
0x1a84   : > { %6314 = vmatmul.mubr.msk.bf16.vlgmr.msra.gmra.mrb[72].mxu0 %vm1513_vm2, %v3892_v43  ;;  %6740 = vrcp.f32 %v3868_v45 }
0x1a85   : > { %6742 = vrcp.f32 %v3871_v62 }
0x1a8a   : > { %v6739_v7 = vpop.eup %6738 }
0x1a8b   : > { %v3890_v15 = vmul.f32 %v6739_v7, %v7982_v63  ;;  %v4642_v63 = vmul.f32 1.442695, %v4629_v36 }
0x1a8e   : > { %v6741_v46 = vpop.eup %6740 }
0x1a8f   : > { %v6743_v60 = vpop.eup %6742  ;;  %v3888_v17 = vmul.f32 %v6741_v46, %v7986_v12 }
0x1a90   : > { %v3889_v19 = vmul.f32 %v6743_v60, %v7978_v53 }
0x1a92   : > { %v3894_v39 = vpack.c.bf16 %v3890_v15, %v3889_v19 }
0x1a96   : > { %v3865_v49 = vpop.xlane.xlu1 %3864 }
0x1a97   : > { %4661 = vadd.xlane.f32.xlu1 %v4660_v32  ;;  %6744 = vrcp.f32 %v3865_v49 }
0x1a98   : > { %4428 = vrot.lane.b32.xlu0 %v8085_v25, %s8643_s10  ;;  %6746 = vpow2.f32 %v4646_v59  ;;  %s8647_s10 = sld [smem:[#allocation15_spill]] }
0x1a99   : > { %6748 = vpow2.f32 %v4642_v63 }
0x1aa1   : > { %v6745_v37 = vpop.eup %6744 }
0x1aa2   : > { %v3887_v54 = vmul.f32 %v6745_v37, %v7991_v20  ;;  %v8145_v20 = vpop.eup %6746 }
0x1aa3   : > { %v4669_v53 = vsel %vm1513_vm2, %v8145_v20, 0.0  ;;  %v8149_v12 = vpop.eup %6748 }
0x1aa4   : > { %v3893_v24 = vpack.c.bf16 %v3888_v17, %v3887_v54  ;;  %v4663_v40 = vsel %vm1513_vm2, %v8149_v12, 0.0 }
0x1aa6   : > { %6317 = vmatprep.mubr.msk.bf16.mxu0 %vm1513_vm2, %v3893_v24 }
0x1aa7   : > { %6318 = vmatmul.mubr.msk.bf16.gmra.mrb[76].mxu0 %vm1513_vm2, %v3894_v39 }
0x1ab7   : > { %4670 = vadd.xlane.f32.xlu0 %v4669_v53 }
0x1abb   : > { %4664 = vadd.xlane.f32.xlu0 %v4663_v40 }
0x1ad1   : > { %4692 = vrot.lane.b32.xlu0 %v8085_v25, %s8644_s1  ;;  %s8648_s1 = smov 8  }
0x1ad3   : > { %v4127_v1 = vpop.xlane.xlu0 %4126 }
0x1ad7   : > { %v4121_v0 = vpop.xlane.xlu0 %4120 }
0x1ad8   : > { %6750 = vrcp.f32 %v4121_v0 }
0x1adb   : > { %v4130_v33 = vpop.xlane.xlu0 %4129  ;;  %v4139_v34 = vpop.xlane.xlu1 %4138 }
0x1adf   : > { %v4124_v36 = vpop.xlane.xlu0 %4123 }
0x1ae0   : > { %6752 = vrcp.f32 %v4124_v36 }
0x1ae1   : > { %6754 = vrcp.f32 %v4130_v33 }
0x1ae2   : > { %6756 = vrcp.f32 %v4127_v1  ;;  %v6751_v16 = vpop.eup %6750 }
0x1ae3   : > { %v4392_v29 = vpop.xlane.xlu1 %4391  ;;  %v4133_v31 = vpop.xlane.xlu0 %4132  ;;  %v4151_v25 = vmul.f32 %v6751_v16, %v8007_v44 }
0x1ae4   : > { %6758 = vrcp.f32 %v4133_v31 }
0x1ae7   : > { %v4386_v30 = vpop.xlane.xlu1 %4385  ;;  %v4142_v47 = vpop.xlane.xlu0 %4141 }
0x1ae8   : > { %6760 = vrcp.f32 %v4142_v47 }
0x1aea   : > { %v6753_v26 = vpop.eup %6752 }
0x1aeb   : > { %v4404_v41 = vpop.xlane.xlu1 %4403  ;;  %v4136_v2 = vpop.xlane.xlu0 %4135  ;;  %v4152_v48 = vmul.f32 %v6753_v26, %v8022_v28 }
0x1aec   : > { %6762 = vrcp.f32 %v4136_v2  ;;  %v6755_v3 = vpop.eup %6754 }
0x1aed   : > { %v4159_v51 = vpack.c.bf16 %v4152_v48, %v4151_v25  ;;  %6764 = vrcp.f32 %v4139_v34  ;;  %v6757_v43 = vpop.eup %6756  ;;  %v4154_v11 = vmul.f32 %v6755_v3, %v8012_v6 }
0x1aee   : > { %6766 = vrcp.f32 %v4386_v30  ;;  %v4153_v45 = vmul.f32 %v6757_v43, %v8001_v58  ;;  %v6759_v28 = vpop.eup %6758 }
0x1aef   : > { %v4398_v35 = vpop.xlane.xlu1 %4397  ;;  %6333 = vmatprep.mubr.msk.bf16.mxu0 %vm1513_vm2, %v4159_v51  ;;  %v4395_v27 = vpop.xlane.xlu0 %4394  ;;  %v4155_v6 = vmul.f32 %v6759_v28, %v8028_v13 }
0x1af0   : > { %v4160_v49 = vpack.c.bf16 %v4154_v11, %v4153_v45 }
0x1af2   : > { %v6761_v32 = vpop.eup %6760 }
0x1af3   : > { %v4165_v62 = vpop.permute.xlu1 %4164  ;;  %v4389_v42 = vpop.xlane.xlu0 %4388  ;;  %v4158_v58 = vmul.f32 %v6761_v32, %v8038_v55 }
0x1af4   : > { %v4179_v44 = vsel %vm1576_vm3, %v4165_v62, 0  ;;  %6768 = vrcp.f32 %v4389_v42  ;;  %6428 = vmatprep.subr.msk.bf16.mxu0 %vm1576_vm3, %v4165_v62 }
0x1af5   : > { %6332 = vmatpush3.bf16.msra.mxu0 %v4179_v44  ;;  %6770 = vrcp.f32 %v4395_v27 }
0x1af6   : > { %v6763_v7 = vpop.eup %6762 }
0x1af7   : > { %v4407_v46 = vpop.xlane.xlu0 %4406  ;;  %v4156_v60 = vmul.f32 %v6763_v7, %v8047_v61  ;;  %v6765_v37 = vpop.eup %6764 }
0x1af8   : > { %6334 = vmatmul.mubr.msk.bf16.vlgmr.msra.gmra.mrb[80].mxu0 %vm1513_vm2, %v4160_v49  ;;  %v6767_v17 = vpop.eup %6766  ;;  %v4157_v19 = vmul.f32 %v6765_v37, %v8015_v5 }
0x1af9   : > { %v4161_v15 = vpack.c.bf16 %v4156_v60, %v4155_v6  ;;  %v4416_v63 = vmul.f32 %v6767_v17, %v8040_v21 }
0x1afa   : > { %v4162_v24 = vpack.c.bf16 %v4158_v58, %v4157_v19 }
0x1afb   : > { %v4401_v54 = vpop.xlane.xlu0 %4400  ;;  %6337 = vmatprep.mubr.msk.bf16.mxu0 %vm1513_vm2, %v4161_v15 }
0x1afc   : > { %6772 = vrcp.f32 %v4401_v54 }
0x1afd   : > { %6774 = vrcp.f32 %v4392_v29 }
0x1afe   : > { %v6769_v59 = vpop.eup %6768  ;;  %6776 = vrcp.f32 %v4398_v35 }
0x1aff   : > { %v4656_v39 = vpop.xlane.xlu0 %4655  ;;  %v4417_v53 = vmul.f32 %v6769_v59, %v8069_v9  ;;  %6778 = vrcp.f32 %v4407_v46  ;;  %v6771_v5 = vpop.eup %6770 }
0x1b00   : > { %6338 = vmatmul.mubr.msk.bf16.gmra.mrb[84].mxu0 %vm1513_vm2, %v4162_v24  ;;  %v4419_v33 = vmul.f32 %v6771_v5, %v8056_v50 }
0x1b01   : > { %v4424_v13 = vpack.c.bf16 %v4417_v53, %v4416_v63 }
0x1b03   : > { %6353 = vmatprep.mubr.msk.bf16.mxu0 %vm1513_vm2, %v4424_v13  ;;  %v4650_v61 = vpop.xlane.xlu0 %4649 }
0x1b06   : > { %v6773_v21 = vpop.eup %6772 }
0x1b07   : > { %v4659_v55 = vpop.xlane.xlu0 %4658  ;;  %v6775_v9 = vpop.eup %6774  ;;  %v4421_v36 = vmul.f32 %v6773_v21, %v8089_v52 }
0x1b08   : > { %v6777_v0 = vpop.eup %6776  ;;  %v4418_v31 = vmul.f32 %v6775_v9, %v8031_v10 }
0x1b09   : > { %v4420_v30 = vmul.f32 %v6777_v0, %v8058_v14  ;;  %v6779_v16 = vpop.eup %6778 }
0x1b0a   : > { %v4425_v47 = vpack.c.bf16 %v4419_v33, %v4418_v31  ;;  %v4423_v52 = vmul.f32 %v6779_v16, %v8080_v8 }
0x1b0b   : > { %v4653_v40 = vpop.xlane.xlu0 %4652  ;;  %v4426_v26 = vpack.c.bf16 %v4421_v36, %v4420_v30 }
0x1b0c   : > { %6780 = vrcp.f32 %v4653_v40 }
0x1b0d   : > { %6782 = vrcp.f32 %v4404_v41 }
0x1b0e   : > { %6784 = vrcp.f32 %v4650_v61 }
0x1b0f   : > { %v4668_v1 = vpop.xlane.xlu0 %4667  ;;  %6786 = vrcp.f32 %v4659_v55 }
0x1b10   : > { %6788 = vrcp.f32 %v4656_v39 }
0x1b13   : > { %v4429_v34 = vpop.permute.xlu0 %4428 }
0x1b14   : > { %v4443_v29 = vsel %vm1576_vm3, %v4429_v34, 0  ;;  %6430 = vmatprep.subr.msk.bf16.mxu0 %vm1576_vm3, %v4429_v34 }
0x1b15   : > { %6352 = vmatpush3.bf16.msra.mxu0 %v4443_v29 }
0x1b16   : > { %v6781_v41 = vpop.eup %6780 }
0x1b17   : > { %v6783_v2 = vpop.eup %6782  ;;  %v4681_v10 = vmul.f32 %v6781_v41, %v8111_v23 }
0x1b18   : > { %6354 = vmatmul.mubr.msk.bf16.vlgmr.msra.gmra.mrb[88].mxu0 %vm1513_vm2, %v4425_v47  ;;  %v6785_v50 = vpop.eup %6784  ;;  %v4422_v25 = vmul.f32 %v6783_v2, %v8049_v18  ;;  %v6621_v47 = vld [vmem:[%s8647_s10] sm:$0xff]   ;;  %s8651_s10 = sld [smem:[#allocation16_spill]] }
0x1b19   : > { %6357 = vmatprep.mubr.msk.bf16.mxu0 %vm1513_vm2, %v4426_v26  ;;  %v4680_v48 = vmul.f32 %v6785_v50, %v8101_v38  ;;  %v6787_v27 = vpop.eup %6786  ;;  %6381 = vmatprep.subr.bf16.mxu1 %v6621_v47 }
0x1b1a   : > { %v4427_v51 = vpack.c.bf16 %v4423_v52, %v4422_v25  ;;  %v6789_v23 = vpop.eup %6788  ;;  %v4683_v18 = vmul.f32 %v6787_v27, %v8107_v22  ;;  %6382 = vmatpush3.bf16.msra.mxu1 %v6621_v47 }
0x1b1b   : > { %v4688_v14 = vpack.c.bf16 %v4681_v10, %v4680_v48  ;;  %v4682_v43 = vmul.f32 %v6789_v23, %v8097_v56 }
0x1b1d   : > { %v4689_v62 = vpack.c.bf16 %v4683_v18, %v4682_v43 }
0x1b20   : > { %6358 = vmatmul.mubr.msk.bf16.gmra.mrb[92].mxu0 %vm1513_vm2, %v4427_v51 }
0x1b21   : > { %6373 = vmatprep.mubr.msk.bf16.mxu0 %vm1513_vm2, %v4688_v14 }
0x1b24   : > { %v4662_v3 = vpop.xlane.xlu1 %4661 }
0x1b44   : > { %v4671_v35 = vpop.xlane.xlu0 %4670 }
0x1b45   : > { %6790 = vrcp.f32 %v4671_v35 }
0x1b46   : > { %6792 = vrcp.f32 %v4662_v3 }
0x1b47   : > { %6794 = vrcp.f32 %v4668_v1 }
0x1b48   : > { %v4665_v8 = vpop.xlane.xlu0 %4664 }
0x1b49   : > { %6796 = vrcp.f32 %v4665_v8 }
0x1b4c   : > { %v4693_v38 = vpop.permute.xlu0 %4692 }
0x1b4d   : > { %v4707_v11 = vsel %vm1576_vm3, %v4693_v38, 0  ;;  %6432 = vmatprep.subr.msk.bf16.mxu0 %vm1576_vm3, %v4693_v38 }
0x1b4e   : > { %6372 = vmatpush3.bf16.msra.mxu0 %v4707_v11 }
0x1b4f   : > { %v6791_v42 = vpop.eup %6790 }
0x1b50   : > { %v6793_v45 = vpop.eup %6792  ;;  %v4687_v32 = vmul.f32 %v6791_v42, %v8145_v20 }
0x1b51   : > { %6374 = vmatmul.mubr.msk.bf16.vlgmr.msra.gmra.mrb[96].mxu0 %vm1513_vm2, %v4689_v62  ;;  %v6795_v44 = vpop.eup %6794  ;;  %v4684_v49 = vmul.f32 %v6793_v45, %v8127_v4 }
0x1b52   : > { %v4686_v56 = vmul.f32 %v6795_v44, %v8113_v57 }
0x1b53   : > { %v6797_v28 = vpop.eup %6796 }
0x1b54   : > { %v4685_v22 = vmul.f32 %v6797_v28, %v8149_v12  ;;  %v4691_v46 = vpack.c.bf16 %v4687_v32, %v4686_v56 }
0x1b56   : > { %v4690_v7 = vpack.c.bf16 %v4685_v22, %v4684_v49 }
0x1b57   : > { %v8195_v6 = vpop.f32.mrb[72].mxu0 }
0x1b58   : > { %6377 = vmatprep.mubr.msk.bf16.mxu0 %vm1513_vm2, %v4690_v7  ;;  %v8198_v60 = vpop.f32.mrb[73].mxu0 }
0x1b59   : > { %6378 = vmatmul.mubr.msk.bf16.gmra.mrb[100].mxu0 %vm1513_vm2, %v4691_v46  ;;  %v8201_v37 = vpop.f32.mrb[74].mxu0 }
0x1b5a   : > { %v8203_v15 = vpop.f32.mrb[75].mxu0 }
0x1b7a   : > { %v8205_v20 = vpop.f32.mrb[76].mxu0 }
0x1b7b   : > { %v8207_v4 = vpop.f32.mrb[77].mxu0 }
0x1b7c   : > { %v8209_v12 = vpop.f32.mrb[78].mxu0 }
0x1b7d   : > { %v8211_v57 = vpop.f32.mrb[79].mxu0 }
0x1bcb   : > { %v6335_v58 = vpop.f32.mrb[80].mxu0 }
0x1bcc   : > { %v4215_v54 = vpop.f32.mrb[81].mxu0 }
0x1bcd   : > { %v6336_v17 = vpop.f32.mrb[82].mxu0 }
0x1bce   : > { %v6532_v19 = vpack.i.bf16 %v6336_v17, %v6335_v58  ;;  %v4218_v59 = vpop.f32.mrb[83].mxu0 }
0x1bcf   : > { %v6537_v24 = vpack.i.bf16 %v4218_v59, %v4215_v54 }
0x1bd0   : > { %6533 = vrot.lane.b32.xlu0 %v6532_v19, %s8646_s3 }
0x1bd1   : > { %6538 = vrot.lane.b32.xlu1 %v6537_v24, %s8646_s3 }
0x1bd3   : > { %v6339_v39 = vpop.f32.mrb[84].mxu0 }
0x1bd4   : > { %v4231_v63 = vpop.f32.mrb[85].mxu0 }
0x1bd5   : > { %v6340_v53 = vpop.f32.mrb[86].mxu0 }
0x1bd6   : > { %v6542_v13 = vpack.i.bf16 %v6340_v53, %v6339_v39  ;;  %v4234_v61 = vpop.f32.mrb[87].mxu0 }
0x1bd7   : > { %v6547_v55 = vpack.i.bf16 %v4234_v61, %v4231_v63 }
0x1bd8   : > { %6543 = vrot.lane.b32.xlu1 %v6542_v13, %s8646_s3 }
0x1bd9   : > { %6548 = vrot.lane.b32.xlu0 %v6547_v55, %s8646_s3  ;;  %s8650_s3 = sld [smem:[#allocation38_spill]] }
0x1beb   : > { %v6355_v40 = vpop.f32.mrb[88].mxu0 }
0x1bec   : > { %v4479_v5 = vpop.f32.mrb[89].mxu0 }
0x1bed   : > { %v6356_v1 = vpop.f32.mrb[90].mxu0 }
0x1bee   : > { %v6552_v21 = vpack.i.bf16 %v6356_v1, %v6355_v40  ;;  %v4482_v9 = vpop.f32.mrb[91].mxu0 }
0x1bef   : > { %v6557_v0 = vpack.i.bf16 %v4482_v9, %v4479_v5 }
0x1bf0   : > { %6553 = vrot.lane.b32.xlu0 %v6552_v21, %s8648_s1 }
0x1bf3   : > { %v6359_v33 = vpop.f32.mrb[92].mxu0 }
0x1bf4   : > { %6558 = vrot.lane.b32.xlu0 %v6557_v0, %s8648_s1  ;;  %v4495_v34 = vpop.f32.mrb[93].mxu0 }
0x1bf5   : > { %v6360_v36 = vpop.f32.mrb[94].mxu0 }
0x1bf6   : > { %v6577_v31 = vpack.i.bf16 %v6360_v36, %v6359_v33  ;;  %v4498_v29 = vpop.f32.mrb[95].mxu0 }
0x1bf7   : > { %v6572_v30 = vpack.i.bf16 %v4498_v29, %v4495_v34 }
0x1c24   : > { %v6375_v16 = vpop.f32.mrb[96].mxu0 }
0x1c25   : > { %v4743_v26 = vpop.f32.mrb[97].mxu0 }
0x1c26   : > { %v6376_v41 = vpop.f32.mrb[98].mxu0 }
0x1c27   : > { %v6562_v2 = vpack.i.bf16 %v6376_v41, %v6375_v16  ;;  %v4746_v50 = vpop.f32.mrb[99].mxu0 }
0x1c28   : > { %v6567_v52 = vpack.i.bf16 %v4746_v50, %v4743_v26 }
0x1c29   : > { %6563 = vrot.lane.b32.xlu1 %v6562_v2, %s8649_s21 }
0x1c2a   : > { %6568 = vrot.lane.b32.xlu0 %v6567_v52, %s8649_s21 }
0x1c2c   : > { %v6379_v10 = vpop.f32.mrb[100].mxu0 }
0x1c2d   : > { %6578 = vrot.lane.b32.xlu1 %v6577_v31, %s8648_s1  ;;  %v4759_v25 = vpop.f32.mrb[101].mxu0 }
0x1c2e   : > { %6573 = vrot.lane.b32.xlu0 %v6572_v30, %s8648_s1  ;;  %v6380_v48 = vpop.f32.mrb[102].mxu0  ;;  %s8652_s1 = sld [smem:[#allocation39_spill]] }
0x1c2f   : > { %v6587_v51 = vpack.i.bf16 %v6380_v48, %v6379_v10  ;;  %v4762_v14 = vpop.f32.mrb[103].mxu0 }
0x1c30   : > { %v6582_v3 = vpack.i.bf16 %v4762_v14, %v4759_v25 }
0x1c31   : > { %6588 = vrot.lane.b32.xlu1 %v6587_v51, %s8649_s21 }
0x1c32   : > { %6583 = vrot.lane.b32.xlu0 %v6582_v3, %s8649_s21 }
0x1c42   : > { %v6534_v35 = vpop.permute.xlu0 %6533 }
0x1c43   : > { %v6539_v23 = vpop.permute.xlu1 %6538  ;;  %v6536_v18 = vunpack.i.h.bf16 %v6534_v35  ;;  %v6535_v38 = vunpack.i.l.bf16 %v6534_v35  ;;  %v6622_v35 = vld [vmem:[%s8650_s3] sm:$0xff]  }
0x1c44   : > { %v6541_v43 = vunpack.i.h.bf16 %v6539_v23  ;;  %v6540_v42 = vunpack.i.l.bf16 %v6539_v23  ;;  %6391 = vmatprep.subr.bf16.mxu0 %v6622_v35 }
0x1c45   : > { %v4873_v49 = vsel %vm2322_vm6, %v8201_v37, %v6536_v18  ;;  %v4872_v22 = vsel %vm2322_vm6, %v8195_v6, %v6535_v38  ;;  %6392 = vmatpush3.bf16.msra.mxu0 %v6622_v35 }
0x1c46   : > { %v4871_v56 = vsel %vm2322_vm6, %v8203_v15, %v6541_v43  ;;  %v4870_v46 = vsel %vm2322_vm6, %v8198_v60, %v6540_v42 }
0x1c4a   : > { %v6544_v11 = vpop.permute.xlu1 %6543 }
0x1c4b   : > { %v6549_v27 = vpop.permute.xlu0 %6548  ;;  %v6546_v58 = vunpack.i.h.bf16 %v6544_v11  ;;  %v6545_v13 = vunpack.i.l.bf16 %v6544_v11 }
0x1c4c   : > { %v6551_v5 = vunpack.i.h.bf16 %v6549_v27  ;;  %v6550_v1 = vunpack.i.l.bf16 %v6549_v27  ;;  %v6623_v27 = vld [vmem:[%s8650_s3 + $0x8] sm:$0xff]  }
0x1c4d   : > { %v4877_v31 = vsel %vm2322_vm6, %v8209_v12, %v6546_v58  ;;  %v4876_v29 = vsel %vm2322_vm6, %v8205_v20, %v6545_v13  ;;  %6393 = vmatprep.subr.bf16.mxu0 %v6623_v27  ;;  %v8288_v13 = vld [vmem:[%s7360_s11 + $0x38] sm:$0xff] }
0x1c4e   : > { %v4875_v47 = vsel %vm2322_vm6, %v8211_v57, %v6551_v5  ;;  %v4874_v16 = vsel %vm2322_vm6, %v8207_v4, %v6550_v1  ;;  %6394 = vmatpush3.bf16.msra.mxu0 %v6623_v27 }
0x1c62   : > { %v6554_v8 = vpop.permute.xlu0 %6553 }
0x1c63   : > { %v6556_v45 = vunpack.i.h.bf16 %v6554_v8  ;;  %v6555_v44 = vunpack.i.l.bf16 %v6554_v8  ;;  %v5788_v8 = vld [vmem:[%s8651_s10] ss:$0 sm:$0xff]  ;;  %s5488_s10 = sshll.u32 %s1329_s5, 4  ;;  %s5489_s10 = int_to_ptr.vmem [resolvable:$true] %s5488_s10 }
0x1c64   : > { %s6839_s3 = scalar_lea.vmem %s5489_s10, 128  ;;  %p6846_p0 = scmp.lt.s32.totalorder %s5489_s10, %s6844_s8 }
0x1c65   : > { %v4880_v59 = vsel %vm1513_vm2, %v4872_v22, %v6555_v44  ;;  %v4881_v24 = vsel %vm1513_vm2, %v4873_v49, %v6556_v45  ;;  %v8266_v44 = vld [vmem:[%s7360_s11 + $0x10] sm:$0xff]  ;;  %v8274_v22 = vld [vmem:[%s7360_s11] sm:$0xff]  ;;  %p6840_p11 = scmp.ne.s32.totalorder %s5489_s10, %s6839_s3  ;;  %p6847_p1 = scmp.lt.s32.totalorder %s6845_s9, %s6839_s3 }
0x1c66   : > { %v6559_v62 = vpop.permute.xlu0 %6558 }
0x1c67   : > { %v6561_v28 = vunpack.i.h.bf16 %v6559_v62  ;;  %v6560_v32 = vunpack.i.l.bf16 %v6559_v62  ;;  %p6841_p12 = pnand %p6840_p11, %p7227_p5  ;;  %p6848_p2 = por %p6847_p1, %p6846_p0 }
0x1c69   : > { %v4879_v63 = vsel %vm1513_vm2, %v4871_v56, %v6561_v28  ;;  %v4878_v6 = vsel %vm1513_vm2, %v4870_v46, %v6560_v32  ;;  %v8270_v32 = vld [vmem:[%s7360_s11 + $0x18] sm:$0xff]  ;;  %p6842_p13 = pneg %p6841_p12 }
0x1c6b   : > { %p6849_p3 = pnand %p6848_p2, %p6842_p13 }
0x1c9b   : > { %v6564_v7 = vpop.permute.xlu1 %6563 }
0x1c9c   : > { %v6566_v54 = vunpack.i.h.bf16 %v6564_v7  ;;  %v6565_v17 = vunpack.i.l.bf16 %v6564_v7  ;;  %v6569_v19 = vpop.permute.xlu0 %6568  ;;  %v8278_v7 = vld [vmem:[%s7360_s11 + $0x8] sm:$0xff] }
0x1c9d   : > { %v6571_v39 = vunpack.i.h.bf16 %v6569_v19  ;;  %v6570_v37 = vunpack.i.l.bf16 %v6569_v19 }
0x1c9e   : > { %v4888_v15 = vsel %vm2857_vm8, %v4880_v59, %v6565_v17  ;;  %v4889_v53 = vsel %vm2857_vm8, %v4881_v24, %v6566_v54 }
0x1c9f   : > { %v4897_v60 = vpack.c.bf16 %v4889_v53, %v4888_v15  ;;  %v4886_v61 = vsel %vm2857_vm8, %v4878_v6, %v6570_v37  ;;  %v4887_v55 = vsel %vm2857_vm8, %v4879_v63, %v6571_v39  ;;  %v6579_v40 = vpop.permute.xlu1 %6578  ;;  %v8284_v15 = vld [vmem:[%s7360_s11 + $0x30] sm:$0xff] }
0x1ca0   : > { %v4896_v21 = vpack.c.bf16 %v4887_v55, %v4886_v61  ;;  %v6574_v9 = vpop.permute.xlu0 %6573  ;;  %v6581_v0 = vunpack.i.h.bf16 %v6579_v40  ;;  %v6580_v33 = vunpack.i.l.bf16 %v6579_v40  ;;  %v8292_v61 = vld [vmem:[%s7360_s11 + $0x20] sm:$0xff]  ;;  %v8296_v40 = vld [vmem:[%s7360_s11 + $0x28] sm:$0xff]  ;;  %s5813_s11 = sshll.u32 %s7210_s0, 7 }
0x1ca1   : > { %v6576_v34 = vunpack.i.h.bf16 %v6574_v9  ;;  %v6575_v36 = vunpack.i.l.bf16 %v6574_v9  ;;  %v6624_v9 = vld [vmem:[%s7172_s24] sm:$0xff]   ;;  %s8433_s21 = scalar_lea.hbm %s7182_s12, %s5813_s11 }
0x1ca2   : > { %6383 = vmatprep.mubr.msk.bf16.mxu1 %vm1964_vm4, %v4896_v21  ;;  %v4885_v50 = vsel %vm1513_vm2, %v4877_v31, %v6581_v0  ;;  %v4884_v12 = vsel %vm1513_vm2, %v4876_v29, %v6580_v33  ;;  %6403 = vmatprep.subr.bf16.mxu1 %v6624_v9  ;;  %v6625_v0 = vld [vmem:[%s7172_s24 + $0x8] sm:$0xff]   ;;  %v6626_v33 = vld [vmem:[%s7172_s24 + $0x10] sm:$0xff]  }
0x1ca3   : > { %v6589_v30 = vpop.permute.xlu1 %6588  ;;  %6384 = vmatmul.mubr.msk.bf16.vlgmr.msra.gmra.mrb[100].mxu1 %vm1964_vm4, %v4897_v60  ;;  %v4882_v10 = vsel %vm1513_vm2, %v4874_v16, %v6575_v36  ;;  %v4883_v25 = vsel %vm1513_vm2, %v4875_v47, %v6576_v34  ;;  %v6627_v34 = vld [vmem:[%s7172_s24 + $0x18] sm:$0xff]   ;;  %v5794_v36 = vld [vmem:[%s8652_s1] ss:$0 sm:$0xff]  ;;  %s5470_s1 = scalar_lea.sflag [#allocation3], %s1327_s7 }
0x1ca4   : > { %v6591_v26 = vunpack.i.h.bf16 %v6589_v30  ;;  %v6590_v41 = vunpack.i.l.bf16 %v6589_v30  ;;  %v6584_v2 = vpop.permute.xlu0 %6583  ;;  %6404 = vmatpush3.bf16.msra.mxu1 %v6624_v9 }
0x1ca5   : > { %v6586_v52 = vunpack.i.h.bf16 %v6584_v2  ;;  %v6585_v20 = vunpack.i.l.bf16 %v6584_v2  ;;  %6405 = vmatprep.subr.bf16.mxu1 %v6625_v0 }
0x1ca6   : > { %v4893_v57 = vsel %vm2857_vm8, %v4885_v50, %v6591_v26  ;;  %v4892_v4 = vsel %vm2857_vm8, %v4884_v12, %v6590_v41 }
0x1ca7   : > { %v4899_v48 = vpack.c.bf16 %v4893_v57, %v4892_v4  ;;  %v4890_v51 = vsel %vm2857_vm8, %v4882_v10, %v6585_v20  ;;  %v4891_v14 = vsel %vm2857_vm8, %v4883_v25, %v6586_v52 }
0x1ca8   : > { %v4898_v3 = vpack.c.bf16 %v4891_v14, %v4890_v51  ;;  %6406 = vmatpush3.bf16.msra.mxu1 %v6625_v0 }
0x1ca9   : > { %6407 = vmatprep.subr.bf16.mxu1 %v6626_v33 }
0x1caa   : > { %6387 = vmatprep.mubr.msk.bf16.mxu1 %vm1964_vm4, %v4898_v3 }
0x1cab   : > { %6388 = vmatmul.mubr.msk.bf16.gmra.mrb[104].mxu1 %vm1964_vm4, %v4899_v48 }
0x1cac   : > { %6408 = vmatpush3.bf16.msra.mxu1 %v6626_v33 }
0x1cad   : > { %6409 = vmatprep.subr.bf16.mxu1 %v6627_v34 }
0x1cb0   : > { %6410 = vmatpush3.bf16.msra.mxu1 %v6627_v34 }
0x1d76   : > { %v6385_v23 = vpop.f32.mrb[100].mxu1 }
0x1d77   : > { %v4968_v18 = vadd.f32 %v6385_v23, %v5788_v8  ;;  %v4959_v38 = vpop.f32.mrb[101].mxu1 }
0x1d78   : > { %v4960_v43 = vadd.f32 %v5788_v8, %v4959_v38  ;;  %v6386_v11 = vpop.f32.mrb[102].mxu1 }
0x1d79   : > { %v4971_v62 = vadd.f32 %v6386_v11, %v5788_v8  ;;  %v4962_v42 = vpop.f32.mrb[103].mxu1  ;;  %v4992_v28 = vadd.f32 %v8266_v44, %v4968_v18 }
0x1d7a   : > { %v4963_v45 = vadd.f32 %v5788_v8, %v4962_v42  ;;  %v4990_v56 = vadd.f32 %v8274_v22, %v4960_v43 }
0x1d7b   : > { %v4993_v49 = vadd.f32 %v8270_v32, %v4971_v62 }
0x1d7c   : > { %v4991_v46 = vadd.f32 %v8278_v7, %v4963_v45 }
0x1d7d   : > { %v5003_v58 = vpack.c.bf16 %v4993_v49, %v4992_v28 }
0x1d7e   : > { %v5002_v54 = vpack.c.bf16 %v4991_v46, %v4990_v56  ;;  %v6389_v17 = vpop.f32.mrb[104].mxu1 }
0x1d7f   : > { %v4984_v19 = vadd.f32 %v6389_v17, %v5788_v8  ;;  %v4975_v59 = vpop.f32.mrb[105].mxu1 }
0x1d80   : > { %v4976_v24 = vadd.f32 %v5788_v8, %v4975_v59  ;;  %v6390_v39 = vpop.f32.mrb[106].mxu1  ;;  %6395 = vmatprep.mubr.msk.bf16.mxu0 %vm1412_vm1, %v5002_v54 }
0x1d81   : > { %v4987_v37 = vadd.f32 %v6390_v39, %v5788_v8  ;;  %v4978_v63 = vpop.f32.mrb[107].mxu1  ;;  %6396 = vmatmul.mubr.msk.bf16.vlgmr.msra.gmra.mrb[104].mxu0 %vm1412_vm1, %v5003_v58  ;;  %v4996_v53 = vadd.f32 %v8284_v15, %v4984_v19 }
0x1d82   : > { %v4979_v6 = vadd.f32 %v5788_v8, %v4978_v63  ;;  %v4994_v55 = vadd.f32 %v8292_v61, %v4976_v24 }
0x1d83   : > { %v4997_v60 = vadd.f32 %v8288_v13, %v4987_v37 }
0x1d84   : > { %v4995_v5 = vadd.f32 %v8296_v40, %v4979_v6 }
0x1d85   : > { %v5005_v1 = vpack.c.bf16 %v4997_v60, %v4996_v53 }
0x1d86   : > { %v5004_v21 = vpack.c.bf16 %v4995_v5, %v4994_v55 }
0x1d88   : > { %6399 = vmatprep.mubr.msk.bf16.mxu0 %vm1412_vm1, %v5004_v21 }
0x1d89   : > { %6400 = vmatmul.mubr.msk.bf16.gmra.mrb[108].mxu0 %vm1412_vm1, %v5005_v1 }
0x1e54   : > { %v6397_v31 = vpop.f32.mrb[104].mxu0 }
0x1e55   : > { %v8306_v29 = vadd.f32 %v6397_v31, %v5794_v36  ;;  %v5071_v30 = vpop.f32.mrb[105].mxu0 }
0x1e56   : > { %v8308_v47 = vadd.f32 %v5794_v36, %v5071_v30  ;;  %v6398_v16 = vpop.f32.mrb[106].mxu0 }
0x1e57   : > { %v5104_v26 = vmul.f32 %v8306_v29, %v8306_v29  ;;  %v8312_v41 = vadd.f32 %v6398_v16, %v5794_v36  ;;  %v5074_v2 = vpop.f32.mrb[107].mxu0 }
0x1e58   : > { %v5102_v50 = vmul.f32 %v8308_v47, %v8308_v47  ;;  %v8316_v12 = vadd.f32 %v5794_v36, %v5074_v2 }
0x1e59   : > { %v5112_v52 = vmul.f32 %v5104_v26, %v8306_v29  ;;  %v5105_v20 = vmul.f32 %v8312_v41, %v8312_v41 }
0x1e5a   : > { %v5110_v10 = vmul.f32 %v5102_v50, %v8308_v47  ;;  %v5103_v25 = vmul.f32 %v8316_v12, %v8316_v12 }
0x1e5b   : > { %v5120_v57 = vmul.f32 0.044715, %v5112_v52  ;;  %v5113_v4 = vmul.f32 %v5105_v20, %v8312_v41 }
0x1e5c   : > { %v5118_v48 = vmul.f32 0.044715, %v5110_v10  ;;  %v5111_v51 = vmul.f32 %v5103_v25, %v8316_v12  ;;  %v6401_v14 = vpop.f32.mrb[108].mxu0 }
0x1e5d   : > { %v5128_v3 = vadd.f32 %v5120_v57, %v8306_v29  ;;  %v5121_v35 = vmul.f32 0.044715, %v5113_v4  ;;  %v8327_v27 = vadd.f32 %v6401_v14, %v5794_v36  ;;  %v5087_v8 = vpop.f32.mrb[109].mxu0 }
0x1e5e   : > { %v5126_v23 = vadd.f32 %v5118_v48, %v8308_v47  ;;  %v5119_v18 = vmul.f32 0.044715, %v5111_v51  ;;  %v8330_v38 = vadd.f32 %v5794_v36, %v5087_v8  ;;  %v6402_v43 = vpop.f32.mrb[110].mxu0 }
0x1e5f   : > { %v5136_v11 = vmul.f32 0.7978846, %v5128_v3  ;;  %v5129_v62 = vadd.f32 %v5121_v35, %v8312_v41  ;;  %v5108_v42 = vmul.f32 %v8327_v27, %v8327_v27  ;;  %v8335_v45 = vadd.f32 %v6402_v43, %v5794_v36  ;;  %v5090_v28 = vpop.f32.mrb[111].mxu0 }
0x1e60   : > { %v5134_v49 = vmul.f32 0.7978846, %v5126_v23  ;;  %v5127_v56 = vadd.f32 %v5119_v18, %v8316_v12  ;;  %v5106_v46 = vmul.f32 %v8330_v38, %v8330_v38  ;;  %v8340_v58 = vadd.f32 %v5794_v36, %v5090_v28 }
0x1e61   : > { %6798 = vtanh.f32 %v5136_v11  ;;  %v5137_v54 = vmul.f32 0.7978846, %v5129_v62  ;;  %v5116_v17 = vmul.f32 %v5108_v42, %v8327_v27  ;;  %v5109_v19 = vmul.f32 %v8335_v45, %v8335_v45 }
0x1e62   : > { %6800 = vtanh.f32 %v5134_v49  ;;  %v5135_v59 = vmul.f32 0.7978846, %v5127_v56  ;;  %v5114_v24 = vmul.f32 %v5106_v46, %v8330_v38  ;;  %v5107_v39 = vmul.f32 %v8340_v58, %v8340_v58 }
0x1e63   : > { %6802 = vtanh.f32 %v5137_v54  ;;  %v5124_v37 = vmul.f32 0.044715, %v5116_v17  ;;  %v5117_v63 = vmul.f32 %v5109_v19, %v8335_v45 }
0x1e64   : > { %6804 = vtanh.f32 %v5135_v59  ;;  %v5122_v6 = vmul.f32 0.044715, %v5114_v24  ;;  %v5115_v53 = vmul.f32 %v5107_v39, %v8340_v58  ;;  %v5801_v24 = vld [vmem:[%s7177_s30] ss:$0 sm:$0xff] }
0x1e65   : > { %v5132_v60 = vadd.f32 %v5124_v37, %v8327_v27  ;;  %v5125_v55 = vmul.f32 0.044715, %v5117_v63 }
0x1e66   : > { %v5130_v5 = vadd.f32 %v5122_v6, %v8330_v38  ;;  %v5123_v1 = vmul.f32 0.044715, %v5115_v53 }
0x1e67   : > { %v5140_v21 = vmul.f32 0.7978846, %v5132_v60  ;;  %v5133_v9 = vadd.f32 %v5125_v55, %v8335_v45 }
0x1e68   : > { %v5138_v0 = vmul.f32 0.7978846, %v5130_v5  ;;  %v5131_v33 = vadd.f32 %v5123_v1, %v8340_v58 }
0x1e69   : > { %6806 = vtanh.f32 %v5140_v21  ;;  %v5141_v34 = vmul.f32 0.7978846, %v5133_v9 }
0x1e6a   : > { %6808 = vtanh.f32 %v5138_v0  ;;  %v5139_v36 = vmul.f32 0.7978846, %v5131_v33 }
0x1e6b   : > { %v6799_v31 = vpop.eup %6798  ;;  %6810 = vtanh.f32 %v5141_v34 }
0x1e6c   : > { %v6801_v30 = vpop.eup %6800  ;;  %v5152_v16 = vadd.f32 1.0, %v6799_v31  ;;  %6812 = vtanh.f32 %v5139_v36 }
0x1e6d   : > { %v6803_v26 = vpop.eup %6802  ;;  %v5150_v2 = vadd.f32 1.0, %v6801_v30 }
0x1e6e   : > { %v6805_v50 = vpop.eup %6804  ;;  %v5160_v52 = vmul.f32 0.5, %v5152_v16  ;;  %v5153_v20 = vadd.f32 1.0, %v6803_v26 }
0x1e6f   : > { %v5158_v10 = vmul.f32 0.5, %v5150_v2  ;;  %v5151_v25 = vadd.f32 1.0, %v6805_v50 }
0x1e70   : > { %v5161_v57 = vmul.f32 0.5, %v5153_v20  ;;  %v5168_v48 = vmul.f32 %v5160_v52, %v8306_v29 }
0x1e71   : > { %v5159_v4 = vmul.f32 0.5, %v5151_v25  ;;  %v5166_v3 = vmul.f32 %v5158_v10, %v8308_v47 }
0x1e72   : > { %v5169_v51 = vmul.f32 %v5161_v57, %v8312_v41 }
0x1e73   : > { %v6807_v14 = vpop.eup %6806  ;;  %v5167_v35 = vmul.f32 %v5159_v4, %v8316_v12 }
0x1e74   : > { %v6809_v8 = vpop.eup %6808  ;;  %v5183_v23 = vpack.c.bf16 %v5169_v51, %v5168_v48  ;;  %v5156_v18 = vadd.f32 1.0, %v6807_v14 }
0x1e75   : > { %v6811_v43 = vpop.eup %6810  ;;  %v5154_v11 = vadd.f32 1.0, %v6809_v8  ;;  %v5182_v62 = vpack.c.bf16 %v5167_v35, %v5166_v3 }
0x1e76   : > { %v6813_v42 = vpop.eup %6812  ;;  %v5164_v28 = vmul.f32 0.5, %v5156_v18  ;;  %v5157_v49 = vadd.f32 1.0, %v6811_v43 }
0x1e77   : > { %v5162_v56 = vmul.f32 0.5, %v5154_v11  ;;  %v5155_v46 = vadd.f32 1.0, %v6813_v42  ;;  %6411 = vmatprep.mubr.msk.bf16.mxu1 %vm2378_vm7, %v5182_v62 }
0x1e78   : > { %v5165_v29 = vmul.f32 0.5, %v5157_v49  ;;  %6412 = vmatmul.mubr.msk.bf16.vlgmr.msra.gmra.mrb[108].mxu1 %vm2378_vm7, %v5183_v23  ;;  %v5172_v41 = vmul.f32 %v5164_v28, %v8327_v27 }
0x1e79   : > { %v5163_v47 = vmul.f32 0.5, %v5155_v46  ;;  %v5170_v54 = vmul.f32 %v5162_v56, %v8330_v38 }
0x1e7a   : > { %v5173_v12 = vmul.f32 %v5165_v29, %v8335_v45 }
0x1e7b   : > { %v5171_v17 = vmul.f32 %v5163_v47, %v8340_v58 }
0x1e7c   : > { %v5185_v19 = vpack.c.bf16 %v5173_v12, %v5172_v41 }
0x1e7d   : > { %v5184_v59 = vpack.c.bf16 %v5171_v17, %v5170_v54 }
0x1e7f   : > { %6415 = vmatprep.mubr.msk.bf16.mxu1 %vm2378_vm7, %v5184_v59 }
0x1e80   : > { %6416 = vmatmul.mubr.msk.bf16.gmra.mrb[112].mxu1 %vm2378_vm7, %v5185_v19 }
0x1f4b   : > { %v6413_v39 = vpop.f32.mrb[108].mxu1 }
0x1f4c   : > { %v5272_v37 = vadd.f32 %v6413_v39, %v5801_v24  ;;  %v5263_v63 = vpop.f32.mrb[109].mxu1 }
0x1f4d   : > { %v5264_v6 = vadd.f32 %v5801_v24, %v5263_v63  ;;  %v6414_v53 = vpop.f32.mrb[110].mxu1 }
0x1f4e   : > { %v8368_v27 = vadd.f32 %v8266_v44, %v5272_v37  ;;  %v5266_v45 = vpop.f32.mrb[111].mxu1  ;;  %v5275_v58 = vadd.f32 %v6414_v53, %v5801_v24 }
0x1f4f   : > { %v5267_v60 = vadd.f32 %v5801_v24, %v5266_v45  ;;  %v8371_v38 = vadd.f32 %v8274_v22, %v5264_v6 }
0x1f50   : > { %v5310_v55 = vsel %vm1412_vm1, %v8368_v27, 0.0  ;;  %v5338_v5 = vmul.f32 %v8368_v27, %v8368_v27  ;;  %v8382_v9 = vadd.f32 %v8270_v32, %v5275_v58 }
0x1f51   : > { %5311 = vadd.xlane.f32.xlu0 %v5310_v55  ;;  %v8378_v1 = vadd.f32 %v8278_v7, %v5267_v60  ;;  %v5304_v0 = vsel %vm1412_vm1, %v8371_v38, 0.0  ;;  %v5336_v7 = vmul.f32 %v8371_v38, %v8371_v38 }
0x1f52   : > { %v5350_v21 = vsel %vm1412_vm1, %v5338_v5, 0.0  ;;  %v5313_v30 = vsel %vm1412_vm1, %v8382_v9, 0.0  ;;  %v5339_v32 = vmul.f32 %v8382_v9, %v8382_v9 }
0x1f53   : > { %5351 = vadd.xlane.f32.xlu1 %v5350_v21  ;;  %v6417_v44 = vpop.f32.mrb[112].mxu1  ;;  %v5307_v31 = vsel %vm1412_vm1, %v8378_v1, 0.0  ;;  %v5344_v2 = vsel %vm1412_vm1, %v5336_v7, 0.0  ;;  %v5337_v20 = vmul.f32 %v8378_v1, %v8378_v1 }
0x1f54   : > { %v5279_v22 = vpop.f32.mrb[113].mxu1  ;;  %v5288_v34 = vadd.f32 %v6417_v44, %v5801_v24  ;;  %v5353_v52 = vsel %vm1412_vm1, %v5339_v32, 0.0 }
0x1f55   : > { %v6418_v33 = vpop.f32.mrb[114].mxu1  ;;  %5305 = vadd.xlane.f32.xlu0 %v5304_v0  ;;  %v5280_v26 = vadd.f32 %v5801_v24, %v5279_v22  ;;  %v5347_v4 = vsel %vm1412_vm1, %v5337_v20, 0.0 }
0x1f56   : > { %v5282_v36 = vpop.f32.mrb[115].mxu1  ;;  %v8395_v16 = vadd.f32 %v8284_v15, %v5288_v34  ;;  %v5291_v50 = vadd.f32 %v6418_v33, %v5801_v24 }
0x1f57   : > { %5308 = vadd.xlane.f32.xlu1 %v5307_v31  ;;  %v8402_v10 = vadd.f32 %v8292_v61, %v5280_v26  ;;  %v5283_v57 = vadd.f32 %v5801_v24, %v5282_v36 }
0x1f58   : > { %v5322_v25 = vsel %vm1412_vm1, %v8395_v16, 0.0  ;;  %v8407_v15 = vadd.f32 %v8288_v13, %v5291_v50  ;;  %v5342_v3 = vmul.f32 %v8395_v16, %v8395_v16 }
0x1f59   : > { %5314 = vadd.xlane.f32.xlu0 %v5313_v30  ;;  %v5316_v48 = vsel %vm1412_vm1, %v8402_v10, 0.0  ;;  %v5340_v51 = vmul.f32 %v8402_v10, %v8402_v10  ;;  %v8415_v61 = vadd.f32 %v8296_v40, %v5283_v57 }
0x1f5a   : > { %v5325_v14 = vsel %vm1412_vm1, %v8407_v15, 0.0  ;;  %v5362_v8 = vsel %vm1412_vm1, %v5342_v3, 0.0  ;;  %v5343_v18 = vmul.f32 %v8407_v15, %v8407_v15 }
0x1f5b   : > { %5345 = vadd.xlane.f32.xlu1 %v5344_v2  ;;  %v5356_v13 = vsel %vm1412_vm1, %v5340_v51, 0.0  ;;  %v5319_v35 = vsel %vm1412_vm1, %v8415_v61, 0.0  ;;  %v5341_v40 = vmul.f32 %v8415_v61, %v8415_v61 }
0x1f5c   : > { %v5365_v43 = vsel %vm1412_vm1, %v5343_v18, 0.0 }
0x1f5d   : > { %5354 = vadd.xlane.f32.xlu0 %v5353_v52  ;;  %v5359_v23 = vsel %vm1412_vm1, %v5341_v40, 0.0 }
0x1f5f   : > { %5323 = vadd.xlane.f32.xlu1 %v5322_v25 }
0x1f61   : > { %5348 = vadd.xlane.f32.xlu0 %v5347_v4 }
0x1f63   : > { %5317 = vadd.xlane.f32.xlu1 %v5316_v48 }
0x1f65   : > { %5326 = vadd.xlane.f32.xlu0 %v5325_v14 }
0x1f67   : > { %5357 = vadd.xlane.f32.xlu1 %v5356_v13 }
0x1f69   : > { %5320 = vadd.xlane.f32.xlu0 %v5319_v35 }
0x1f6b   : > { %5363 = vadd.xlane.f32.xlu1 %v5362_v8 }
0x1f6d   : > { %5360 = vadd.xlane.f32.xlu0 %v5359_v23 }
0x1f71   : > { %5366 = vadd.xlane.f32.xlu0 %v5365_v43 }
0x1f72   : > { %6852 = shalt.err (!%p6849_p3)
}
0x1f73   : > { %s6853_s4 = scalar_lea.hbm %s8433_s21, 128  ;;  %s6857_s6 = scalar_lea.hbm %s7182_s12, 256 }
0x1f74   : > { %p6854_p4 = scmp.ne.s32.totalorder %s8433_s21, %s6853_s4  ;;  %p6858_p9 = scmp.lt.u32.totalorder %s8433_s21, %s7182_s12 }
0x1f75   : > { %p6859_p10 = scmp.lt.u32.totalorder %s6857_s6, %s6853_s4  ;;  %p6861_p12 = scmp.lt.u32.totalorder %s6853_s4, %s8433_s21 }
0x1f76   : > { %p6855_p7 = pnand %p6854_p4, %p7227_p5 }
0x1f77   : > { %p6860_p11 = por %p6859_p10, %p6858_p9 }
0x1f78   : > { %p6856_p8 = pneg %p6855_p7 }
0x1f79   : > { %p6862_p0 = por %p6861_p12, %p6860_p11 }
0x1f7b   : > { %p6863_p13 = pnand %p6862_p0, %p6856_p8 }
0x1f7d   : > { %6866 = shalt.err (!%p6863_p13)
}
0x1f7e   : > { %6433 = dma.vmem_to_hbm [thread:$0]  (%p7227_p5), %s5489_s10, 128, %s8433_s21, %s5470_s1  }
0x1f7f   : > { %s8653_s9 = sld [smem:[#allocation22_spill]]  ;;  %s8654_s8 = sld [smem:[#allocation23_spill]] }
0x1f80   : > { %s8476_s0 = scalar_lea.vmem %s7187_s20, %s7356_s26 }
0x1f85   : > { %v8464_v32 = vld [vmem:[%s8653_s9] ss:$0 sm:$0xff] }
0x1f86   : > { %v8467_v52 = vld [vmem:[%s8654_s8] ss:$0 sm:$0xff] }
0x1fde   : > { %v5312_v11 = vpop.xlane.xlu0 %5311 }
0x1fdf   : > { %v5330_v62 = vmul.f32 0.03125, %v5312_v11 }
0x1fe0   : > { %v5352_v42 = vpop.xlane.xlu1 %5351 }
0x1fe1   : > { %v5378_v28 = vmul.f32 %v5330_v62, %v5330_v62  ;;  %v5370_v49 = vmul.f32 0.03125, %v5352_v42  ;;  %v5402_v36 = vsub.f32 %v8368_v27, %v5330_v62 }
0x1fe2   : > { %v5306_v56 = vpop.xlane.xlu0 %5305 }
0x1fe3   : > { %v5386_v46 = vsub.f32 %v5370_v49, %v5378_v28  ;;  %v5328_v41 = vmul.f32 0.03125, %v5306_v56 }
0x1fe4   : > { %v5309_v29 = vpop.xlane.xlu1 %5308 }
0x1fe5   : > { %v5394_v47 = vmax.f32 %v5386_v46, 0.0  ;;  %v5376_v59 = vmul.f32 %v5328_v41, %v5328_v41  ;;  %v8456_v53 = vmul.f32 0.03125, %v5309_v29  ;;  %v5400_v23 = vsub.f32 %v8371_v38, %v5328_v41 }
0x1fe6   : > { %v5315_v12 = vpop.xlane.xlu0 %5314 }
0x1fe7   : > { %v5410_v54 = vadd.f32 1e-05, %v5394_v47  ;;  %v8452_v17 = vmul.f32 0.03125, %v5315_v12  ;;  %v5377_v44 = vmul.f32 %v8456_v53, %v8456_v53 }
0x1fe8   : > { %v5346_v19 = vpop.xlane.xlu1 %5345 }
0x1fe9   : > { %6814 = vrsqrt.f32 %v5410_v54  ;;  %v5368_v24 = vmul.f32 0.03125, %v5346_v19  ;;  %v5379_v37 = vmul.f32 %v8452_v17, %v8452_v17  ;;  %v5403_v56 = vsub.f32 %v8382_v9, %v8452_v17 }
0x1fea   : > { %v5355_v39 = vpop.xlane.xlu0 %5354  ;;  %v5401_v9 = vsub.f32 %v8378_v1, %v8456_v53 }
0x1feb   : > { %v5384_v63 = vsub.f32 %v5368_v24, %v5376_v59  ;;  %v5371_v6 = vmul.f32 0.03125, %v5355_v39 }
0x1fec   : > { %v5324_v45 = vpop.xlane.xlu1 %5323 }
0x1fed   : > { %v5392_v60 = vmax.f32 %v5384_v63, 0.0  ;;  %v5387_v58 = vsub.f32 %v5371_v6, %v5379_v37  ;;  %v8469_v20 = vmul.f32 0.03125, %v5324_v45 }
0x1fee   : > { %v5349_v55 = vpop.xlane.xlu0 %5348 }
0x1fef   : > { %v5408_v5 = vadd.f32 1e-05, %v5392_v60  ;;  %v5395_v21 = vmax.f32 %v5387_v58, 0.0  ;;  %v5369_v22 = vmul.f32 0.03125, %v5349_v55  ;;  %v5382_v35 = vmul.f32 %v8469_v20, %v8469_v20 }
0x1ff0   : > { %v5318_v0 = vpop.xlane.xlu1 %5317 }
0x1ff1   : > { %6816 = vrsqrt.f32 %v5408_v5  ;;  %v5411_v33 = vadd.f32 1e-05, %v5395_v21  ;;  %v8460_v34 = vmul.f32 0.03125, %v5318_v0  ;;  %v5385_v31 = vsub.f32 %v5369_v22, %v5377_v44 }
0x1ff2   : > { %v5327_v7 = vpop.xlane.xlu0 %5326  ;;  %v5406_v0 = vsub.f32 %v8395_v16, %v8469_v20 }
0x1ff3   : > { %v6815_v30 = vpop.eup %6814  ;;  %6818 = vrsqrt.f32 %v5411_v33  ;;  %v5393_v2 = vmax.f32 %v5385_v31, 0.0  ;;  %v5380_v25 = vmul.f32 %v8460_v34, %v8460_v34  ;;  %v5335_v18 = vmul.f32 0.03125, %v5327_v7 }
0x1ff4   : > { %v5426_v26 = vmul.f32 %v6815_v30, %v5402_v36  ;;  %v5358_v50 = vpop.xlane.xlu1 %5357  ;;  %v5404_v1 = vsub.f32 %v8402_v10, %v8460_v34 }
0x1ff5   : > { %v5372_v57 = vmul.f32 0.03125, %v5358_v50  ;;  %v5409_v4 = vadd.f32 1e-05, %v5393_v2  ;;  %v5383_v41 = vmul.f32 %v5335_v18, %v5335_v18  ;;  %v5407_v2 = vsub.f32 %v8407_v15, %v5335_v18 }
0x1ff6   : > { %v5440_v27 = vmul.f32 %v8464_v32, %v5426_v26  ;;  %v5321_v48 = vpop.xlane.xlu0 %5320 }
0x1ff7   : > { %v5388_v51 = vsub.f32 %v5372_v57, %v5380_v25  ;;  %v5333_v14 = vmul.f32 0.03125, %v5321_v48  ;;  %6820 = vrsqrt.f32 %v5409_v4 }
0x1ff8   : > { %v5454_v13 = vadd.f32 %v8467_v52, %v5440_v27  ;;  %v5364_v3 = vpop.xlane.xlu1 %5363 }
0x1ff9   : > { %v5396_v40 = vmax.f32 %v5388_v51, 0.0  ;;  %v5374_v8 = vmul.f32 0.03125, %v5364_v3  ;;  %v5381_v42 = vmul.f32 %v5333_v14, %v5333_v14  ;;  %v5405_v7 = vsub.f32 %v8415_v61, %v5333_v14 }
0x1ffa   : > { %5463 = vst.msk [vmem:[%s8476_s0 + $0x10] sm:$0xff] %vm1412_vm1, %v5454_v13  ;;  %v5361_v43 = vpop.xlane.xlu0 %5360 }
0x1ffb   : > { %v6817_v11 = vpop.eup %6816  ;;  %v5412_v62 = vadd.f32 1e-05, %v5396_v40  ;;  %v5390_v28 = vsub.f32 %v5374_v8, %v5382_v35  ;;  %v5373_v49 = vmul.f32 0.03125, %v5361_v43 }
0x1ffc   : > { %v5424_v46 = vmul.f32 %v6817_v11, %v5400_v23 }
0x1ffd   : > { %v6819_v29 = vpop.eup %6818  ;;  %6822 = vrsqrt.f32 %v5412_v62  ;;  %v5398_v47 = vmax.f32 %v5390_v28, 0.0  ;;  %v5389_v12 = vsub.f32 %v5373_v49, %v5381_v42 }
0x1ffe   : > { %v5438_v54 = vmul.f32 %v8464_v32, %v5424_v46  ;;  %v5427_v19 = vmul.f32 %v6819_v29, %v5403_v56  ;;  %v5367_v38 = vpop.xlane.xlu0 %5366 }
0x1fff   : > { %v5414_v59 = vadd.f32 1e-05, %v5398_v47  ;;  %v5397_v24 = vmax.f32 %v5389_v12, 0.0  ;;  %v5375_v39 = vmul.f32 0.03125, %v5367_v38 }
0x2000   : > { %v5452_v37 = vadd.f32 %v8467_v52, %v5438_v54  ;;  %v5441_v63 = vmul.f32 %v8464_v32, %v5427_v19 }
0x2001   : > { %6824 = vrsqrt.f32 %v5414_v59  ;;  %v5413_v17 = vadd.f32 1e-05, %v5397_v24  ;;  %v5391_v6 = vsub.f32 %v5375_v39, %v5383_v41  ;;  %v6821_v45 = vpop.eup %6820 }
0x2002   : > { %5461 = vst.msk [vmem:[%s8476_s0] sm:$0xff] %vm1412_vm1, %v5452_v37  ;;  %v5455_v60 = vadd.f32 %v8467_v52, %v5441_v63  ;;  %v5425_v58 = vmul.f32 %v6821_v45, %v5401_v9 }
0x2003   : > { %6826 = vrsqrt.f32 %v5413_v17  ;;  %v5399_v55 = vmax.f32 %v5391_v6, 0.0 }
0x2004   : > { %5464 = vst.msk [vmem:[%s8476_s0 + $0x18] sm:$0xff] %vm1412_vm1, %v5455_v60  ;;  %v5439_v5 = vmul.f32 %v8464_v32, %v5425_v58 }
0x2005   : > { %v5415_v21 = vadd.f32 1e-05, %v5399_v55 }
0x2006   : > { %v5453_v44 = vadd.f32 %v8467_v52, %v5439_v5 }
0x2007   : > { %v6823_v53 = vpop.eup %6822  ;;  %6828 = vrsqrt.f32 %v5415_v21 }
0x2008   : > { %v5428_v22 = vmul.f32 %v6823_v53, %v5404_v1  ;;  %5462 = vst.msk [vmem:[%s8476_s0 + $0x8] sm:$0xff] %vm1412_vm1, %v5453_v44 }
0x200a   : > { %v5442_v33 = vmul.f32 %v8464_v32, %v5428_v22 }
0x200b   : > { %v6825_v36 = vpop.eup %6824 }
0x200c   : > { %v5456_v31 = vadd.f32 %v8467_v52, %v5442_v33  ;;  %v5430_v10 = vmul.f32 %v6825_v36, %v5406_v0 }
0x200d   : > { %v6827_v34 = vpop.eup %6826 }
0x200e   : > { %5465 = vst.msk [vmem:[%s8476_s0 + $0x20] sm:$0xff] %vm1412_vm1, %v5456_v31  ;;  %v5444_v30 = vmul.f32 %v8464_v32, %v5430_v10  ;;  %v5429_v26 = vmul.f32 %v6827_v34, %v5405_v7 }
0x2010   : > { %v5458_v16 = vadd.f32 %v8467_v52, %v5444_v30  ;;  %v5443_v50 = vmul.f32 %v8464_v32, %v5429_v26 }
0x2011   : > { %v6829_v20 = vpop.eup %6828 }
0x2012   : > { %5467 = vst.msk [vmem:[%s8476_s0 + $0x30] sm:$0xff] %vm1412_vm1, %v5458_v16  ;;  %v5457_v25 = vadd.f32 %v8467_v52, %v5443_v50  ;;  %v5431_v61 = vmul.f32 %v6829_v20, %v5407_v2 }
0x2014   : > { %5466 = vst.msk [vmem:[%s8476_s0 + $0x28] sm:$0xff] %vm1412_vm1, %v5457_v25  ;;  %v5445_v57 = vmul.f32 %v8464_v32, %v5431_v61 }
0x2016   : > { %v5459_v27 = vadd.f32 %v8467_v52, %v5445_v57 }
0x2018   : > { %5468 = vst.msk [vmem:[%s8476_s0 + $0x38] sm:$0xff] %vm1412_vm1, %v5459_v27 }
0x2019 PF: > { %p6439_p5 = scmp.ge.s32.totalorder %s6901_s28, 2  ;;  %s5503_s15 = sand.u32 1, %s6889_s22  }
0x201a   : > { %s5504_s5 = scalar_lea.sflag [#allocation3], %s5503_s15 }
0x201b   : > { %p6436_p1 = pnand %p6439_p5, %p7231_p6 }
0x201d   : > { %6884 = dma.done.wait (!%p6436_p1), %s5504_s5, 128  }
0x201e   : > { %6886 = vsyncadd (!%p6436_p1), %s5504_s5, 4294967168  ;;  %s8655_s26 = sld [smem:[#allocation40_spill]]  ;;  %s8656_s7 = sld [smem:[#allocation41_spill]] }
0x201f   : > { %p98_p2 = scmp.ge.s32.totalorder %s7214_s2, 4   ;;  %s8657_s22 = smov %s6893_s23 }
0x2020   : > { %s8660_s28 = smov %s7214_s2 }
0x2021   :  { %100 = sbr.rel (!%p98_p2) target bundleno = 88 (0x58), region = 287 }
0x2024   : > { %s8658_s23 = smov %s8655_s26  ;;  %s8659_s26 = smov %s8656_s7 }
0x2028   :  { %5517 = vsyncpa [#allocation3], 1 }
0x2029   :  { %5519 = vsyncpa [#allocation3 + $0x1], 1 }

</bundles_post_ra>
